<compile_context>
chip_gen: v7x
topology: tpu7x:2x2x1
jax: 0.10.0
libtpu: 0.0.40
codegen_flags: <defaults>
</compile_context>

<pallas_src>
import numpy as np
import jax
import jax.numpy as jnp
from jax.experimental import pallas as pl
from jax.experimental.pallas import tpu as pltpu

# ----------------------------------------------------------------------------
# In-script darknet cfg (replaces parse_cfg(filepath) -- no file I/O allowed).
# ----------------------------------------------------------------------------
CFG = """
[net]
height=16
width=16
channels=3

[convolutional]
batch_normalize=1
filters=8
size=3
stride=1
pad=1
activation=leaky

[convolutional]
batch_normalize=1
filters=16
size=3
stride=2
pad=1
activation=leaky

[convolutional]
batch_normalize=1
filters=16
size=3
stride=1
pad=1
activation=leaky

[shortcut]
from=-2
activation=linear

[convolutional]
size=1
stride=1
pad=1
filters=21
activation=linear

[yolo]
mask = 0,1,2
anchors = 10,14,  23,27,  37,58,  81,82,  135,169,  344,319
classes=2
num=6

[route]
layers = -3

[convolutional]
batch_normalize=1
filters=8
size=1
stride=1
pad=1
activation=leaky

[upsample]
stride=2

[route]
layers = -1, -9

[convolutional]
size=1
stride=1
pad=1
filters=21
activation=linear

[yolo]
mask = 3,4,5
anchors = 10,14,  23,27,  37,58,  81,82,  135,169,  344,319
classes=2
num=6
"""


def parse_cfg_string(cfg):
    content = [c.strip() for c in cfg.split("\n") if len(c.strip()) > 0]
    content = [c for c in content if c[0] != "#"]
    blocks, block = [], {}
    for c in content:
        if c[0] == "[":
            if len(block) != 0:
                blocks.append(block)
                block = {}
            block["type"] = c[1:-1].strip()
        else:
            k, v = c.split("=")
            block[k.strip()] = v.strip()
    blocks.append(block)
    return blocks


# ----------------------------------------------------------------------------
# Trace-time constant tables (built with numpy; live as kernel inputs in VMEM).
# ----------------------------------------------------------------------------
def _tap_masks(N, H, W, k, pad):
    """(k*k, N*H*W) boundary masks for the in-kernel 9-tap conv accumulation."""
    ys, xs = np.meshgrid(np.arange(H), np.arange(W), indexing="ij")
    rows = []
    for ki in range(k):
        for kj in range(k):
            dy, dx = ki - pad, kj - pad
            valid = ((ys + dy >= 0) & (ys + dy < H) &
                     (xs + dx >= 0) & (xs + dx < W)).astype(np.float32)
            rows.append(np.tile(valid.reshape(-1), N))
    return jnp.asarray(np.stack(rows, axis=0))


def _subsample_matrix(N, H, W, stride, Ho, Wo):
    """0/1 (N*H*W, N*Ho*Wo) lane-selection matrix implementing conv stride."""
    S = np.zeros((N * H * W, N * Ho * Wo), np.float32)
    for n in range(N):
        for yo in range(Ho):
            for xo in range(Wo):
                S[n * H * W + (yo * stride) * W + xo * stride,
                  n * Ho * Wo + yo * Wo + xo] = 1.0
    return jnp.asarray(S)


def _upsample_matrix(N, H, W, scale):
    """0/1 (N*H*W, N*Ho*Wo) lane-replication matrix: 2x nearest upsample."""
    Ho, Wo = H * scale, W * scale
    U = np.zeros((N * H * W, N * Ho * Wo), np.float32)
    for n in range(N):
        for y in range(Ho):
            for x in range(Wo):
                U[n * H * W + (y // scale) * W + (x // scale),
                  n * Ho * Wo + y * Wo + x] = 1.0
    return jnp.asarray(U)


def _yolo_tables(N, G, anchors, num_classes):
    """Precomputed per-channel selectors / anchors and per-lane grid offsets."""
    attrs = 5 + num_classes
    F = len(anchors) * attrs
    yt = np.zeros((F, 8), np.float32)
    for c in range(F):
        a, attr = c // attrs, c % attrs
        yt[c, 0] = 1.0 if attr == 0 else 0.0           # is_x
        yt[c, 1] = 1.0 if attr == 1 else 0.0           # is_y
        yt[c, 2] = 1.0 if attr < 2 else 0.0            # is_xy
        yt[c, 3] = 1.0 if attr in (2, 3) else 0.0      # is_wh
        yt[c, 4] = (anchors[a][0] if attr == 2 else
                    anchors[a][1] if attr == 3 else 1.0)
    cell = np.arange(G * G)
    off = np.stack([np.tile((cell % G).astype(np.float32), N),    # grid x
                    np.tile((cell // G).astype(np.float32), N)])  # grid y
    return jnp.asarray(yt), jnp.asarray(off)


# ----------------------------------------------------------------------------
# The single fused whole-network kernel (built from a static op plan).
# ----------------------------------------------------------------------------
def _build_kernel(ops, n_const):
    def kernel(*refs):
        x_ref = refs[0]
        cref = refs[1:1 + n_const]
        orefs = refs[1 + n_const:]
        vals = {"in": x_ref[...]}                      # f32 channel-major (C, M)

        for op in ops:
            tag = op[0]
            if tag == "conv":
                (_, idx, segs, k, pad, W_in, M_in, m_idx, s_idx,
                 p_idx, has_bn, leaky, F) = op
                acc = jnp.zeros((F, M_in), jnp.float32)
                for (src, w_idx) in segs:              # route-concat == seg sum
                    xsrc = vals[src]
                    w_ref = cref[w_idx]
                    if k == 1:
                        acc = acc + jnp.dot(
                            w_ref[...], xsrc.astype(jnp.bfloat16),
                            preferred_element_type=jnp.float32)
                    else:
                        m_ref = cref[m_idx]
                        t = 0
                        for ki in range(k):
                            for kj in range(k):
                                off = (ki - pad) * W_in + (kj - pad)
                                xs = xsrc if off == 0 else pltpu.roll(
                                    xsrc, shift=(-off) % M_in, axis=1)
                                part = jnp.dot(
                                    w_ref[t], xs.astype(jnp.bfloat16),
                                    preferred_element_type=jnp.float32)
                                if off == 0:
                                    acc = acc + part
                                else:
                                    acc = acc + part * m_ref[t:t + 1, :]
                                t += 1
                if s_idx is not None:                  # stride>1 lane subsample
                    acc = jnp.dot(acc, cref[s_idx][...],
                                  preferred_element_type=jnp.float32)
                if has_bn:                             # train-mode batch stats
                    tab = cref[p_idx][...]             # (F, 2) = [gamma, beta]
                    mean = jnp.mean(acc, axis=1, keepdims=True)
                    var = jnp.mean((acc - mean) * (acc - mean), axis=1,
                                   keepdims=True)
                    acc = ((acc - mean) * jax.lax.rsqrt(var + 1e-5)
                           * tab[:, 0:1] + tab[:, 1:2])
                else:
                    acc = acc + cref[p_idx][...]       # bias (F, 1)
                if leaky:
                    acc = jnp.where(acc > 0, acc, 0.1 * acc)
                vals[idx] = acc

            elif tag == "upsample":
                _, idx, src, u_idx = op
                vals[idx] = jnp.dot(vals[src], cref[u_idx][...],
                                    preferred_element_type=jnp.float32)

            elif tag == "add":                         # shortcut
                _, idx, a_key, b_key = op
                vals[idx] = vals[a_key] + vals[b_key]

            elif tag == "yolo":
                _, idx, src, yt_idx, off_idx, stride, slot = op
                v = vals[src]                          # (A*attrs, N*G*G) logits
                yt = cref[yt_idx][...]
                offt = cref[off_idx]
                grid_off = (yt[:, 0:1] * offt[0:1, :]
                            + yt[:, 1:2] * offt[1:2, :])
                is_xy, is_wh, wh_scale = yt[:, 2:3], yt[:, 3:4], yt[:, 4:5]
                sig = jax.nn.sigmoid(v)
                xy_val = (sig + grid_off) * stride
                wh_val = jnp.exp(jnp.where(is_wh > 0, v, 0.0)) * wh_scale
                orefs[slot][...] = jnp.where(
                    is_xy > 0, xy_val, jnp.where(is_wh > 0, wh_val, sig))

    return kernel


# ----------------------------------------------------------------------------
# DarkNet (Pallas) -- mirrors createModule / DarkNet.forward
# ----------------------------------------------------------------------------
class PallasDarkNet:
    def __init__(self, cfg_str, key):
        self.blocks = parse_cfg_string(cfg_str)
        self.netinfo = self.blocks[0]
        self.modules = self.blocks[1:]
        self.key = key
        self._plan_cache = {}

    # -- build the static op plan + all constant inputs + the pallas_call -----
    def _build_plan(self, N, C0, H0, W0):
        modules = self.modules
        input_dim = int(self.netinfo["height"])
        key = self.key

        consts = []

        def add_const(a):
            consts.append(a)
            return len(consts) - 1

        mask_cache, sub_cache, up_cache = {}, {}, {}

        def get_mask(H, W, k, pad):
            kk = (H, W, k, pad)
            if kk not in mask_cache:
                mask_cache[kk] = add_const(_tap_masks(N, H, W, k, pad))
            return mask_cache[kk]

        def get_sub(H, W, s, Ho, Wo):
            kk = (H, W, s, Ho, Wo)
            if kk not in sub_cache:
                sub_cache[kk] = add_const(_subsample_matrix(N, H, W, s, Ho, Wo))
            return sub_cache[kk]

        def get_up(H, W, scale):
            kk = (H, W, scale)
            if kk not in up_cache:
                up_cache[kk] = add_const(_upsample_matrix(N, H, W, scale))
            return up_cache[kk]

        # Pad input channels (3 -> 8) with zero channels for clean MXU operand
        # shapes; the matching weight columns are inert (multiply zeros).
        C0_pad = max(C0, 8)
        info = {}                       # layer idx -> {parts:[(key,C)], H, W}
        ops = []
        out_meta = []                   # per yolo head: (A, attrs, G)
        cur = dict(parts=[("in", C0_pad)], H=H0, W=W0)

        for i, mod in enumerate(modules):
            mtype = mod["type"]
            if mtype == "convolutional":
                assert "parts" in cur, "conv fed by a yolo output unsupported"
                k = int(mod["size"])
                s = int(mod["stride"])
                pad = (k - 1) // 2 if int(mod["pad"]) else 0
                F = int(mod["filters"])
                bn = bool(int(mod.get("batch_normalize", 0)))
                leaky = mod["activation"] == "leaky"
                H, W = cur["H"], cur["W"]
                M_in = N * H * W
                parts = cur["parts"]
                C_total = sum(c for _, c in parts)
                key, wk, bk = jax.random.split(key, 3)
                Wfull = 0.1 * jax.random.normal(
                    wk, (F, C_total, k, k), jnp.float32)
                segs, coff = [], 0
                for (src, Cp) in parts:                # split weight per source
                    wseg = Wfull[:, coff:coff + Cp]
                    coff += Cp
                    if k == 1:
                        warr = wseg.reshape(F, Cp).astype(jnp.bfloat16)
                    else:                              # (k*k, F, Cp) tap-major
                        warr = jnp.transpose(wseg, (2, 3, 0, 1)).reshape(
                            k * k, F, Cp).astype(jnp.bfloat16)
                    segs.append((src, add_const(warr)))
                m_idx = get_mask(H, W, k, pad) if k > 1 else None
                Ho = (H + 2 * pad - k) // s + 1
                Wo = (W + 2 * pad - k) // s + 1
                s_idx = get_sub(H, W, s, Ho, Wo) if s > 1 else None
                if bn:                                 # PyTorch BN defaults
                    p_idx = add_const(jnp.concatenate(
                        [jnp.ones((F, 1), jnp.float32),
                         jnp.zeros((F, 1), jnp.float32)], axis=1))
                else:
                    p_idx = add_const(
                        0.05 * jax.random.normal(bk, (F, 1), jnp.float32))
                ops.append(("conv", i, tuple(segs), k, pad, W, M_in,
                            m_idx, s_idx, p_idx, bn, leaky, F))
                cur = dict(parts=[(i, F)], H=Ho, W=Wo)

            elif mtype == "upsample":
                assert "parts" in cur and len(cur["parts"]) == 1
                scale = int(mod["stride"])
                src, C = cur["parts"][0]
                H, W = cur["H"], cur["W"]
                ops.append(("upsample", i, src, get_up(H, W, scale)))
                cur = dict(parts=[(i, C)], H=H * scale, W=W * scale)

            elif mtype == "route":
                layers = [int(v) for v in mod["layers"].split(",")]
                idxs = [(l if l > 0 else i + l) for l in layers]
                srcs = [info[j] for j in idxs]
                for sinfo in srcs:
                    assert "parts" in sinfo, "route into yolo output unsupported"
                H, W = srcs[0]["H"], srcs[0]["W"]
                parts = []
                for sinfo in srcs:
                    assert (sinfo["H"], sinfo["W"]) == (H, W)
                    parts += sinfo["parts"]
                cur = dict(parts=parts, H=H, W=W)      # virtual concat (no op)

            elif mtype == "shortcut":
                frm = int(mod["from"])
                a_info, b_info = info[i - 1], info[i + frm]
                assert len(a_info["parts"]) == 1 and len(b_info["parts"]) == 1
                (a_key, ac) = a_info["parts"][0]
                (b_key, bc) = b_info["parts"][0]
                assert ac == bc
                ops.append(("add", i, a_key, b_key))
                cur = dict(parts=[(i, ac)], H=a_info["H"], W=a_info["W"])

            elif mtype == "yolo":
                ymask = [int(m) for m in mod["mask"].split(",")]
                av = list(map(int, mod["anchors"].split(",")))
                anchors = list(zip(av[:-1:2], av[1::2]))
                anchors = [anchors[m] for m in ymask]
                classes = int(mod["classes"])
                attrs = 5 + classes
                A = len(anchors)
                assert "parts" in cur and len(cur["parts"]) == 1
                src, C = cur["parts"][0]
                G = cur["H"]
                assert cur["H"] == cur["W"] and C == A * attrs
                yt, off = _yolo_tables(N, G, anchors, classes)
                yt_idx, off_idx = add_const(yt), add_const(off)
                stride = float(input_dim // G)
                slot = len(out_meta)
                ops.append(("yolo", i, src, yt_idx, off_idx, stride, slot))
                out_meta.append((A, attrs, G))
                cur = dict(det=True)
            else:
                raise ValueError(f"unsupported block type {mtype}")

            info[i] = cur

        # ---- ONE pallas_call for the whole network --------------------------
        n_const = len(consts)
        kernel = _build_kernel(tuple(ops), n_const)

        def full_spec(a):
            nd = a.ndim
            return pl.BlockSpec(a.shape, lambda i, _n=nd: (0,) * _n)

        x_shape = (C0_pad, N * H0 * W0)
        in_specs = ([pl.BlockSpec(x_shape, lambda i: (0, 0))]
                    + [full_spec(a) for a in consts])
        out_shapes, out_specs = [], []
        for (A, attrs, G) in out_meta:
            shp = (A * attrs, N * G * G)               # lane-dense head output
            out_shapes.append(jax.ShapeDtypeStruct(shp, jnp.float32))
            out_specs.append(pl.BlockSpec(shp, lambda i: (0, 0)))

        call = pl.pallas_call(
            kernel,
            out_shape=tuple(out_shapes),
            grid=(1,),
            in_specs=in_specs,
            out_specs=tuple(out_specs),
            compiler_params=pltpu.CompilerParams(
                dimension_semantics=("arbitrary",)),
        )
        consts_t = tuple(consts)

        def run(x_cm):
            return call(x_cm, *consts_t)

        return dict(run=run, out_meta=out_meta, C0_pad=C0_pad)

    # -- forward: tiny JAX-side layout glue around the single fused kernel ----
    def forward(self, x_nchw):
        N, C0, H0, W0 = x_nchw.shape
        ck = (N, C0, H0, W0)
        if ck not in self._plan_cache:
            self._plan_cache[ck] = self._build_plan(N, C0, H0, W0)
        plan = self._plan_cache[ck]
        # NCHW -> channel-major lane-dense (C, N*H*W), zero-pad channels to 8.
        x_cm = jnp.transpose(x_nchw, (1, 0, 2, 3)).reshape(C0, N * H0 * W0)
        if plan["C0_pad"] > C0:
            x_cm = jnp.concatenate(
                [x_cm, jnp.zeros((plan["C0_pad"] - C0, x_cm.shape[1]),
                                 x_cm.dtype)], axis=0)
        heads = plan["run"](x_cm)
        dets = []
        for d, (A, attrs, G) in zip(heads, plan["out_meta"]):
            det = jnp.transpose(d.reshape(A, attrs, N, G * G),
                                (2, 3, 0, 1)).reshape(N, G * G * A, attrs)
            dets.append(det)
        return dets[0] if len(dets) == 1 else jnp.concatenate(dets, axis=1)


if __name__ == "__main__":
    key = jax.random.PRNGKey(0)
    key, xkey = jax.random.split(key)
    net = PallasDarkNet(CFG, key)
    x = jax.random.normal(xkey, (2, 3, 16, 16), jnp.float32)   # NCHW like torch
    fwd = jax.jit(net.forward)
    det = jax.block_until_ready(fwd(x))
    expected = (2, 8 * 8 * 3 + 16 * 16 * 3, 7)   # two YOLO heads, 5+2 attrs
    assert det.shape == expected, (det.shape, expected)
    assert bool(jnp.all(jnp.isfinite(det)))
    print("KERNEL_OK")
</pallas_src>

<mosaic_0001>
module attributes {stable_mosaic.version = 11 : i64} {
  func.func @kernel(%arg0: i32, %arg1: memref<8x512xf32, #tpu.memory_space<vmem>>, %arg2: memref<9x8x8xbf16, #tpu.memory_space<vmem>>, %arg3: memref<9x512xf32, #tpu.memory_space<vmem>>, %arg4: memref<8x2xf32, #tpu.memory_space<vmem>>, %arg5: memref<9x16x8xbf16, #tpu.memory_space<vmem>>, %arg6: memref<512x128xf32, #tpu.memory_space<vmem>>, %arg7: memref<16x2xf32, #tpu.memory_space<vmem>>, %arg8: memref<9x16x16xbf16, #tpu.memory_space<vmem>>, %arg9: memref<9x128xf32, #tpu.memory_space<vmem>>, %arg10: memref<16x2xf32, #tpu.memory_space<vmem>>, %arg11: memref<21x16xbf16, #tpu.memory_space<vmem>>, %arg12: memref<21x1xf32, #tpu.memory_space<vmem>>, %arg13: memref<21x8xf32, #tpu.memory_space<vmem>>, %arg14: memref<2x128xf32, #tpu.memory_space<vmem>>, %arg15: memref<8x16xbf16, #tpu.memory_space<vmem>>, %arg16: memref<8x2xf32, #tpu.memory_space<vmem>>, %arg17: memref<128x512xf32, #tpu.memory_space<vmem>>, %arg18: memref<21x8xbf16, #tpu.memory_space<vmem>>, %arg19: memref<21x8xbf16, #tpu.memory_space<vmem>>, %arg20: memref<21x1xf32, #tpu.memory_space<vmem>>, %arg21: memref<21x8xf32, #tpu.memory_space<vmem>>, %arg22: memref<2x512xf32, #tpu.memory_space<vmem>>, %arg23: memref<21x128xf32, #tpu.memory_space<vmem>>, %arg24: memref<21x512xf32, #tpu.memory_space<vmem>>) attributes {dimension_semantics = [#tpu.dimension_semantics<arbitrary>], iteration_bounds = array<i64: 1>, scalar_prefetch = 0 : i64, scratch_operands = 0 : i64, tpu.core_type = #tpu.core_type<tc>, window_params = [{pipeline_mode = #tpu.pipeline_mode<synchronous>, transform_indices = @transform_0, window_bounds = array<i64: 8, 512>}, {pipeline_mode = #tpu.pipeline_mode<synchronous>, transform_indices = @transform_1, window_bounds = array<i64: 9, 8, 8>}, {pipeline_mode = #tpu.pipeline_mode<synchronous>, transform_indices = @transform_2, window_bounds = array<i64: 9, 512>}, {pipeline_mode = #tpu.pipeline_mode<synchronous>, transform_indices = @transform_3, window_bounds = array<i64: 8, 2>}, {pipeline_mode = #tpu.pipeline_mode<synchronous>, transform_indices = @transform_4, window_bounds = array<i64: 9, 16, 8>}, {pipeline_mode = #tpu.pipeline_mode<synchronous>, transform_indices = @transform_5, window_bounds = array<i64: 512, 128>}, {pipeline_mode = #tpu.pipeline_mode<synchronous>, transform_indices = @transform_6, window_bounds = array<i64: 16, 2>}, {pipeline_mode = #tpu.pipeline_mode<synchronous>, transform_indices = @transform_7, window_bounds = array<i64: 9, 16, 16>}, {pipeline_mode = #tpu.pipeline_mode<synchronous>, transform_indices = @transform_8, window_bounds = array<i64: 9, 128>}, {pipeline_mode = #tpu.pipeline_mode<synchronous>, transform_indices = @transform_9, window_bounds = array<i64: 16, 2>}, {pipeline_mode = #tpu.pipeline_mode<synchronous>, transform_indices = @transform_10, window_bounds = array<i64: 21, 16>}, {pipeline_mode = #tpu.pipeline_mode<synchronous>, transform_indices = @transform_11, window_bounds = array<i64: 21, 1>}, {pipeline_mode = #tpu.pipeline_mode<synchronous>, transform_indices = @transform_12, window_bounds = array<i64: 21, 8>}, {pipeline_mode = #tpu.pipeline_mode<synchronous>, transform_indices = @transform_13, window_bounds = array<i64: 2, 128>}, {pipeline_mode = #tpu.pipeline_mode<synchronous>, transform_indices = @transform_14, window_bounds = array<i64: 8, 16>}, {pipeline_mode = #tpu.pipeline_mode<synchronous>, transform_indices = @transform_15, window_bounds = array<i64: 8, 2>}, {pipeline_mode = #tpu.pipeline_mode<synchronous>, transform_indices = @transform_16, window_bounds = array<i64: 128, 512>}, {pipeline_mode = #tpu.pipeline_mode<synchronous>, transform_indices = @transform_17, window_bounds = array<i64: 21, 8>}, {pipeline_mode = #tpu.pipeline_mode<synchronous>, transform_indices = @transform_18, window_bounds = array<i64: 21, 8>}, {pipeline_mode = #tpu.pipeline_mode<synchronous>, transform_indices = @transform_19, window_bounds = array<i64: 21, 1>}, {pipeline_mode = #tpu.pipeline_mode<synchronous>, transform_indices = @transform_20, window_bounds = array<i64: 21, 8>}, {pipeline_mode = #tpu.pipeline_mode<synchronous>, transform_indices = @transform_21, window_bounds = array<i64: 2, 512>}, {pipeline_mode = #tpu.pipeline_mode<synchronous>, transform_indices = @transform_22, window_bounds = array<i64: 21, 128>}, {pipeline_mode = #tpu.pipeline_mode<synchronous>, transform_indices = @transform_23, window_bounds = array<i64: 21, 512>}]} {
    %c0 = arith.constant 0 : index
    %c0_0 = arith.constant 0 : index
    %0 = vector.load %arg1[%c0, %c0_0] : memref<8x512xf32, #tpu.memory_space<vmem>>, vector<8x512xf32>
    %cst = arith.constant 0.000000e+00 : f32
    %1 = vector.broadcast %cst : f32 to vector<8x512xf32>
    %c17_i32 = arith.constant 17 : i32
    %2 = tpu.dynamic_rotate %0 by %c17_i32 dim 1 : vector<8x512xf32>, i32 -> vector<8x512xf32>
    %c0_1 = arith.constant 0 : index
    %c0_2 = arith.constant 0 : index
    %c0_3 = arith.constant 0 : index
    %3 = vector.load %arg2[%c0_1, %c0_2, %c0_3] : memref<9x8x8xbf16, #tpu.memory_space<vmem>>, vector<1x8x8xbf16>
    %4 = vector.shape_cast %3 : vector<1x8x8xbf16> to vector<8x8xbf16>
    %5 = arith.truncf %2 : vector<8x512xf32> to vector<8x512xbf16>
    %cst_4 = arith.constant dense<0.000000e+00> : vector<8x512xf32>
    %6 = tpu.matmul %4, %5, %cst_4 {dimension_numbers = #tpu.dot_dimension_numbers<[1], [0], [0], [1], [0, 0, 1, 1], [], []>} : vector<8x8xbf16>, vector<8x512xbf16>, vector<8x512xf32> -> vector<8x512xf32>
    %c0_5 = arith.constant 0 : index
    %c0_6 = arith.constant 0 : index
    %7 = vector.load %arg3[%c0_5, %c0_6] : memref<9x512xf32, #tpu.memory_space<vmem>>, vector<1x512xf32>
    %8 = vector.broadcast %7 : vector<1x512xf32> to vector<8x512xf32>
    %9 = arith.mulf %6, %8 : vector<8x512xf32>
    %10 = arith.addf %1, %9 : vector<8x512xf32>
    %c16_i32 = arith.constant 16 : i32
    %11 = tpu.dynamic_rotate %0 by %c16_i32 dim 1 : vector<8x512xf32>, i32 -> vector<8x512xf32>
    %c1 = arith.constant 1 : index
    %c0_7 = arith.constant 0 : index
    %c0_8 = arith.constant 0 : index
    %12 = vector.load %arg2[%c1, %c0_7, %c0_8] : memref<9x8x8xbf16, #tpu.memory_space<vmem>>, vector<1x8x8xbf16>
    %13 = vector.shape_cast %12 : vector<1x8x8xbf16> to vector<8x8xbf16>
    %14 = arith.truncf %11 : vector<8x512xf32> to vector<8x512xbf16>
    %cst_9 = arith.constant dense<0.000000e+00> : vector<8x512xf32>
    %15 = tpu.matmul %13, %14, %cst_9 {dimension_numbers = #tpu.dot_dimension_numbers<[1], [0], [0], [1], [0, 0, 1, 1], [], []>} : vector<8x8xbf16>, vector<8x512xbf16>, vector<8x512xf32> -> vector<8x512xf32>
    %c1_10 = arith.constant 1 : index
    %c0_11 = arith.constant 0 : index
    %16 = vector.load %arg3[%c1_10, %c0_11] : memref<9x512xf32, #tpu.memory_space<vmem>>, vector<1x512xf32>
    %17 = vector.broadcast %16 : vector<1x512xf32> to vector<8x512xf32>
    %18 = arith.mulf %15, %17 : vector<8x512xf32>
    %19 = arith.addf %10, %18 : vector<8x512xf32>
    %c15_i32 = arith.constant 15 : i32
    %20 = tpu.dynamic_rotate %0 by %c15_i32 dim 1 : vector<8x512xf32>, i32 -> vector<8x512xf32>
    %c2 = arith.constant 2 : index
    %c0_12 = arith.constant 0 : index
    %c0_13 = arith.constant 0 : index
    %21 = vector.load %arg2[%c2, %c0_12, %c0_13] : memref<9x8x8xbf16, #tpu.memory_space<vmem>>, vector<1x8x8xbf16>
    %22 = vector.shape_cast %21 : vector<1x8x8xbf16> to vector<8x8xbf16>
    %23 = arith.truncf %20 : vector<8x512xf32> to vector<8x512xbf16>
    %cst_14 = arith.constant dense<0.000000e+00> : vector<8x512xf32>
    %24 = tpu.matmul %22, %23, %cst_14 {dimension_numbers = #tpu.dot_dimension_numbers<[1], [0], [0], [1], [0, 0, 1, 1], [], []>} : vector<8x8xbf16>, vector<8x512xbf16>, vector<8x512xf32> -> vector<8x512xf32>
    %c2_15 = arith.constant 2 : index
    %c0_16 = arith.constant 0 : index
    %25 = vector.load %arg3[%c2_15, %c0_16] : memref<9x512xf32, #tpu.memory_space<vmem>>, vector<1x512xf32>
    %26 = vector.broadcast %25 : vector<1x512xf32> to vector<8x512xf32>
    %27 = arith.mulf %24, %26 : vector<8x512xf32>
    %28 = arith.addf %19, %27 : vector<8x512xf32>
    %c1_i32 = arith.constant 1 : i32
    %29 = tpu.dynamic_rotate %0 by %c1_i32 dim 1 : vector<8x512xf32>, i32 -> vector<8x512xf32>
    %c3 = arith.constant 3 : index
    %c0_17 = arith.constant 0 : index
    %c0_18 = arith.constant 0 : index
    %30 = vector.load %arg2[%c3, %c0_17, %c0_18] : memref<9x8x8xbf16, #tpu.memory_space<vmem>>, vector<1x8x8xbf16>
    %31 = vector.shape_cast %30 : vector<1x8x8xbf16> to vector<8x8xbf16>
    %32 = arith.truncf %29 : vector<8x512xf32> to vector<8x512xbf16>
    %cst_19 = arith.constant dense<0.000000e+00> : vector<8x512xf32>
    %33 = tpu.matmul %31, %32, %cst_19 {dimension_numbers = #tpu.dot_dimension_numbers<[1], [0], [0], [1], [0, 0, 1, 1], [], []>} : vector<8x8xbf16>, vector<8x512xbf16>, vector<8x512xf32> -> vector<8x512xf32>
    %c3_20 = arith.constant 3 : index
    %c0_21 = arith.constant 0 : index
    %34 = vector.load %arg3[%c3_20, %c0_21] : memref<9x512xf32, #tpu.memory_space<vmem>>, vector<1x512xf32>
    %35 = vector.broadcast %34 : vector<1x512xf32> to vector<8x512xf32>
    %36 = arith.mulf %33, %35 : vector<8x512xf32>
    %37 = arith.addf %28, %36 : vector<8x512xf32>
    %c4 = arith.constant 4 : index
    %c0_22 = arith.constant 0 : index
    %c0_23 = arith.constant 0 : index
    %38 = vector.load %arg2[%c4, %c0_22, %c0_23] : memref<9x8x8xbf16, #tpu.memory_space<vmem>>, vector<1x8x8xbf16>
    %39 = vector.shape_cast %38 : vector<1x8x8xbf16> to vector<8x8xbf16>
    %40 = arith.truncf %0 : vector<8x512xf32> to vector<8x512xbf16>
    %cst_24 = arith.constant dense<0.000000e+00> : vector<8x512xf32>
    %41 = tpu.matmul %39, %40, %cst_24 {dimension_numbers = #tpu.dot_dimension_numbers<[1], [0], [0], [1], [0, 0, 1, 1], [], []>} : vector<8x8xbf16>, vector<8x512xbf16>, vector<8x512xf32> -> vector<8x512xf32>
    %42 = arith.addf %37, %41 : vector<8x512xf32>
    %c511_i32 = arith.constant 511 : i32
    %43 = tpu.dynamic_rotate %0 by %c511_i32 dim 1 : vector<8x512xf32>, i32 -> vector<8x512xf32>
    %c5 = arith.constant 5 : index
    %c0_25 = arith.constant 0 : index
    %c0_26 = arith.constant 0 : index
    %44 = vector.load %arg2[%c5, %c0_25, %c0_26] : memref<9x8x8xbf16, #tpu.memory_space<vmem>>, vector<1x8x8xbf16>
    %45 = vector.shape_cast %44 : vector<1x8x8xbf16> to vector<8x8xbf16>
    %46 = arith.truncf %43 : vector<8x512xf32> to vector<8x512xbf16>
    %cst_27 = arith.constant dense<0.000000e+00> : vector<8x512xf32>
    %47 = tpu.matmul %45, %46, %cst_27 {dimension_numbers = #tpu.dot_dimension_numbers<[1], [0], [0], [1], [0, 0, 1, 1], [], []>} : vector<8x8xbf16>, vector<8x512xbf16>, vector<8x512xf32> -> vector<8x512xf32>
    %c5_28 = arith.constant 5 : index
    %c0_29 = arith.constant 0 : index
    %48 = vector.load %arg3[%c5_28, %c0_29] : memref<9x512xf32, #tpu.memory_space<vmem>>, vector<1x512xf32>
    %49 = vector.broadcast %48 : vector<1x512xf32> to vector<8x512xf32>
    %50 = arith.mulf %47, %49 : vector<8x512xf32>
    %51 = arith.addf %42, %50 : vector<8x512xf32>
    %c497_i32 = arith.constant 497 : i32
    %52 = tpu.dynamic_rotate %0 by %c497_i32 dim 1 : vector<8x512xf32>, i32 -> vector<8x512xf32>
    %c6 = arith.constant 6 : index
    %c0_30 = arith.constant 0 : index
    %c0_31 = arith.constant 0 : index
    %53 = vector.load %arg2[%c6, %c0_30, %c0_31] : memref<9x8x8xbf16, #tpu.memory_space<vmem>>, vector<1x8x8xbf16>
    %54 = vector.shape_cast %53 : vector<1x8x8xbf16> to vector<8x8xbf16>
    %55 = arith.truncf %52 : vector<8x512xf32> to vector<8x512xbf16>
    %cst_32 = arith.constant dense<0.000000e+00> : vector<8x512xf32>
    %56 = tpu.matmul %54, %55, %cst_32 {dimension_numbers = #tpu.dot_dimension_numbers<[1], [0], [0], [1], [0, 0, 1, 1], [], []>} : vector<8x8xbf16>, vector<8x512xbf16>, vector<8x512xf32> -> vector<8x512xf32>
    %c6_33 = arith.constant 6 : index
    %c0_34 = arith.constant 0 : index
    %57 = vector.load %arg3[%c6_33, %c0_34] : memref<9x512xf32, #tpu.memory_space<vmem>>, vector<1x512xf32>
    %58 = vector.broadcast %57 : vector<1x512xf32> to vector<8x512xf32>
    %59 = arith.mulf %56, %58 : vector<8x512xf32>
    %60 = arith.addf %51, %59 : vector<8x512xf32>
    %c496_i32 = arith.constant 496 : i32
    %61 = tpu.dynamic_rotate %0 by %c496_i32 dim 1 : vector<8x512xf32>, i32 -> vector<8x512xf32>
    %c7 = arith.constant 7 : index
    %c0_35 = arith.constant 0 : index
    %c0_36 = arith.constant 0 : index
    %62 = vector.load %arg2[%c7, %c0_35, %c0_36] : memref<9x8x8xbf16, #tpu.memory_space<vmem>>, vector<1x8x8xbf16>
    %63 = vector.shape_cast %62 : vector<1x8x8xbf16> to vector<8x8xbf16>
    %64 = arith.truncf %61 : vector<8x512xf32> to vector<8x512xbf16>
    %cst_37 = arith.constant dense<0.000000e+00> : vector<8x512xf32>
    %65 = tpu.matmul %63, %64, %cst_37 {dimension_numbers = #tpu.dot_dimension_numbers<[1], [0], [0], [1], [0, 0, 1, 1], [], []>} : vector<8x8xbf16>, vector<8x512xbf16>, vector<8x512xf32> -> vector<8x512xf32>
    %c7_38 = arith.constant 7 : index
    %c0_39 = arith.constant 0 : index
    %66 = vector.load %arg3[%c7_38, %c0_39] : memref<9x512xf32, #tpu.memory_space<vmem>>, vector<1x512xf32>
    %67 = vector.broadcast %66 : vector<1x512xf32> to vector<8x512xf32>
    %68 = arith.mulf %65, %67 : vector<8x512xf32>
    %69 = arith.addf %60, %68 : vector<8x512xf32>
    %c495_i32 = arith.constant 495 : i32
    %70 = tpu.dynamic_rotate %0 by %c495_i32 dim 1 : vector<8x512xf32>, i32 -> vector<8x512xf32>
    %c8 = arith.constant 8 : index
    %c0_40 = arith.constant 0 : index
    %c0_41 = arith.constant 0 : index
    %71 = vector.load %arg2[%c8, %c0_40, %c0_41] : memref<9x8x8xbf16, #tpu.memory_space<vmem>>, vector<1x8x8xbf16>
    %72 = vector.shape_cast %71 : vector<1x8x8xbf16> to vector<8x8xbf16>
    %73 = arith.truncf %70 : vector<8x512xf32> to vector<8x512xbf16>
    %cst_42 = arith.constant dense<0.000000e+00> : vector<8x512xf32>
    %74 = tpu.matmul %72, %73, %cst_42 {dimension_numbers = #tpu.dot_dimension_numbers<[1], [0], [0], [1], [0, 0, 1, 1], [], []>} : vector<8x8xbf16>, vector<8x512xbf16>, vector<8x512xf32> -> vector<8x512xf32>
    %c8_43 = arith.constant 8 : index
    %c0_44 = arith.constant 0 : index
    %75 = vector.load %arg3[%c8_43, %c0_44] : memref<9x512xf32, #tpu.memory_space<vmem>>, vector<1x512xf32>
    %76 = vector.broadcast %75 : vector<1x512xf32> to vector<8x512xf32>
    %77 = arith.mulf %74, %76 : vector<8x512xf32>
    %78 = arith.addf %69, %77 : vector<8x512xf32>
    %c0_45 = arith.constant 0 : index
    %c0_46 = arith.constant 0 : index
    %79 = vector.load %arg4[%c0_45, %c0_46] : memref<8x2xf32, #tpu.memory_space<vmem>>, vector<8x2xf32>
    %cst_47 = arith.constant dense<0.000000e+00> : vector<8xf32>
    %80 = vector.multi_reduction <add>, %78, %cst_47 [1] : vector<8x512xf32> to vector<8xf32>
    %81 = vector.shape_cast %80 : vector<8xf32> to vector<8x1xf32>
    %cst_48 = arith.constant 5.120000e+02 : f32
    %82 = vector.broadcast %cst_48 : f32 to vector<8x1xf32>
    %83 = arith.divf %81, %82 : vector<8x1xf32>
    %84 = vector.broadcast %83 : vector<8x1xf32> to vector<8x512xf32>
    %85 = arith.subf %78, %84 : vector<8x512xf32>
    %86 = vector.broadcast %83 : vector<8x1xf32> to vector<8x512xf32>
    %87 = arith.subf %78, %86 : vector<8x512xf32>
    %88 = arith.mulf %85, %87 : vector<8x512xf32>
    %cst_49 = arith.constant dense<0.000000e+00> : vector<8xf32>
    %89 = vector.multi_reduction <add>, %88, %cst_49 [1] : vector<8x512xf32> to vector<8xf32>
    %90 = vector.shape_cast %89 : vector<8xf32> to vector<8x1xf32>
    %cst_50 = arith.constant 5.120000e+02 : f32
    %91 = vector.broadcast %cst_50 : f32 to vector<8x1xf32>
    %92 = arith.divf %90, %91 : vector<8x1xf32>
    %93 = vector.broadcast %83 : vector<8x1xf32> to vector<8x512xf32>
    %94 = arith.subf %78, %93 : vector<8x512xf32>
    %cst_51 = arith.constant 9.99999974E-6 : f32
    %95 = vector.broadcast %cst_51 : f32 to vector<8x1xf32>
    %96 = arith.addf %92, %95 : vector<8x1xf32>
    %97 = math.rsqrt %96 : vector<8x1xf32>
    %98 = vector.broadcast %97 : vector<8x1xf32> to vector<8x512xf32>
    %99 = arith.mulf %94, %98 : vector<8x512xf32>
    %100 = vector.extract_strided_slice %79 {offsets = [0, 0], sizes = [8, 1], strides = [1, 1]} : vector<8x2xf32> to vector<8x1xf32>
    %101 = vector.broadcast %100 : vector<8x1xf32> to vector<8x512xf32>
    %102 = arith.mulf %99, %101 : vector<8x512xf32>
    %103 = vector.extract_strided_slice %79 {offsets = [0, 1], sizes = [8, 1], strides = [1, 1]} : vector<8x2xf32> to vector<8x1xf32>
    %104 = vector.broadcast %103 : vector<8x1xf32> to vector<8x512xf32>
    %105 = arith.addf %102, %104 : vector<8x512xf32>
    %cst_52 = arith.constant 0.000000e+00 : f32
    %106 = vector.broadcast %cst_52 : f32 to vector<8x512xf32>
    %107 = arith.cmpf ogt, %105, %106 : vector<8x512xf32>
    %cst_53 = arith.constant 1.000000e-01 : f32
    %108 = vector.broadcast %cst_53 : f32 to vector<8x512xf32>
    %109 = arith.mulf %108, %105 : vector<8x512xf32>
    %110 = arith.select %107, %105, %109 : vector<8x512xi1>, vector<8x512xf32>
    %cst_54 = arith.constant 0.000000e+00 : f32
    %111 = vector.broadcast %cst_54 : f32 to vector<16x512xf32>
    %c17_i32_55 = arith.constant 17 : i32
    %112 = tpu.dynamic_rotate %110 by %c17_i32_55 dim 1 : vector<8x512xf32>, i32 -> vector<8x512xf32>
    %c0_56 = arith.constant 0 : index
    %c0_57 = arith.constant 0 : index
    %c0_58 = arith.constant 0 : index
    %113 = vector.load %arg5[%c0_56, %c0_57, %c0_58] : memref<9x16x8xbf16, #tpu.memory_space<vmem>>, vector<1x16x8xbf16>
    %114 = vector.shape_cast %113 : vector<1x16x8xbf16> to vector<16x8xbf16>
    %115 = arith.truncf %112 : vector<8x512xf32> to vector<8x512xbf16>
    %cst_59 = arith.constant dense<0.000000e+00> : vector<16x512xf32>
    %116 = tpu.matmul %114, %115, %cst_59 {dimension_numbers = #tpu.dot_dimension_numbers<[1], [0], [0], [1], [0, 0, 1, 1], [], []>} : vector<16x8xbf16>, vector<8x512xbf16>, vector<16x512xf32> -> vector<16x512xf32>
    %c0_60 = arith.constant 0 : index
    %c0_61 = arith.constant 0 : index
    %117 = vector.load %arg3[%c0_60, %c0_61] : memref<9x512xf32, #tpu.memory_space<vmem>>, vector<1x512xf32>
    %118 = vector.broadcast %117 : vector<1x512xf32> to vector<16x512xf32>
    %119 = arith.mulf %116, %118 : vector<16x512xf32>
    %120 = arith.addf %111, %119 : vector<16x512xf32>
    %c16_i32_62 = arith.constant 16 : i32
    %121 = tpu.dynamic_rotate %110 by %c16_i32_62 dim 1 : vector<8x512xf32>, i32 -> vector<8x512xf32>
    %c1_63 = arith.constant 1 : index
    %c0_64 = arith.constant 0 : index
    %c0_65 = arith.constant 0 : index
    %122 = vector.load %arg5[%c1_63, %c0_64, %c0_65] : memref<9x16x8xbf16, #tpu.memory_space<vmem>>, vector<1x16x8xbf16>
    %123 = vector.shape_cast %122 : vector<1x16x8xbf16> to vector<16x8xbf16>
    %124 = arith.truncf %121 : vector<8x512xf32> to vector<8x512xbf16>
    %cst_66 = arith.constant dense<0.000000e+00> : vector<16x512xf32>
    %125 = tpu.matmul %123, %124, %cst_66 {dimension_numbers = #tpu.dot_dimension_numbers<[1], [0], [0], [1], [0, 0, 1, 1], [], []>} : vector<16x8xbf16>, vector<8x512xbf16>, vector<16x512xf32> -> vector<16x512xf32>
    %c1_67 = arith.constant 1 : index
    %c0_68 = arith.constant 0 : index
    %126 = vector.load %arg3[%c1_67, %c0_68] : memref<9x512xf32, #tpu.memory_space<vmem>>, vector<1x512xf32>
    %127 = vector.broadcast %126 : vector<1x512xf32> to vector<16x512xf32>
    %128 = arith.mulf %125, %127 : vector<16x512xf32>
    %129 = arith.addf %120, %128 : vector<16x512xf32>
    %c15_i32_69 = arith.constant 15 : i32
    %130 = tpu.dynamic_rotate %110 by %c15_i32_69 dim 1 : vector<8x512xf32>, i32 -> vector<8x512xf32>
    %c2_70 = arith.constant 2 : index
    %c0_71 = arith.constant 0 : index
    %c0_72 = arith.constant 0 : index
    %131 = vector.load %arg5[%c2_70, %c0_71, %c0_72] : memref<9x16x8xbf16, #tpu.memory_space<vmem>>, vector<1x16x8xbf16>
    %132 = vector.shape_cast %131 : vector<1x16x8xbf16> to vector<16x8xbf16>
    %133 = arith.truncf %130 : vector<8x512xf32> to vector<8x512xbf16>
    %cst_73 = arith.constant dense<0.000000e+00> : vector<16x512xf32>
    %134 = tpu.matmul %132, %133, %cst_73 {dimension_numbers = #tpu.dot_dimension_numbers<[1], [0], [0], [1], [0, 0, 1, 1], [], []>} : vector<16x8xbf16>, vector<8x512xbf16>, vector<16x512xf32> -> vector<16x512xf32>
    %c2_74 = arith.constant 2 : index
    %c0_75 = arith.constant 0 : index
    %135 = vector.load %arg3[%c2_74, %c0_75] : memref<9x512xf32, #tpu.memory_space<vmem>>, vector<1x512xf32>
    %136 = vector.broadcast %135 : vector<1x512xf32> to vector<16x512xf32>
    %137 = arith.mulf %134, %136 : vector<16x512xf32>
    %138 = arith.addf %129, %137 : vector<16x512xf32>
    %c1_i32_76 = arith.constant 1 : i32
    %139 = tpu.dynamic_rotate %110 by %c1_i32_76 dim 1 : vector<8x512xf32>, i32 -> vector<8x512xf32>
    %c3_77 = arith.constant 3 : index
    %c0_78 = arith.constant 0 : index
    %c0_79 = arith.constant 0 : index
    %140 = vector.load %arg5[%c3_77, %c0_78, %c0_79] : memref<9x16x8xbf16, #tpu.memory_space<vmem>>, vector<1x16x8xbf16>
    %141 = vector.shape_cast %140 : vector<1x16x8xbf16> to vector<16x8xbf16>
    %142 = arith.truncf %139 : vector<8x512xf32> to vector<8x512xbf16>
    %cst_80 = arith.constant dense<0.000000e+00> : vector<16x512xf32>
    %143 = tpu.matmul %141, %142, %cst_80 {dimension_numbers = #tpu.dot_dimension_numbers<[1], [0], [0], [1], [0, 0, 1, 1], [], []>} : vector<16x8xbf16>, vector<8x512xbf16>, vector<16x512xf32> -> vector<16x512xf32>
    %c3_81 = arith.constant 3 : index
    %c0_82 = arith.constant 0 : index
    %144 = vector.load %arg3[%c3_81, %c0_82] : memref<9x512xf32, #tpu.memory_space<vmem>>, vector<1x512xf32>
    %145 = vector.broadcast %144 : vector<1x512xf32> to vector<16x512xf32>
    %146 = arith.mulf %143, %145 : vector<16x512xf32>
    %147 = arith.addf %138, %146 : vector<16x512xf32>
    %c4_83 = arith.constant 4 : index
    %c0_84 = arith.constant 0 : index
    %c0_85 = arith.constant 0 : index
    %148 = vector.load %arg5[%c4_83, %c0_84, %c0_85] : memref<9x16x8xbf16, #tpu.memory_space<vmem>>, vector<1x16x8xbf16>
    %149 = vector.shape_cast %148 : vector<1x16x8xbf16> to vector<16x8xbf16>
    %150 = arith.truncf %110 : vector<8x512xf32> to vector<8x512xbf16>
    %cst_86 = arith.constant dense<0.000000e+00> : vector<16x512xf32>
    %151 = tpu.matmul %149, %150, %cst_86 {dimension_numbers = #tpu.dot_dimension_numbers<[1], [0], [0], [1], [0, 0, 1, 1], [], []>} : vector<16x8xbf16>, vector<8x512xbf16>, vector<16x512xf32> -> vector<16x512xf32>
    %152 = arith.addf %147, %151 : vector<16x512xf32>
    %c511_i32_87 = arith.constant 511 : i32
    %153 = tpu.dynamic_rotate %110 by %c511_i32_87 dim 1 : vector<8x512xf32>, i32 -> vector<8x512xf32>
    %c5_88 = arith.constant 5 : index
    %c0_89 = arith.constant 0 : index
    %c0_90 = arith.constant 0 : index
    %154 = vector.load %arg5[%c5_88, %c0_89, %c0_90] : memref<9x16x8xbf16, #tpu.memory_space<vmem>>, vector<1x16x8xbf16>
    %155 = vector.shape_cast %154 : vector<1x16x8xbf16> to vector<16x8xbf16>
    %156 = arith.truncf %153 : vector<8x512xf32> to vector<8x512xbf16>
    %cst_91 = arith.constant dense<0.000000e+00> : vector<16x512xf32>
    %157 = tpu.matmul %155, %156, %cst_91 {dimension_numbers = #tpu.dot_dimension_numbers<[1], [0], [0], [1], [0, 0, 1, 1], [], []>} : vector<16x8xbf16>, vector<8x512xbf16>, vector<16x512xf32> -> vector<16x512xf32>
    %c5_92 = arith.constant 5 : index
    %c0_93 = arith.constant 0 : index
    %158 = vector.load %arg3[%c5_92, %c0_93] : memref<9x512xf32, #tpu.memory_space<vmem>>, vector<1x512xf32>
    %159 = vector.broadcast %158 : vector<1x512xf32> to vector<16x512xf32>
    %160 = arith.mulf %157, %159 : vector<16x512xf32>
    %161 = arith.addf %152, %160 : vector<16x512xf32>
    %c497_i32_94 = arith.constant 497 : i32
    %162 = tpu.dynamic_rotate %110 by %c497_i32_94 dim 1 : vector<8x512xf32>, i32 -> vector<8x512xf32>
    %c6_95 = arith.constant 6 : index
    %c0_96 = arith.constant 0 : index
    %c0_97 = arith.constant 0 : index
    %163 = vector.load %arg5[%c6_95, %c0_96, %c0_97] : memref<9x16x8xbf16, #tpu.memory_space<vmem>>, vector<1x16x8xbf16>
    %164 = vector.shape_cast %163 : vector<1x16x8xbf16> to vector<16x8xbf16>
    %165 = arith.truncf %162 : vector<8x512xf32> to vector<8x512xbf16>
    %cst_98 = arith.constant dense<0.000000e+00> : vector<16x512xf32>
    %166 = tpu.matmul %164, %165, %cst_98 {dimension_numbers = #tpu.dot_dimension_numbers<[1], [0], [0], [1], [0, 0, 1, 1], [], []>} : vector<16x8xbf16>, vector<8x512xbf16>, vector<16x512xf32> -> vector<16x512xf32>
    %c6_99 = arith.constant 6 : index
    %c0_100 = arith.constant 0 : index
    %167 = vector.load %arg3[%c6_99, %c0_100] : memref<9x512xf32, #tpu.memory_space<vmem>>, vector<1x512xf32>
    %168 = vector.broadcast %167 : vector<1x512xf32> to vector<16x512xf32>
    %169 = arith.mulf %166, %168 : vector<16x512xf32>
    %170 = arith.addf %161, %169 : vector<16x512xf32>
    %c496_i32_101 = arith.constant 496 : i32
    %171 = tpu.dynamic_rotate %110 by %c496_i32_101 dim 1 : vector<8x512xf32>, i32 -> vector<8x512xf32>
    %c7_102 = arith.constant 7 : index
    %c0_103 = arith.constant 0 : index
    %c0_104 = arith.constant 0 : index
    %172 = vector.load %arg5[%c7_102, %c0_103, %c0_104] : memref<9x16x8xbf16, #tpu.memory_space<vmem>>, vector<1x16x8xbf16>
    %173 = vector.shape_cast %172 : vector<1x16x8xbf16> to vector<16x8xbf16>
    %174 = arith.truncf %171 : vector<8x512xf32> to vector<8x512xbf16>
    %cst_105 = arith.constant dense<0.000000e+00> : vector<16x512xf32>
    %175 = tpu.matmul %173, %174, %cst_105 {dimension_numbers = #tpu.dot_dimension_numbers<[1], [0], [0], [1], [0, 0, 1, 1], [], []>} : vector<16x8xbf16>, vector<8x512xbf16>, vector<16x512xf32> -> vector<16x512xf32>
    %c7_106 = arith.constant 7 : index
    %c0_107 = arith.constant 0 : index
    %176 = vector.load %arg3[%c7_106, %c0_107] : memref<9x512xf32, #tpu.memory_space<vmem>>, vector<1x512xf32>
    %177 = vector.broadcast %176 : vector<1x512xf32> to vector<16x512xf32>
    %178 = arith.mulf %175, %177 : vector<16x512xf32>
    %179 = arith.addf %170, %178 : vector<16x512xf32>
    %c495_i32_108 = arith.constant 495 : i32
    %180 = tpu.dynamic_rotate %110 by %c495_i32_108 dim 1 : vector<8x512xf32>, i32 -> vector<8x512xf32>
    %c8_109 = arith.constant 8 : index
    %c0_110 = arith.constant 0 : index
    %c0_111 = arith.constant 0 : index
    %181 = vector.load %arg5[%c8_109, %c0_110, %c0_111] : memref<9x16x8xbf16, #tpu.memory_space<vmem>>, vector<1x16x8xbf16>
    %182 = vector.shape_cast %181 : vector<1x16x8xbf16> to vector<16x8xbf16>
    %183 = arith.truncf %180 : vector<8x512xf32> to vector<8x512xbf16>
    %cst_112 = arith.constant dense<0.000000e+00> : vector<16x512xf32>
    %184 = tpu.matmul %182, %183, %cst_112 {dimension_numbers = #tpu.dot_dimension_numbers<[1], [0], [0], [1], [0, 0, 1, 1], [], []>} : vector<16x8xbf16>, vector<8x512xbf16>, vector<16x512xf32> -> vector<16x512xf32>
    %c8_113 = arith.constant 8 : index
    %c0_114 = arith.constant 0 : index
    %185 = vector.load %arg3[%c8_113, %c0_114] : memref<9x512xf32, #tpu.memory_space<vmem>>, vector<1x512xf32>
    %186 = vector.broadcast %185 : vector<1x512xf32> to vector<16x512xf32>
    %187 = arith.mulf %184, %186 : vector<16x512xf32>
    %188 = arith.addf %179, %187 : vector<16x512xf32>
    %c0_115 = arith.constant 0 : index
    %c0_116 = arith.constant 0 : index
    %189 = vector.load %arg6[%c0_115, %c0_116] : memref<512x128xf32, #tpu.memory_space<vmem>>, vector<512x128xf32>
    %cst_117 = arith.constant dense<0.000000e+00> : vector<16x128xf32>
    %190 = tpu.matmul %188, %189, %cst_117 {dimension_numbers = #tpu.dot_dimension_numbers<[1], [0], [0], [1], [0, 0, 1, 1], [], []>} : vector<16x512xf32>, vector<512x128xf32>, vector<16x128xf32> -> vector<16x128xf32>
    %c0_118 = arith.constant 0 : index
    %c0_119 = arith.constant 0 : index
    %191 = vector.load %arg7[%c0_118, %c0_119] : memref<16x2xf32, #tpu.memory_space<vmem>>, vector<16x2xf32>
    %cst_120 = arith.constant dense<0.000000e+00> : vector<16xf32>
    %192 = vector.multi_reduction <add>, %190, %cst_120 [1] : vector<16x128xf32> to vector<16xf32>
    %193 = vector.shape_cast %192 : vector<16xf32> to vector<16x1xf32>
    %cst_121 = arith.constant 1.280000e+02 : f32
    %194 = vector.broadcast %cst_121 : f32 to vector<16x1xf32>
    %195 = arith.divf %193, %194 : vector<16x1xf32>
    %196 = vector.broadcast %195 : vector<16x1xf32> to vector<16x128xf32>
    %197 = arith.subf %190, %196 : vector<16x128xf32>
    %198 = vector.broadcast %195 : vector<16x1xf32> to vector<16x128xf32>
    %199 = arith.subf %190, %198 : vector<16x128xf32>
    %200 = arith.mulf %197, %199 : vector<16x128xf32>
    %cst_122 = arith.constant dense<0.000000e+00> : vector<16xf32>
    %201 = vector.multi_reduction <add>, %200, %cst_122 [1] : vector<16x128xf32> to vector<16xf32>
    %202 = vector.shape_cast %201 : vector<16xf32> to vector<16x1xf32>
    %cst_123 = arith.constant 1.280000e+02 : f32
    %203 = vector.broadcast %cst_123 : f32 to vector<16x1xf32>
    %204 = arith.divf %202, %203 : vector<16x1xf32>
    %205 = vector.broadcast %195 : vector<16x1xf32> to vector<16x128xf32>
    %206 = arith.subf %190, %205 : vector<16x128xf32>
    %cst_124 = arith.constant 9.99999974E-6 : f32
    %207 = vector.broadcast %cst_124 : f32 to vector<16x1xf32>
    %208 = arith.addf %204, %207 : vector<16x1xf32>
    %209 = math.rsqrt %208 : vector<16x1xf32>
    %210 = vector.broadcast %209 : vector<16x1xf32> to vector<16x128xf32>
    %211 = arith.mulf %206, %210 : vector<16x128xf32>
    %212 = vector.extract_strided_slice %191 {offsets = [0, 0], sizes = [16, 1], strides = [1, 1]} : vector<16x2xf32> to vector<16x1xf32>
    %213 = vector.broadcast %212 : vector<16x1xf32> to vector<16x128xf32>
    %214 = arith.mulf %211, %213 : vector<16x128xf32>
    %215 = vector.extract_strided_slice %191 {offsets = [0, 1], sizes = [16, 1], strides = [1, 1]} : vector<16x2xf32> to vector<16x1xf32>
    %216 = vector.broadcast %215 : vector<16x1xf32> to vector<16x128xf32>
    %217 = arith.addf %214, %216 : vector<16x128xf32>
    %cst_125 = arith.constant 0.000000e+00 : f32
    %218 = vector.broadcast %cst_125 : f32 to vector<16x128xf32>
    %219 = arith.cmpf ogt, %217, %218 : vector<16x128xf32>
    %cst_126 = arith.constant 1.000000e-01 : f32
    %220 = vector.broadcast %cst_126 : f32 to vector<16x128xf32>
    %221 = arith.mulf %220, %217 : vector<16x128xf32>
    %222 = arith.select %219, %217, %221 : vector<16x128xi1>, vector<16x128xf32>
    %cst_127 = arith.constant 0.000000e+00 : f32
    %223 = vector.broadcast %cst_127 : f32 to vector<16x128xf32>
    %c9_i32 = arith.constant 9 : i32
    %224 = tpu.dynamic_rotate %222 by %c9_i32 dim 1 : vector<16x128xf32>, i32 -> vector<16x128xf32>
    %c0_128 = arith.constant 0 : index
    %c0_129 = arith.constant 0 : index
    %c0_130 = arith.constant 0 : index
    %225 = vector.load %arg8[%c0_128, %c0_129, %c0_130] : memref<9x16x16xbf16, #tpu.memory_space<vmem>>, vector<1x16x16xbf16>
    %226 = vector.shape_cast %225 : vector<1x16x16xbf16> to vector<16x16xbf16>
    %227 = arith.truncf %224 : vector<16x128xf32> to vector<16x128xbf16>
    %cst_131 = arith.constant dense<0.000000e+00> : vector<16x128xf32>
    %228 = tpu.matmul %226, %227, %cst_131 {dimension_numbers = #tpu.dot_dimension_numbers<[1], [0], [0], [1], [0, 0, 1, 1], [], []>} : vector<16x16xbf16>, vector<16x128xbf16>, vector<16x128xf32> -> vector<16x128xf32>
    %c0_132 = arith.constant 0 : index
    %c0_133 = arith.constant 0 : index
    %229 = vector.load %arg9[%c0_132, %c0_133] : memref<9x128xf32, #tpu.memory_space<vmem>>, vector<1x128xf32>
    %230 = vector.broadcast %229 : vector<1x128xf32> to vector<16x128xf32>
    %231 = arith.mulf %228, %230 : vector<16x128xf32>
    %232 = arith.addf %223, %231 : vector<16x128xf32>
    %c8_i32 = arith.constant 8 : i32
    %233 = tpu.dynamic_rotate %222 by %c8_i32 dim 1 : vector<16x128xf32>, i32 -> vector<16x128xf32>
    %c1_134 = arith.constant 1 : index
    %c0_135 = arith.constant 0 : index
    %c0_136 = arith.constant 0 : index
    %234 = vector.load %arg8[%c1_134, %c0_135, %c0_136] : memref<9x16x16xbf16, #tpu.memory_space<vmem>>, vector<1x16x16xbf16>
    %235 = vector.shape_cast %234 : vector<1x16x16xbf16> to vector<16x16xbf16>
    %236 = arith.truncf %233 : vector<16x128xf32> to vector<16x128xbf16>
    %cst_137 = arith.constant dense<0.000000e+00> : vector<16x128xf32>
    %237 = tpu.matmul %235, %236, %cst_137 {dimension_numbers = #tpu.dot_dimension_numbers<[1], [0], [0], [1], [0, 0, 1, 1], [], []>} : vector<16x16xbf16>, vector<16x128xbf16>, vector<16x128xf32> -> vector<16x128xf32>
    %c1_138 = arith.constant 1 : index
    %c0_139 = arith.constant 0 : index
    %238 = vector.load %arg9[%c1_138, %c0_139] : memref<9x128xf32, #tpu.memory_space<vmem>>, vector<1x128xf32>
    %239 = vector.broadcast %238 : vector<1x128xf32> to vector<16x128xf32>
    %240 = arith.mulf %237, %239 : vector<16x128xf32>
    %241 = arith.addf %232, %240 : vector<16x128xf32>
    %c7_i32 = arith.constant 7 : i32
    %242 = tpu.dynamic_rotate %222 by %c7_i32 dim 1 : vector<16x128xf32>, i32 -> vector<16x128xf32>
    %c2_140 = arith.constant 2 : index
    %c0_141 = arith.constant 0 : index
    %c0_142 = arith.constant 0 : index
    %243 = vector.load %arg8[%c2_140, %c0_141, %c0_142] : memref<9x16x16xbf16, #tpu.memory_space<vmem>>, vector<1x16x16xbf16>
    %244 = vector.shape_cast %243 : vector<1x16x16xbf16> to vector<16x16xbf16>
    %245 = arith.truncf %242 : vector<16x128xf32> to vector<16x128xbf16>
    %cst_143 = arith.constant dense<0.000000e+00> : vector<16x128xf32>
    %246 = tpu.matmul %244, %245, %cst_143 {dimension_numbers = #tpu.dot_dimension_numbers<[1], [0], [0], [1], [0, 0, 1, 1], [], []>} : vector<16x16xbf16>, vector<16x128xbf16>, vector<16x128xf32> -> vector<16x128xf32>
    %c2_144 = arith.constant 2 : index
    %c0_145 = arith.constant 0 : index
    %247 = vector.load %arg9[%c2_144, %c0_145] : memref<9x128xf32, #tpu.memory_space<vmem>>, vector<1x128xf32>
    %248 = vector.broadcast %247 : vector<1x128xf32> to vector<16x128xf32>
    %249 = arith.mulf %246, %248 : vector<16x128xf32>
    %250 = arith.addf %241, %249 : vector<16x128xf32>
    %c1_i32_146 = arith.constant 1 : i32
    %251 = tpu.dynamic_rotate %222 by %c1_i32_146 dim 1 : vector<16x128xf32>, i32 -> vector<16x128xf32>
    %c3_147 = arith.constant 3 : index
    %c0_148 = arith.constant 0 : index
    %c0_149 = arith.constant 0 : index
    %252 = vector.load %arg8[%c3_147, %c0_148, %c0_149] : memref<9x16x16xbf16, #tpu.memory_space<vmem>>, vector<1x16x16xbf16>
    %253 = vector.shape_cast %252 : vector<1x16x16xbf16> to vector<16x16xbf16>
    %254 = arith.truncf %251 : vector<16x128xf32> to vector<16x128xbf16>
    %cst_150 = arith.constant dense<0.000000e+00> : vector<16x128xf32>
    %255 = tpu.matmul %253, %254, %cst_150 {dimension_numbers = #tpu.dot_dimension_numbers<[1], [0], [0], [1], [0, 0, 1, 1], [], []>} : vector<16x16xbf16>, vector<16x128xbf16>, vector<16x128xf32> -> vector<16x128xf32>
    %c3_151 = arith.constant 3 : index
    %c0_152 = arith.constant 0 : index
    %256 = vector.load %arg9[%c3_151, %c0_152] : memref<9x128xf32, #tpu.memory_space<vmem>>, vector<1x128xf32>
    %257 = vector.broadcast %256 : vector<1x128xf32> to vector<16x128xf32>
    %258 = arith.mulf %255, %257 : vector<16x128xf32>
    %259 = arith.addf %250, %258 : vector<16x128xf32>
    %c4_153 = arith.constant 4 : index
    %c0_154 = arith.constant 0 : index
    %c0_155 = arith.constant 0 : index
    %260 = vector.load %arg8[%c4_153, %c0_154, %c0_155] : memref<9x16x16xbf16, #tpu.memory_space<vmem>>, vector<1x16x16xbf16>
    %261 = vector.shape_cast %260 : vector<1x16x16xbf16> to vector<16x16xbf16>
    %262 = arith.truncf %222 : vector<16x128xf32> to vector<16x128xbf16>
    %cst_156 = arith.constant dense<0.000000e+00> : vector<16x128xf32>
    %263 = tpu.matmul %261, %262, %cst_156 {dimension_numbers = #tpu.dot_dimension_numbers<[1], [0], [0], [1], [0, 0, 1, 1], [], []>} : vector<16x16xbf16>, vector<16x128xbf16>, vector<16x128xf32> -> vector<16x128xf32>
    %264 = arith.addf %259, %263 : vector<16x128xf32>
    %c127_i32 = arith.constant 127 : i32
    %265 = tpu.dynamic_rotate %222 by %c127_i32 dim 1 : vector<16x128xf32>, i32 -> vector<16x128xf32>
    %c5_157 = arith.constant 5 : index
    %c0_158 = arith.constant 0 : index
    %c0_159 = arith.constant 0 : index
    %266 = vector.load %arg8[%c5_157, %c0_158, %c0_159] : memref<9x16x16xbf16, #tpu.memory_space<vmem>>, vector<1x16x16xbf16>
    %267 = vector.shape_cast %266 : vector<1x16x16xbf16> to vector<16x16xbf16>
    %268 = arith.truncf %265 : vector<16x128xf32> to vector<16x128xbf16>
    %cst_160 = arith.constant dense<0.000000e+00> : vector<16x128xf32>
    %269 = tpu.matmul %267, %268, %cst_160 {dimension_numbers = #tpu.dot_dimension_numbers<[1], [0], [0], [1], [0, 0, 1, 1], [], []>} : vector<16x16xbf16>, vector<16x128xbf16>, vector<16x128xf32> -> vector<16x128xf32>
    %c5_161 = arith.constant 5 : index
    %c0_162 = arith.constant 0 : index
    %270 = vector.load %arg9[%c5_161, %c0_162] : memref<9x128xf32, #tpu.memory_space<vmem>>, vector<1x128xf32>
    %271 = vector.broadcast %270 : vector<1x128xf32> to vector<16x128xf32>
    %272 = arith.mulf %269, %271 : vector<16x128xf32>
    %273 = arith.addf %264, %272 : vector<16x128xf32>
    %c121_i32 = arith.constant 121 : i32
    %274 = tpu.dynamic_rotate %222 by %c121_i32 dim 1 : vector<16x128xf32>, i32 -> vector<16x128xf32>
    %c6_163 = arith.constant 6 : index
    %c0_164 = arith.constant 0 : index
    %c0_165 = arith.constant 0 : index
    %275 = vector.load %arg8[%c6_163, %c0_164, %c0_165] : memref<9x16x16xbf16, #tpu.memory_space<vmem>>, vector<1x16x16xbf16>
    %276 = vector.shape_cast %275 : vector<1x16x16xbf16> to vector<16x16xbf16>
    %277 = arith.truncf %274 : vector<16x128xf32> to vector<16x128xbf16>
    %cst_166 = arith.constant dense<0.000000e+00> : vector<16x128xf32>
    %278 = tpu.matmul %276, %277, %cst_166 {dimension_numbers = #tpu.dot_dimension_numbers<[1], [0], [0], [1], [0, 0, 1, 1], [], []>} : vector<16x16xbf16>, vector<16x128xbf16>, vector<16x128xf32> -> vector<16x128xf32>
    %c6_167 = arith.constant 6 : index
    %c0_168 = arith.constant 0 : index
    %279 = vector.load %arg9[%c6_167, %c0_168] : memref<9x128xf32, #tpu.memory_space<vmem>>, vector<1x128xf32>
    %280 = vector.broadcast %279 : vector<1x128xf32> to vector<16x128xf32>
    %281 = arith.mulf %278, %280 : vector<16x128xf32>
    %282 = arith.addf %273, %281 : vector<16x128xf32>
    %c120_i32 = arith.constant 120 : i32
    %283 = tpu.dynamic_rotate %222 by %c120_i32 dim 1 : vector<16x128xf32>, i32 -> vector<16x128xf32>
    %c7_169 = arith.constant 7 : index
    %c0_170 = arith.constant 0 : index
    %c0_171 = arith.constant 0 : index
    %284 = vector.load %arg8[%c7_169, %c0_170, %c0_171] : memref<9x16x16xbf16, #tpu.memory_space<vmem>>, vector<1x16x16xbf16>
    %285 = vector.shape_cast %284 : vector<1x16x16xbf16> to vector<16x16xbf16>
    %286 = arith.truncf %283 : vector<16x128xf32> to vector<16x128xbf16>
    %cst_172 = arith.constant dense<0.000000e+00> : vector<16x128xf32>
    %287 = tpu.matmul %285, %286, %cst_172 {dimension_numbers = #tpu.dot_dimension_numbers<[1], [0], [0], [1], [0, 0, 1, 1], [], []>} : vector<16x16xbf16>, vector<16x128xbf16>, vector<16x128xf32> -> vector<16x128xf32>
    %c7_173 = arith.constant 7 : index
    %c0_174 = arith.constant 0 : index
    %288 = vector.load %arg9[%c7_173, %c0_174] : memref<9x128xf32, #tpu.memory_space<vmem>>, vector<1x128xf32>
    %289 = vector.broadcast %288 : vector<1x128xf32> to vector<16x128xf32>
    %290 = arith.mulf %287, %289 : vector<16x128xf32>
    %291 = arith.addf %282, %290 : vector<16x128xf32>
    %c119_i32 = arith.constant 119 : i32
    %292 = tpu.dynamic_rotate %222 by %c119_i32 dim 1 : vector<16x128xf32>, i32 -> vector<16x128xf32>
    %c8_175 = arith.constant 8 : index
    %c0_176 = arith.constant 0 : index
    %c0_177 = arith.constant 0 : index
    %293 = vector.load %arg8[%c8_175, %c0_176, %c0_177] : memref<9x16x16xbf16, #tpu.memory_space<vmem>>, vector<1x16x16xbf16>
    %294 = vector.shape_cast %293 : vector<1x16x16xbf16> to vector<16x16xbf16>
    %295 = arith.truncf %292 : vector<16x128xf32> to vector<16x128xbf16>
    %cst_178 = arith.constant dense<0.000000e+00> : vector<16x128xf32>
    %296 = tpu.matmul %294, %295, %cst_178 {dimension_numbers = #tpu.dot_dimension_numbers<[1], [0], [0], [1], [0, 0, 1, 1], [], []>} : vector<16x16xbf16>, vector<16x128xbf16>, vector<16x128xf32> -> vector<16x128xf32>
    %c8_179 = arith.constant 8 : index
    %c0_180 = arith.constant 0 : index
    %297 = vector.load %arg9[%c8_179, %c0_180] : memref<9x128xf32, #tpu.memory_space<vmem>>, vector<1x128xf32>
    %298 = vector.broadcast %297 : vector<1x128xf32> to vector<16x128xf32>
    %299 = arith.mulf %296, %298 : vector<16x128xf32>
    %300 = arith.addf %291, %299 : vector<16x128xf32>
    %c0_181 = arith.constant 0 : index
    %c0_182 = arith.constant 0 : index
    %301 = vector.load %arg10[%c0_181, %c0_182] : memref<16x2xf32, #tpu.memory_space<vmem>>, vector<16x2xf32>
    %cst_183 = arith.constant dense<0.000000e+00> : vector<16xf32>
    %302 = vector.multi_reduction <add>, %300, %cst_183 [1] : vector<16x128xf32> to vector<16xf32>
    %303 = vector.shape_cast %302 : vector<16xf32> to vector<16x1xf32>
    %cst_184 = arith.constant 1.280000e+02 : f32
    %304 = vector.broadcast %cst_184 : f32 to vector<16x1xf32>
    %305 = arith.divf %303, %304 : vector<16x1xf32>
    %306 = vector.broadcast %305 : vector<16x1xf32> to vector<16x128xf32>
    %307 = arith.subf %300, %306 : vector<16x128xf32>
    %308 = vector.broadcast %305 : vector<16x1xf32> to vector<16x128xf32>
    %309 = arith.subf %300, %308 : vector<16x128xf32>
    %310 = arith.mulf %307, %309 : vector<16x128xf32>
    %cst_185 = arith.constant dense<0.000000e+00> : vector<16xf32>
    %311 = vector.multi_reduction <add>, %310, %cst_185 [1] : vector<16x128xf32> to vector<16xf32>
    %312 = vector.shape_cast %311 : vector<16xf32> to vector<16x1xf32>
    %cst_186 = arith.constant 1.280000e+02 : f32
    %313 = vector.broadcast %cst_186 : f32 to vector<16x1xf32>
    %314 = arith.divf %312, %313 : vector<16x1xf32>
    %315 = vector.broadcast %305 : vector<16x1xf32> to vector<16x128xf32>
    %316 = arith.subf %300, %315 : vector<16x128xf32>
    %cst_187 = arith.constant 9.99999974E-6 : f32
    %317 = vector.broadcast %cst_187 : f32 to vector<16x1xf32>
    %318 = arith.addf %314, %317 : vector<16x1xf32>
    %319 = math.rsqrt %318 : vector<16x1xf32>
    %320 = vector.broadcast %319 : vector<16x1xf32> to vector<16x128xf32>
    %321 = arith.mulf %316, %320 : vector<16x128xf32>
    %322 = vector.extract_strided_slice %301 {offsets = [0, 0], sizes = [16, 1], strides = [1, 1]} : vector<16x2xf32> to vector<16x1xf32>
    %323 = vector.broadcast %322 : vector<16x1xf32> to vector<16x128xf32>
    %324 = arith.mulf %321, %323 : vector<16x128xf32>
    %325 = vector.extract_strided_slice %301 {offsets = [0, 1], sizes = [16, 1], strides = [1, 1]} : vector<16x2xf32> to vector<16x1xf32>
    %326 = vector.broadcast %325 : vector<16x1xf32> to vector<16x128xf32>
    %327 = arith.addf %324, %326 : vector<16x128xf32>
    %cst_188 = arith.constant 0.000000e+00 : f32
    %328 = vector.broadcast %cst_188 : f32 to vector<16x128xf32>
    %329 = arith.cmpf ogt, %327, %328 : vector<16x128xf32>
    %cst_189 = arith.constant 1.000000e-01 : f32
    %330 = vector.broadcast %cst_189 : f32 to vector<16x128xf32>
    %331 = arith.mulf %330, %327 : vector<16x128xf32>
    %332 = arith.select %329, %327, %331 : vector<16x128xi1>, vector<16x128xf32>
    %333 = arith.addf %332, %222 : vector<16x128xf32>
    %cst_190 = arith.constant 0.000000e+00 : f32
    %334 = vector.broadcast %cst_190 : f32 to vector<21x128xf32>
    %c0_191 = arith.constant 0 : index
    %c0_192 = arith.constant 0 : index
    %335 = vector.load %arg11[%c0_191, %c0_192] : memref<21x16xbf16, #tpu.memory_space<vmem>>, vector<21x16xbf16>
    %336 = arith.truncf %333 : vector<16x128xf32> to vector<16x128xbf16>
    %cst_193 = arith.constant dense<0.000000e+00> : vector<21x128xf32>
    %337 = tpu.matmul %335, %336, %cst_193 {dimension_numbers = #tpu.dot_dimension_numbers<[1], [0], [0], [1], [0, 0, 1, 1], [], []>} : vector<21x16xbf16>, vector<16x128xbf16>, vector<21x128xf32> -> vector<21x128xf32>
    %338 = arith.addf %334, %337 : vector<21x128xf32>
    %c0_194 = arith.constant 0 : index
    %c0_195 = arith.constant 0 : index
    %339 = vector.load %arg12[%c0_194, %c0_195] : memref<21x1xf32, #tpu.memory_space<vmem>>, vector<21x1xf32>
    %340 = vector.broadcast %339 : vector<21x1xf32> to vector<21x128xf32>
    %341 = arith.addf %338, %340 : vector<21x128xf32>
    %c0_196 = arith.constant 0 : index
    %c0_197 = arith.constant 0 : index
    %342 = vector.load %arg13[%c0_196, %c0_197] : memref<21x8xf32, #tpu.memory_space<vmem>>, vector<21x8xf32>
    %343 = vector.extract_strided_slice %342 {offsets = [0, 0], sizes = [21, 1], strides = [1, 1]} : vector<21x8xf32> to vector<21x1xf32>
    %c0_198 = arith.constant 0 : index
    %c0_199 = arith.constant 0 : index
    %344 = vector.load %arg14[%c0_198, %c0_199] : memref<2x128xf32, #tpu.memory_space<vmem>>, vector<1x128xf32>
    %345 = vector.broadcast %343 : vector<21x1xf32> to vector<21x128xf32>
    %346 = vector.broadcast %344 : vector<1x128xf32> to vector<21x128xf32>
    %347 = arith.mulf %345, %346 : vector<21x128xf32>
    %348 = vector.extract_strided_slice %342 {offsets = [0, 1], sizes = [21, 1], strides = [1, 1]} : vector<21x8xf32> to vector<21x1xf32>
    %c1_200 = arith.constant 1 : index
    %c0_201 = arith.constant 0 : index
    %349 = vector.load %arg14[%c1_200, %c0_201] : memref<2x128xf32, #tpu.memory_space<vmem>>, vector<1x128xf32>
    %350 = vector.broadcast %348 : vector<21x1xf32> to vector<21x128xf32>
    %351 = vector.broadcast %349 : vector<1x128xf32> to vector<21x128xf32>
    %352 = arith.mulf %350, %351 : vector<21x128xf32>
    %353 = arith.addf %347, %352 : vector<21x128xf32>
    %354 = vector.extract_strided_slice %342 {offsets = [0, 2], sizes = [21, 1], strides = [1, 1]} : vector<21x8xf32> to vector<21x1xf32>
    %355 = vector.extract_strided_slice %342 {offsets = [0, 3], sizes = [21, 1], strides = [1, 1]} : vector<21x8xf32> to vector<21x1xf32>
    %356 = vector.extract_strided_slice %342 {offsets = [0, 4], sizes = [21, 1], strides = [1, 1]} : vector<21x8xf32> to vector<21x1xf32>
    %357 = arith.negf %341 : vector<21x128xf32>
    %358 = math.exp %357 : vector<21x128xf32>
    %cst_202 = arith.constant 1.000000e+00 : f32
    %359 = vector.broadcast %cst_202 : f32 to vector<21x128xf32>
    %360 = arith.addf %359, %358 : vector<21x128xf32>
    %361 = arith.divf %359, %360 : vector<21x128xf32>
    %362 = arith.addf %361, %353 : vector<21x128xf32>
    %cst_203 = arith.constant 2.000000e+00 : f32
    %363 = vector.broadcast %cst_203 : f32 to vector<21x128xf32>
    %364 = arith.mulf %362, %363 : vector<21x128xf32>
    %cst_204 = arith.constant 0.000000e+00 : f32
    %365 = vector.broadcast %cst_204 : f32 to vector<21x1xf32>
    %366 = arith.cmpf ogt, %355, %365 : vector<21x1xf32>
    %cst_205 = arith.constant 0.000000e+00 : f32
    %367 = vector.shape_cast %366 : vector<21x1xi1> to vector<21x1xi1>
    %368 = vector.broadcast %367 : vector<21x1xi1> to vector<21x128xi1>
    %369 = vector.broadcast %cst_205 : f32 to vector<21x128xf32>
    %370 = arith.select %368, %341, %369 : vector<21x128xi1>, vector<21x128xf32>
    %371 = math.exp %370 : vector<21x128xf32>
    %372 = vector.broadcast %356 : vector<21x1xf32> to vector<21x128xf32>
    %373 = arith.mulf %371, %372 : vector<21x128xf32>
    %cst_206 = arith.constant 0.000000e+00 : f32
    %374 = vector.broadcast %cst_206 : f32 to vector<21x1xf32>
    %375 = arith.cmpf ogt, %354, %374 : vector<21x1xf32>
    %cst_207 = arith.constant 0.000000e+00 : f32
    %376 = vector.broadcast %cst_207 : f32 to vector<21x1xf32>
    %377 = arith.cmpf ogt, %355, %376 : vector<21x1xf32>
    %378 = vector.shape_cast %377 : vector<21x1xi1> to vector<21x1xi1>
    %379 = vector.broadcast %378 : vector<21x1xi1> to vector<21x128xi1>
    %380 = arith.select %379, %373, %361 : vector<21x128xi1>, vector<21x128xf32>
    %381 = vector.shape_cast %375 : vector<21x1xi1> to vector<21x1xi1>
    %382 = vector.broadcast %381 : vector<21x1xi1> to vector<21x128xi1>
    %383 = arith.select %382, %364, %380 : vector<21x128xi1>, vector<21x128xf32>
    %c0_208 = arith.constant 0 : index
    %c0_209 = arith.constant 0 : index
    %384 = vector.load %arg23[%c0_208, %c0_209] : memref<21x128xf32, #tpu.memory_space<vmem>>, vector<21x128xf32>
    tpu.vector_store %arg23[%c0_208, %c0_209], %383 {strides = array<i32>} : memref<21x128xf32, #tpu.memory_space<vmem>>, vector<21x128xf32>,
    %cst_210 = arith.constant 0.000000e+00 : f32
    %385 = vector.broadcast %cst_210 : f32 to vector<8x128xf32>
    %c0_211 = arith.constant 0 : index
    %c0_212 = arith.constant 0 : index
    %386 = vector.load %arg15[%c0_211, %c0_212] : memref<8x16xbf16, #tpu.memory_space<vmem>>, vector<8x16xbf16>
    %387 = arith.truncf %333 : vector<16x128xf32> to vector<16x128xbf16>
    %cst_213 = arith.constant dense<0.000000e+00> : vector<8x128xf32>
    %388 = tpu.matmul %386, %387, %cst_213 {dimension_numbers = #tpu.dot_dimension_numbers<[1], [0], [0], [1], [0, 0, 1, 1], [], []>} : vector<8x16xbf16>, vector<16x128xbf16>, vector<8x128xf32> -> vector<8x128xf32>
    %389 = arith.addf %385, %388 : vector<8x128xf32>
    %c0_214 = arith.constant 0 : index
    %c0_215 = arith.constant 0 : index
    %390 = vector.load %arg16[%c0_214, %c0_215] : memref<8x2xf32, #tpu.memory_space<vmem>>, vector<8x2xf32>
    %cst_216 = arith.constant dense<0.000000e+00> : vector<8xf32>
    %391 = vector.multi_reduction <add>, %389, %cst_216 [1] : vector<8x128xf32> to vector<8xf32>
    %392 = vector.shape_cast %391 : vector<8xf32> to vector<8x1xf32>
    %cst_217 = arith.constant 1.280000e+02 : f32
    %393 = vector.broadcast %cst_217 : f32 to vector<8x1xf32>
    %394 = arith.divf %392, %393 : vector<8x1xf32>
    %395 = vector.broadcast %394 : vector<8x1xf32> to vector<8x128xf32>
    %396 = arith.subf %389, %395 : vector<8x128xf32>
    %397 = vector.broadcast %394 : vector<8x1xf32> to vector<8x128xf32>
    %398 = arith.subf %389, %397 : vector<8x128xf32>
    %399 = arith.mulf %396, %398 : vector<8x128xf32>
    %cst_218 = arith.constant dense<0.000000e+00> : vector<8xf32>
    %400 = vector.multi_reduction <add>, %399, %cst_218 [1] : vector<8x128xf32> to vector<8xf32>
    %401 = vector.shape_cast %400 : vector<8xf32> to vector<8x1xf32>
    %cst_219 = arith.constant 1.280000e+02 : f32
    %402 = vector.broadcast %cst_219 : f32 to vector<8x1xf32>
    %403 = arith.divf %401, %402 : vector<8x1xf32>
    %404 = vector.broadcast %394 : vector<8x1xf32> to vector<8x128xf32>
    %405 = arith.subf %389, %404 : vector<8x128xf32>
    %cst_220 = arith.constant 9.99999974E-6 : f32
    %406 = vector.broadcast %cst_220 : f32 to vector<8x1xf32>
    %407 = arith.addf %403, %406 : vector<8x1xf32>
    %408 = math.rsqrt %407 : vector<8x1xf32>
    %409 = vector.broadcast %408 : vector<8x1xf32> to vector<8x128xf32>
    %410 = arith.mulf %405, %409 : vector<8x128xf32>
    %411 = vector.extract_strided_slice %390 {offsets = [0, 0], sizes = [8, 1], strides = [1, 1]} : vector<8x2xf32> to vector<8x1xf32>
    %412 = vector.broadcast %411 : vector<8x1xf32> to vector<8x128xf32>
    %413 = arith.mulf %410, %412 : vector<8x128xf32>
    %414 = vector.extract_strided_slice %390 {offsets = [0, 1], sizes = [8, 1], strides = [1, 1]} : vector<8x2xf32> to vector<8x1xf32>
    %415 = vector.broadcast %414 : vector<8x1xf32> to vector<8x128xf32>
    %416 = arith.addf %413, %415 : vector<8x128xf32>
    %cst_221 = arith.constant 0.000000e+00 : f32
    %417 = vector.broadcast %cst_221 : f32 to vector<8x128xf32>
    %418 = arith.cmpf ogt, %416, %417 : vector<8x128xf32>
    %cst_222 = arith.constant 1.000000e-01 : f32
    %419 = vector.broadcast %cst_222 : f32 to vector<8x128xf32>
    %420 = arith.mulf %419, %416 : vector<8x128xf32>
    %421 = arith.select %418, %416, %420 : vector<8x128xi1>, vector<8x128xf32>
    %c0_223 = arith.constant 0 : index
    %c0_224 = arith.constant 0 : index
    %422 = vector.load %arg17[%c0_223, %c0_224] : memref<128x512xf32, #tpu.memory_space<vmem>>, vector<128x512xf32>
    %cst_225 = arith.constant dense<0.000000e+00> : vector<8x512xf32>
    %423 = tpu.matmul %421, %422, %cst_225 {dimension_numbers = #tpu.dot_dimension_numbers<[1], [0], [0], [1], [0, 0, 1, 1], [], []>} : vector<8x128xf32>, vector<128x512xf32>, vector<8x512xf32> -> vector<8x512xf32>
    %cst_226 = arith.constant 0.000000e+00 : f32
    %424 = vector.broadcast %cst_226 : f32 to vector<21x512xf32>
    %c0_227 = arith.constant 0 : index
    %c0_228 = arith.constant 0 : index
    %425 = vector.load %arg18[%c0_227, %c0_228] : memref<21x8xbf16, #tpu.memory_space<vmem>>, vector<21x8xbf16>
    %426 = arith.truncf %423 : vector<8x512xf32> to vector<8x512xbf16>
    %cst_229 = arith.constant dense<0.000000e+00> : vector<21x512xf32>
    %427 = tpu.matmul %425, %426, %cst_229 {dimension_numbers = #tpu.dot_dimension_numbers<[1], [0], [0], [1], [0, 0, 1, 1], [], []>} : vector<21x8xbf16>, vector<8x512xbf16>, vector<21x512xf32> -> vector<21x512xf32>
    %428 = arith.addf %424, %427 : vector<21x512xf32>
    %c0_230 = arith.constant 0 : index
    %c0_231 = arith.constant 0 : index
    %429 = vector.load %arg19[%c0_230, %c0_231] : memref<21x8xbf16, #tpu.memory_space<vmem>>, vector<21x8xbf16>
    %430 = arith.truncf %110 : vector<8x512xf32> to vector<8x512xbf16>
    %cst_232 = arith.constant dense<0.000000e+00> : vector<21x512xf32>
    %431 = tpu.matmul %429, %430, %cst_232 {dimension_numbers = #tpu.dot_dimension_numbers<[1], [0], [0], [1], [0, 0, 1, 1], [], []>} : vector<21x8xbf16>, vector<8x512xbf16>, vector<21x512xf32> -> vector<21x512xf32>
    %432 = arith.addf %428, %431 : vector<21x512xf32>
    %c0_233 = arith.constant 0 : index
    %c0_234 = arith.constant 0 : index
    %433 = vector.load %arg20[%c0_233, %c0_234] : memref<21x1xf32, #tpu.memory_space<vmem>>, vector<21x1xf32>
    %434 = vector.broadcast %433 : vector<21x1xf32> to vector<21x512xf32>
    %435 = arith.addf %432, %434 : vector<21x512xf32>
    %c0_235 = arith.constant 0 : index
    %c0_236 = arith.constant 0 : index
    %436 = vector.load %arg21[%c0_235, %c0_236] : memref<21x8xf32, #tpu.memory_space<vmem>>, vector<21x8xf32>
    %437 = vector.extract_strided_slice %436 {offsets = [0, 0], sizes = [21, 1], strides = [1, 1]} : vector<21x8xf32> to vector<21x1xf32>
    %c0_237 = arith.constant 0 : index
    %c0_238 = arith.constant 0 : index
    %438 = vector.load %arg22[%c0_237, %c0_238] : memref<2x512xf32, #tpu.memory_space<vmem>>, vector<1x512xf32>
    %439 = vector.broadcast %437 : vector<21x1xf32> to vector<21x512xf32>
    %440 = vector.broadcast %438 : vector<1x512xf32> to vector<21x512xf32>
    %441 = arith.mulf %439, %440 : vector<21x512xf32>
    %442 = vector.extract_strided_slice %436 {offsets = [0, 1], sizes = [21, 1], strides = [1, 1]} : vector<21x8xf32> to vector<21x1xf32>
    %c1_239 = arith.constant 1 : index
    %c0_240 = arith.constant 0 : index
    %443 = vector.load %arg22[%c1_239, %c0_240] : memref<2x512xf32, #tpu.memory_space<vmem>>, vector<1x512xf32>
    %444 = vector.broadcast %442 : vector<21x1xf32> to vector<21x512xf32>
    %445 = vector.broadcast %443 : vector<1x512xf32> to vector<21x512xf32>
    %446 = arith.mulf %444, %445 : vector<21x512xf32>
    %447 = arith.addf %441, %446 : vector<21x512xf32>
    %448 = vector.extract_strided_slice %436 {offsets = [0, 2], sizes = [21, 1], strides = [1, 1]} : vector<21x8xf32> to vector<21x1xf32>
    %449 = vector.extract_strided_slice %436 {offsets = [0, 3], sizes = [21, 1], strides = [1, 1]} : vector<21x8xf32> to vector<21x1xf32>
    %450 = vector.extract_strided_slice %436 {offsets = [0, 4], sizes = [21, 1], strides = [1, 1]} : vector<21x8xf32> to vector<21x1xf32>
    %451 = arith.negf %435 : vector<21x512xf32>
    %452 = math.exp %451 : vector<21x512xf32>
    %cst_241 = arith.constant 1.000000e+00 : f32
    %453 = vector.broadcast %cst_241 : f32 to vector<21x512xf32>
    %454 = arith.addf %453, %452 : vector<21x512xf32>
    %455 = arith.divf %453, %454 : vector<21x512xf32>
    %456 = arith.addf %455, %447 : vector<21x512xf32>
    %cst_242 = arith.constant 1.000000e+00 : f32
    %457 = vector.broadcast %cst_242 : f32 to vector<21x512xf32>
    %458 = arith.mulf %456, %457 : vector<21x512xf32>
    %cst_243 = arith.constant 0.000000e+00 : f32
    %459 = vector.broadcast %cst_243 : f32 to vector<21x1xf32>
    %460 = arith.cmpf ogt, %449, %459 : vector<21x1xf32>
    %cst_244 = arith.constant 0.000000e+00 : f32
    %461 = vector.shape_cast %460 : vector<21x1xi1> to vector<21x1xi1>
    %462 = vector.broadcast %461 : vector<21x1xi1> to vector<21x512xi1>
    %463 = vector.broadcast %cst_244 : f32 to vector<21x512xf32>
    %464 = arith.select %462, %435, %463 : vector<21x512xi1>, vector<21x512xf32>
    %465 = math.exp %464 : vector<21x512xf32>
    %466 = vector.broadcast %450 : vector<21x1xf32> to vector<21x512xf32>
    %467 = arith.mulf %465, %466 : vector<21x512xf32>
    %cst_245 = arith.constant 0.000000e+00 : f32
    %468 = vector.broadcast %cst_245 : f32 to vector<21x1xf32>
    %469 = arith.cmpf ogt, %448, %468 : vector<21x1xf32>
    %cst_246 = arith.constant 0.000000e+00 : f32
    %470 = vector.broadcast %cst_246 : f32 to vector<21x1xf32>
    %471 = arith.cmpf ogt, %449, %470 : vector<21x1xf32>
    %472 = vector.shape_cast %471 : vector<21x1xi1> to vector<21x1xi1>
    %473 = vector.broadcast %472 : vector<21x1xi1> to vector<21x512xi1>
    %474 = arith.select %473, %467, %455 : vector<21x512xi1>, vector<21x512xf32>
    %475 = vector.shape_cast %469 : vector<21x1xi1> to vector<21x1xi1>
    %476 = vector.broadcast %475 : vector<21x1xi1> to vector<21x512xi1>
    %477 = arith.select %476, %458, %474 : vector<21x512xi1>, vector<21x512xf32>
    %c0_247 = arith.constant 0 : index
    %c0_248 = arith.constant 0 : index
    %478 = vector.load %arg24[%c0_247, %c0_248] : memref<21x512xf32, #tpu.memory_space<vmem>>, vector<21x512xf32>
    tpu.vector_store %arg24[%c0_247, %c0_248], %477 {strides = array<i32>} : memref<21x512xf32, #tpu.memory_space<vmem>>, vector<21x512xf32>,
    return
  }
  func.func @transform_0(%arg0: i32) -> (i32, i32) {
    %c0_i32 = arith.constant 0 : i32
    %c0_i32_0 = arith.constant 0 : i32
    %c0_i32_1 = arith.constant 0 : i32
    return %c0_i32, %c0_i32_0 : i32, i32
  }
  func.func @transform_1(%arg0: i32) -> (i32, i32, i32) {
    %c0_i32 = arith.constant 0 : i32
    %c0_i32_0 = arith.constant 0 : i32
    %c0_i32_1 = arith.constant 0 : i32
    %c0_i32_2 = arith.constant 0 : i32
    return %c0_i32, %c0_i32_0, %c0_i32_1 : i32, i32, i32
  }
  func.func @transform_2(%arg0: i32) -> (i32, i32) {
    %c0_i32 = arith.constant 0 : i32
    %c0_i32_0 = arith.constant 0 : i32
    %c0_i32_1 = arith.constant 0 : i32
    return %c0_i32, %c0_i32_0 : i32, i32
  }
  func.func @transform_3(%arg0: i32) -> (i32, i32) {
    %c0_i32 = arith.constant 0 : i32
    %c0_i32_0 = arith.constant 0 : i32
    %c0_i32_1 = arith.constant 0 : i32
    return %c0_i32, %c0_i32_0 : i32, i32
  }
  func.func @transform_4(%arg0: i32) -> (i32, i32, i32) {
    %c0_i32 = arith.constant 0 : i32
    %c0_i32_0 = arith.constant 0 : i32
    %c0_i32_1 = arith.constant 0 : i32
    %c0_i32_2 = arith.constant 0 : i32
    return %c0_i32, %c0_i32_0, %c0_i32_1 : i32, i32, i32
  }
  func.func @transform_5(%arg0: i32) -> (i32, i32) {
    %c0_i32 = arith.constant 0 : i32
    %c0_i32_0 = arith.constant 0 : i32
    %c0_i32_1 = arith.constant 0 : i32
    return %c0_i32, %c0_i32_0 : i32, i32
  }
  func.func @transform_6(%arg0: i32) -> (i32, i32) {
    %c0_i32 = arith.constant 0 : i32
    %c0_i32_0 = arith.constant 0 : i32
    %c0_i32_1 = arith.constant 0 : i32
    return %c0_i32, %c0_i32_0 : i32, i32
  }
  func.func @transform_7(%arg0: i32) -> (i32, i32, i32) {
    %c0_i32 = arith.constant 0 : i32
    %c0_i32_0 = arith.constant 0 : i32
    %c0_i32_1 = arith.constant 0 : i32
    %c0_i32_2 = arith.constant 0 : i32
    return %c0_i32, %c0_i32_0, %c0_i32_1 : i32, i32, i32
  }
  func.func @transform_8(%arg0: i32) -> (i32, i32) {
    %c0_i32 = arith.constant 0 : i32
    %c0_i32_0 = arith.constant 0 : i32
    %c0_i32_1 = arith.constant 0 : i32
    return %c0_i32, %c0_i32_0 : i32, i32
  }
  func.func @transform_9(%arg0: i32) -> (i32, i32) {
    %c0_i32 = arith.constant 0 : i32
    %c0_i32_0 = arith.constant 0 : i32
    %c0_i32_1 = arith.constant 0 : i32
    return %c0_i32, %c0_i32_0 : i32, i32
  }
  func.func @transform_10(%arg0: i32) -> (i32, i32) {
    %c0_i32 = arith.constant 0 : i32
    %c0_i32_0 = arith.constant 0 : i32
    %c0_i32_1 = arith.constant 0 : i32
    return %c0_i32, %c0_i32_0 : i32, i32
  }
  func.func @transform_11(%arg0: i32) -> (i32, i32) {
    %c0_i32 = arith.constant 0 : i32
    %c0_i32_0 = arith.constant 0 : i32
    %c0_i32_1 = arith.constant 0 : i32
    return %c0_i32, %c0_i32_0 : i32, i32
  }
  func.func @transform_12(%arg0: i32) -> (i32, i32) {
    %c0_i32 = arith.constant 0 : i32
    %c0_i32_0 = arith.constant 0 : i32
    %c0_i32_1 = arith.constant 0 : i32
    return %c0_i32, %c0_i32_0 : i32, i32
  }
  func.func @transform_13(%arg0: i32) -> (i32, i32) {
    %c0_i32 = arith.constant 0 : i32
    %c0_i32_0 = arith.constant 0 : i32
    %c0_i32_1 = arith.constant 0 : i32
    return %c0_i32, %c0_i32_0 : i32, i32
  }
  func.func @transform_14(%arg0: i32) -> (i32, i32) {
    %c0_i32 = arith.constant 0 : i32
    %c0_i32_0 = arith.constant 0 : i32
    %c0_i32_1 = arith.constant 0 : i32
    return %c0_i32, %c0_i32_0 : i32, i32
  }
  func.func @transform_15(%arg0: i32) -> (i32, i32) {
    %c0_i32 = arith.constant 0 : i32
    %c0_i32_0 = arith.constant 0 : i32
    %c0_i32_1 = arith.constant 0 : i32
    return %c0_i32, %c0_i32_0 : i32, i32
  }
  func.func @transform_16(%arg0: i32) -> (i32, i32) {
    %c0_i32 = arith.constant 0 : i32
    %c0_i32_0 = arith.constant 0 : i32
    %c0_i32_1 = arith.constant 0 : i32
    return %c0_i32, %c0_i32_0 : i32, i32
  }
  func.func @transform_17(%arg0: i32) -> (i32, i32) {
    %c0_i32 = arith.constant 0 : i32
    %c0_i32_0 = arith.constant 0 : i32
    %c0_i32_1 = arith.constant 0 : i32
    return %c0_i32, %c0_i32_0 : i32, i32
  }
  func.func @transform_18(%arg0: i32) -> (i32, i32) {
    %c0_i32 = arith.constant 0 : i32
    %c0_i32_0 = arith.constant 0 : i32
    %c0_i32_1 = arith.constant 0 : i32
    return %c0_i32, %c0_i32_0 : i32, i32
  }
  func.func @transform_19(%arg0: i32) -> (i32, i32) {
    %c0_i32 = arith.constant 0 : i32
    %c0_i32_0 = arith.constant 0 : i32
    %c0_i32_1 = arith.constant 0 : i32
    return %c0_i32, %c0_i32_0 : i32, i32
  }
  func.func @transform_20(%arg0: i32) -> (i32, i32) {
    %c0_i32 = arith.constant 0 : i32
    %c0_i32_0 = arith.constant 0 : i32
    %c0_i32_1 = arith.constant 0 : i32
    return %c0_i32, %c0_i32_0 : i32, i32
  }
  func.func @transform_21(%arg0: i32) -> (i32, i32) {
    %c0_i32 = arith.constant 0 : i32
    %c0_i32_0 = arith.constant 0 : i32
    %c0_i32_1 = arith.constant 0 : i32
    return %c0_i32, %c0_i32_0 : i32, i32
  }
  func.func @transform_22(%arg0: i32) -> (i32, i32) {
    %c0_i32 = arith.constant 0 : i32
    %c0_i32_0 = arith.constant 0 : i32
    %c0_i32_1 = arith.constant 0 : i32
    return %c0_i32, %c0_i32_0 : i32, i32
  }
  func.func @transform_23(%arg0: i32) -> (i32, i32) {
    %c0_i32 = arith.constant 0 : i32
    %c0_i32_0 = arith.constant 0 : i32
    %c0_i32_1 = arith.constant 0 : i32
    return %c0_i32, %c0_i32_0 : i32, i32
  }
}

</mosaic_0001>

<bundles_post_ra>
// kernel: forward.1
= control target key start
LH: loop header
LB: loop body
LE: loop exit
PB: predicated region body
PF: predicated region fallthrough
CT: control target
= control target key end

     0   :  { %v7290_v3 = vmov 0   ;;  %s5505_s28 = smov 15   ;;  %s5506_s29 = smov 1   ;;  %v86_v6 = vlaneseq  ;;  %vm102_vm1 = vcmask 1043456   ;;  %vm98_vm3 = vcmask 64512   ;;  %s7259_s0 = inlined_call_operand.vmem [shape: f32[8,512], index: 0, kind: input, shape index: {}]   ;;  %s7260_s1 = inlined_call_operand.vmem [shape: bf16[9,8,8], index: 1, kind: input, shape index: {}]   ;;  %s7261_s2 = inlined_call_operand.vmem [shape: f32[9,512], index: 2, kind: input, shape index: {}]   ;;  %s7262_s3 = inlined_call_operand.vmem [shape: f32[8,2], index: 3, kind: input, shape index: {}, may-alias: {3,15}]   ;;  %s7263_s4 = inlined_call_operand.vmem [shape: bf16[9,16,8], index: 4, kind: input, shape index: {}]   ;;  %s7264_s5 = inlined_call_operand.vmem [shape: f32[512,128], index: 5, kind: input, shape index: {}]   ;;  %s7265_s6 = inlined_call_operand.vmem [shape: f32[16,2], index: 6, kind: input, shape index: {}, may-alias: {6,9}]   ;;  %s7266_s7 = inlined_call_operand.vmem [shape: bf16[9,16,16], index: 7, kind: input, shape index: {}]   ;;  %s7267_s8 = inlined_call_operand.vmem [shape: f32[9,128], index: 8, kind: input, shape index: {}]   ;;  %s7268_s9 = inlined_call_operand.vmem [shape: f32[16,2], index: 9, kind: input, shape index: {}, may-alias: {6,9}]   ;;  %s7269_s10 = inlined_call_operand.vmem [shape: bf16[21,16], index: 10, kind: input, shape index: {}]   ;;  %s7270_s16 = inlined_call_operand.vmem [shape: f32[128,512], index: 16, kind: input, shape index: {}]   ;;  %s7271_s14 = inlined_call_operand.vmem [shape: bf16[8,16], index: 14, kind: input, shape index: {}]   ;;  %s7272_s15 = inlined_call_operand.vmem [shape: f32[8,2], index: 15, kind: input, shape index: {}, may-alias: {3,15}]   ;;  %s7273_s11 = inlined_call_operand.vmem [shape: f32[21,1], index: 11, kind: input, shape index: {}]   ;;  %s7274_s12 = inlined_call_operand.vmem [shape: f32[21,8], index: 12, kind: input, shape index: {}]   ;;  %s7275_s20 = inlined_call_operand.vmem [shape: f32[21,8], index: 20, kind: input, shape index: {}]   ;;  %s7276_s19 = inlined_call_operand.vmem [shape: f32[21,1], index: 19, kind: input, shape index: {}]   ;;  %s7277_s18 = inlined_call_operand.vmem [shape: bf16[21,8], index: 18, kind: input, shape index: {}]   ;;  %s7278_s21 = inlined_call_operand.vmem [shape: f32[2,512], index: 21, kind: input, shape index: {}]   ;;  %s7279_s13 = inlined_call_operand.vmem [shape: f32[2,128], index: 13, kind: input, shape index: {}]   ;;  %s7280_s22 = inlined_call_operand.vmem [shape: f32[21,128], index: 22, kind: output, shape index: {0}]   ;;  %s7281_s17 = inlined_call_operand.vmem [shape: bf16[21,8], index: 17, kind: input, shape index: {}]   ;;  %s7282_s23 = inlined_call_operand.vmem [shape: f32[21,512], index: 23, kind: output, shape index: {1}]  }
   0x1   :  { %7298 = sst [smem:[#allocation4_spill]] %s7259_s0  ;;  %147 = vmatprep.mubr.bf16.mxu0 %v7290_v3  ;;  %188 = vmatprep.mubr.bf16.mxu1 %v7290_v3  ;;  %s5508_s0 = smov 113   ;;  %vm5513_vm15 = vmmov 0  }
   0x2   :  { %7299 = sst [smem:[#allocation5_spill]] %s7260_s1  ;;  %s7306_s24 = sld [smem:[#allocation4_spill]]  ;;  %5236 = vset.pattern.permute.xlu0 %v7290_v3  ;;  %v5709_v7 = vand.u32 127, %v86_v6 }
   0x3   :  { %7300 = sst [smem:[#allocation6_spill]] %s7261_s2  ;;  %s5503_s2 = smov 17  }
   0x4   :  { %7301 = sst [smem:[#allocation7_spill]] %s7262_s3  ;;  %s5507_s3 = smov 127   ;;  %vm88_vm0 = vcmp.lt.s32.totalorder %v5709_v7, 17  ;;  %vm235_vm2 = vcmp.lt.s32.totalorder %v5709_v7, 16  ;;  %vm382_vm4 = vcmp.lt.s32.totalorder %v5709_v7, 15  ;;  %vm529_vm5 = vcmp.lt.s32.totalorder %v5709_v7, 1 }
   0x5   :  { %7302 = sst [smem:[#allocation8_spill]] %s7263_s4  ;;  %s5509_s4 = smov 112   ;;  %vm783_vm6 = vcmp.lt.s32.totalorder %v5709_v7, 127  ;;  %vm930_vm7 = vcmp.lt.s32.totalorder %v5709_v7, 113  ;;  %vm1077_vm8 = vcmp.lt.s32.totalorder %v5709_v7, 112  ;;  %vm1224_vm9 = vcmp.lt.s32.totalorder %v5709_v7, 111 }
   0x6   :  { %7303 = sst [smem:[#allocation9_spill]] %s7264_s5  ;;  %s5510_s30 = smov 111  }
   0x7   :  { %7304 = sst [smem:[#allocation10_spill]] %s7265_s6  ;;  %s7307_s5 = sld [smem:[#allocation5_spill]] }
   0x8   :  { %7305 = sst [smem:[#allocation11_spill]] %s7266_s7  ;;  %v5646_v0 = vld [vmem:[%s7306_s24] sm:$0xff]  ;;  %v5651_v1 = vld [vmem:[%s7306_s24 + $0x8] sm:$0xff]  ;;  %v5656_v2 = vld [vmem:[%s7306_s24 + $0x10] sm:$0xff]  ;;  %s5504_s7 = smov 16  }
   0x9   :  { %v5196_v4 = vpack.i.bf16 %v5651_v1, %v5646_v0  ;;  %82 = vrot.lane.b32.xlu1 %v5656_v2, %s5503_s2  ;;  %v5669_v5 = vld [vmem:[%s7306_s24 + $0x18] sm:$0xff]  ;;  %s7308_s1 = sld [smem:[#allocation6_spill]]  ;;  %s7311_s27 = sld [smem:[#allocation7_spill]] }
   0xa   :  { %s7313_s26 = sld [smem:[#allocation9_spill]]  ;;  %s5514_s25 = smov 8  }
   0xb   :  { %5197 = vrot.lane.b32.xlu0 %v5196_v4, %s5503_s2  ;;  %s5517_s6 = smov 121  }
   0xd   :  { %5202 = vrot.lane.b32.xlu1 %v5196_v4, %s5504_s7  ;;  %v93_v34 = vld [vmem:[%s7307_s5] sm:$0xf]  ;;  %v4685_v53 = vld [vmem:[%s7307_s5 + $0x4] sm:$0xf] }
   0xf   :  { %84 = vrot.lane.b32.xlu0 %v5669_v5, %s5503_s2 }
  0x11   :  { %231 = vrot.lane.b32.xlu1 %v5656_v2, %s5504_s7 }
  0x13   :  { %233 = vrot.lane.b32.xlu0 %v5669_v5, %s5504_s7 }
  0x15   :  { %380 = vrot.lane.b32.xlu1 %v5669_v5, %s5505_s28 }
  0x17   :  { %5207 = vrot.lane.b32.xlu0 %v5196_v4, %s5505_s28 }
  0x19   :  { %5212 = vrot.lane.b32.xlu1 %v5196_v4, %s5506_s29 }
  0x1b   :  { %378 = vrot.lane.b32.xlu0 %v5656_v2, %s5505_s28 }
  0x1d   :  { %525 = vrot.lane.b32.xlu1 %v5656_v2, %s5506_s29 }
  0x1f   :  { %527 = vrot.lane.b32.xlu0 %v5669_v5, %s5506_s29 }
  0x21   :  { %779 = vrot.lane.b32.xlu1 %v5656_v2, %s5507_s3 }
  0x23   :  { %5217 = vrot.lane.b32.xlu0 %v5196_v4, %s5507_s3 }
  0x25   :  { %5222 = vrot.lane.b32.xlu1 %v5196_v4, %s5508_s0 }
  0x27   :  { %781 = vrot.lane.b32.xlu0 %v5669_v5, %s5507_s3 }
  0x29   :  { %928 = vrot.lane.b32.xlu1 %v5669_v5, %s5508_s0 }
  0x2b   :  { %926 = vrot.lane.b32.xlu0 %v5656_v2, %s5508_s0 }
  0x2d   :  { %1073 = vrot.lane.b32.xlu1 %v5656_v2, %s5509_s4 }
  0x2f   :  { %5227 = vrot.lane.b32.xlu0 %v5196_v4, %s5509_s4 }
  0x31   :  { %5232 = vrot.lane.b32.xlu1 %v5196_v4, %s5510_s30 }
  0x33   :  { %1075 = vrot.lane.b32.xlu0 %v5669_v5, %s5509_s4 }
  0x35   :  { %1222 = vrot.lane.b32.xlu1 %v5669_v5, %s5510_s30 }
  0x37   :  { %1220 = vrot.lane.b32.xlu0 %v5656_v2, %s5510_s30 }
  0x7b   :  { %v83_v8 = vpop.permute.xlu1 %82 }
  0x7d   :  { %v5198_v9 = vpop.permute.xlu0 %5197 }
  0x7e   :  { %v5200_v10 = vunpack.i.h.bf16 %v5198_v9  ;;  %v5199_v11 = vunpack.i.l.bf16 %v5198_v9 }
  0x7f   :  { %v5203_v12 = vpop.permute.xlu1 %5202 }
  0x80   :  { %v91_v13 = vsel %vm88_vm0, %v5199_v11, %v5200_v10  ;;  %v5205_v14 = vunpack.i.h.bf16 %v5203_v12  ;;  %v5204_v15 = vunpack.i.l.bf16 %v5203_v12  ;;  %v90_v16 = vsel %vm88_vm0, %v5200_v10, %v83_v8  ;;  %v4691_v12 = vld [vmem:[%s7307_s5 + $0x8] sm:$0xf] }
  0x81   :  { %v85_v17 = vpop.permute.xlu0 %84  ;;  %v95_v18 = vpack.c.bf16 %v91_v13, %v91_v13  ;;  %v96_v19 = vpack.c.bf16 %v90_v16, %v90_v16  ;;  %v671_v16 = vpack.c.bf16 %v5651_v1, %v5651_v1  ;;  %v670_v1 = vpack.c.bf16 %v5646_v0, %v5646_v0 }
  0x82   :  { %v92_v20 = vsel %vm88_vm0, %v85_v17, %v5199_v11  ;;  %v89_v21 = vsel %vm88_vm0, %v83_v8, %v85_v17  ;;  %v238_v22 = vsel %vm235_vm2, %v5204_v15, %v5205_v14  ;;  %v673_v17 = vpack.c.bf16 %v5669_v5, %v5669_v5 }
  0x83   :  { %v94_v23 = vpack.c.bf16 %v92_v20, %v92_v20  ;;  %4681 = vmatprep.subr.msk.bf16.mxu0 %vm102_vm1, %v95_v18  ;;  %v97_v24 = vpack.c.bf16 %v89_v21, %v89_v21  ;;  %v232_v25 = vpop.permute.xlu1 %231  ;;  %v243_v26 = vpack.c.bf16 %v238_v22, %v238_v22  ;;  %v110_v29 = vsel %vm102_vm1, %v96_v19, 0 }
  0x84   :  { %v237_v27 = vsel %vm235_vm2, %v5205_v14, %v232_v25  ;;  %v672_v5 = vpack.c.bf16 %v5656_v2, %v5656_v2  ;;  %v678_v0 = vsel %vm102_vm1, %v670_v1, 0  ;;  %v4720_v1 = vld [vmem:[%s7307_s5 + $0x1c] sm:$0xf] }
  0x85   :  { %4683 = vmatprep.subr.msk.bf16.mxu1 %vm102_vm1, %v97_v24  ;;  %v104_v28 = vsel %vm102_vm1, %v94_v23, 0  ;;  %v244_v30 = vpack.c.bf16 %v237_v27, %v237_v27  ;;  %v234_v31 = vpop.permute.xlu0 %233  ;;  %v4697_v24 = vld [vmem:[%s7307_s5 + $0xc] sm:$0xf] }
  0x86   :  { %116 = vmatpush1.bf16.msra.mxu0 %v104_v28  ;;  %157 = vmatpush1.bf16.msra.mxu1 %v110_v29  ;;  %v236_v32 = vsel %vm235_vm2, %v232_v25, %v234_v31  ;;  %v239_v33 = vsel %vm235_vm2, %v234_v31, %v5204_v15  ;;  %v684_v2 = vsel %vm102_vm1, %v672_v5, 0 }
  0x87   :  { %v242_v35 = vpack.c.bf16 %v239_v33, %v239_v33  ;;  %v245_v36 = vpack.c.bf16 %v236_v32, %v236_v32  ;;  %4686 = vmatprep.subr.msk.bf16.mxu0 %vm102_vm1, %v243_v26  ;;  %v381_v37 = vpop.permute.xlu1 %380  ;;  %v256_v38 = vsel %vm102_vm1, %v244_v30, 0 }
  0x89   :  { %4682 = vmatmul.mubr.msk.bf16.vlgmr.msra.gmra.mrb[0].mxu0 %vm98_vm3, %v93_v34  ;;  %4684 = vmatmul.mubr.msk.bf16.vlgmr.msra.gmra.mrb[0].mxu1 %vm98_vm3, %v93_v34  ;;  %v5208_v39 = vpop.permute.xlu0 %5207  ;;  %v250_v40 = vsel %vm102_vm1, %v242_v35, 0 }
  0x8a   :  { %v5210_v41 = vunpack.i.h.bf16 %v5208_v39  ;;  %v5209_v42 = vunpack.i.l.bf16 %v5208_v39  ;;  %4688 = vmatprep.subr.msk.bf16.mxu1 %vm102_vm1, %v245_v36  ;;  %262 = vmatpush1.bf16.msra.mxu0 %v250_v40 }
  0x8b   :  { %303 = vmatpush1.bf16.msra.mxu1 %v256_v38  ;;  %293 = vmatprep.mubr.bf16.mxu0 %v7290_v3  ;;  %v5213_v43 = vpop.permute.xlu1 %5212  ;;  %v4703_v38 = vld [vmem:[%s7307_s5 + $0x10] sm:$0xf] }
  0x8c   :  { %v385_v44 = vsel %vm382_vm4, %v5209_v42, %v5210_v41  ;;  %334 = vmatprep.mubr.bf16.mxu1 %v7290_v3  ;;  %v386_v45 = vsel %vm382_vm4, %v381_v37, %v5209_v42  ;;  %v5215_v46 = vunpack.i.h.bf16 %v5213_v43  ;;  %v5214_v47 = vunpack.i.l.bf16 %v5213_v43 }
  0x8d   :  { %v390_v48 = vpack.c.bf16 %v385_v44, %v385_v44  ;;  %v389_v49 = vpack.c.bf16 %v386_v45, %v386_v45  ;;  %v379_v50 = vpop.permute.xlu0 %378 }
  0x8e   :  { %v383_v51 = vsel %vm382_vm4, %v379_v50, %v381_v37  ;;  %v384_v52 = vsel %vm382_vm4, %v5210_v41, %v379_v50  ;;  %v532_v54 = vsel %vm529_vm5, %v5214_v47, %v5215_v46 }
  0x8f   :  { %v391_v55 = vpack.c.bf16 %v384_v52, %v384_v52  ;;  %v392_v56 = vpack.c.bf16 %v383_v51, %v383_v51  ;;  %4692 = vmatprep.subr.msk.bf16.mxu0 %vm102_vm1, %v390_v48  ;;  %v397_v57 = vsel %vm102_vm1, %v389_v49, 0  ;;  %v526_v58 = vpop.permute.xlu1 %525  ;;  %v537_v60 = vpack.c.bf16 %v532_v54, %v532_v54  ;;  %v4708_v54 = vld [vmem:[%s7307_s5 + $0x14] sm:$0xf] }
  0x90   :  { %v531_v59 = vsel %vm529_vm5, %v5215_v46, %v526_v58 }
  0x91   :  { %4687 = vmatmul.mubr.msk.bf16.vlgmr.msra.gmra.mrb[4].mxu0 %vm98_vm3, %v4685_v53  ;;  %4689 = vmatmul.mubr.msk.bf16.vlgmr.msra.gmra.mrb[4].mxu1 %vm98_vm3, %v4685_v53  ;;  %v403_v61 = vsel %vm102_vm1, %v391_v55, 0  ;;  %v528_v62 = vpop.permute.xlu0 %527  ;;  %v538_v8 = vpack.c.bf16 %v531_v59, %v531_v59 }
  0x92   :  { %4694 = vmatprep.subr.msk.bf16.mxu1 %vm102_vm1, %v392_v56  ;;  %409 = vmatpush1.bf16.msra.mxu0 %v397_v57  ;;  %v530_v63 = vsel %vm529_vm5, %v526_v58, %v528_v62  ;;  %v533_v4 = vsel %vm529_vm5, %v528_v62, %v5214_v47 }
  0x93   :  { %450 = vmatpush1.bf16.msra.mxu1 %v403_v61  ;;  %440 = vmatprep.mubr.bf16.mxu0 %v7290_v3  ;;  %v536_v9 = vpack.c.bf16 %v533_v4, %v533_v4  ;;  %v539_v10 = vpack.c.bf16 %v530_v63, %v530_v63  ;;  %v780_v13 = vpop.permute.xlu1 %779  ;;  %v550_v15 = vsel %vm102_vm1, %v538_v8, 0 }
  0x94   :  { %481 = vmatprep.mubr.bf16.mxu1 %v7290_v3  ;;  %4698 = vmatprep.subr.msk.bf16.mxu0 %vm102_vm1, %v537_v60 }
  0x95   :  { %4700 = vmatprep.subr.msk.bf16.mxu1 %vm102_vm1, %v539_v10  ;;  %v5218_v11 = vpop.permute.xlu0 %5217  ;;  %v544_v14 = vsel %vm102_vm1, %v536_v9, 0 }
  0x96   :  { %v5220_v18 = vunpack.i.h.bf16 %v5218_v11  ;;  %v5219_v19 = vunpack.i.l.bf16 %v5218_v11 }
  0x97   :  { %v5223_v21 = vpop.permute.xlu1 %5222 }
  0x98   :  { %v785_v22 = vsel %vm783_vm6, %v5220_v18, %v780_v13  ;;  %v786_v29 = vsel %vm783_vm6, %v5219_v19, %v5220_v18  ;;  %v5225_v30 = vunpack.i.h.bf16 %v5223_v21  ;;  %v5224_v31 = vunpack.i.l.bf16 %v5223_v21 }
  0x99   :  { %4693 = vmatmul.mubr.msk.bf16.vlgmr.msra.gmra.mrb[8].mxu0 %vm98_vm3, %v4691_v12  ;;  %4695 = vmatmul.mubr.msk.bf16.vlgmr.msra.gmra.mrb[8].mxu1 %vm98_vm3, %v4691_v12  ;;  %v782_v20 = vpop.permute.xlu0 %781  ;;  %v791_v26 = vpack.c.bf16 %v785_v22, %v785_v22  ;;  %v790_v34 = vpack.c.bf16 %v786_v29, %v786_v29  ;;  %v4714_v12 = vld [vmem:[%s7307_s5 + $0x18] sm:$0xf]  ;;  %v4726_v22 = vld [vmem:[%s7307_s5 + $0x20] sm:$0xf]  ;;  %s5515_s5 = smov 9  }
  0x9a   :  { %556 = vmatpush1.bf16.msra.mxu0 %v544_v14  ;;  %597 = vmatpush1.bf16.msra.mxu1 %v550_v15  ;;  %v787_v23 = vsel %vm783_vm6, %v782_v20, %v5219_v19  ;;  %v784_v27 = vsel %vm783_vm6, %v780_v13, %v782_v20  ;;  %v933_v45 = vsel %vm930_vm7, %v5224_v31, %v5225_v30 }
  0x9b   :  { %587 = vmatprep.mubr.bf16.mxu0 %v7290_v3  ;;  %628 = vmatprep.mubr.bf16.mxu1 %v7290_v3  ;;  %v793_v28 = vpack.c.bf16 %v787_v23, %v787_v23  ;;  %v929_v32 = vpop.permute.xlu1 %928  ;;  %v792_v33 = vpack.c.bf16 %v784_v27, %v784_v27  ;;  %v798_v40 = vsel %vm102_vm1, %v790_v34, 0  ;;  %v937_v50 = vpack.c.bf16 %v933_v45, %v933_v45 }
  0x9c   :  { %4704 = vmatprep.subr.msk.bf16.mxu0 %vm102_vm1, %v671_v16  ;;  %4706 = vmatprep.subr.msk.bf16.mxu1 %vm102_vm1, %v673_v17  ;;  %v934_v36 = vsel %vm930_vm7, %v929_v32, %v5224_v31  ;;  %v200_v23 = vshrl.u32 %v86_v6, 7  ;;  %v4690_v6 = vld [vmem:[%s7308_s1 + $0x1] ss:$8 sm:$0xf] }
  0x9d   :  { %v927_v25 = vpop.permute.xlu0 %926  ;;  %v804_v41 = vsel %vm102_vm1, %v792_v33, 0  ;;  %v940_v42 = vpack.c.bf16 %v934_v36, %v934_v36  ;;  %v945_v55 = vsel %vm102_vm1, %v937_v50, 0 }
  0x9e   :  { %v932_v37 = vsel %vm930_vm7, %v5225_v30, %v927_v25  ;;  %v931_v43 = vsel %vm930_vm7, %v927_v25, %v929_v32  ;;  %v197_v25 = vld [vmem:[%s7308_s1] ss:$8 sm:$0xf]  ;;  %v5900_v30 = vsub.s32 3, %v200_v23 }
  0x9f   :  { %v1074_v39 = vpop.permute.xlu1 %1073  ;;  %v938_v44 = vpack.c.bf16 %v932_v37, %v932_v37  ;;  %v939_v49 = vpack.c.bf16 %v931_v43, %v931_v43 }
  0xa0   :  { %7310 = vst [vmem:[#allocation3_spill] sm:$0xff] %v5900_v30 }
  0xa1   :  { %4699 = vmatmul.mubr.msk.bf16.vlgmr.msra.gmra.mrb[12].mxu0 %vm98_vm3, %v4697_v24  ;;  %4701 = vmatmul.mubr.msk.bf16.vlgmr.msra.gmra.mrb[12].mxu1 %vm98_vm3, %v4697_v24  ;;  %v5228_v35 = vpop.permute.xlu0 %5227  ;;  %v951_v56 = vsel %vm102_vm1, %v939_v49, 0 }
  0xa2   :  { %690 = vmatpush1.bf16.msra.mxu0 %v678_v0  ;;  %731 = vmatpush1.bf16.msra.mxu1 %v684_v2  ;;  %v5230_v46 = vunpack.i.h.bf16 %v5228_v35  ;;  %v5229_v47 = vunpack.i.l.bf16 %v5228_v35  ;;  %v5894_v2 = vsub.s32 0, %v200_v23 }
  0xa3   :  { %721 = vmatprep.mubr.bf16.mxu0 %v7290_v3  ;;  %762 = vmatprep.mubr.bf16.mxu1 %v7290_v3  ;;  %v5233_v51 = vpop.permute.xlu1 %5232 }
  0xa4   :  { %4709 = vmatprep.subr.msk.bf16.mxu0 %vm102_vm1, %v791_v26  ;;  %4711 = vmatprep.subr.msk.bf16.mxu1 %vm102_vm1, %v793_v28  ;;  %v1079_v52 = vsel %vm1077_vm8, %v5230_v46, %v1074_v39  ;;  %v1080_v60 = vsel %vm1077_vm8, %v5229_v47, %v5230_v46  ;;  %v5235_v61 = vunpack.i.h.bf16 %v5233_v51  ;;  %v5234_v62 = vunpack.i.l.bf16 %v5233_v51 }
  0xa5   :  { %v1076_v48 = vpop.permute.xlu0 %1075  ;;  %v1085_v57 = vpack.c.bf16 %v1079_v52, %v1079_v52  ;;  %v1084_v9 = vpack.c.bf16 %v1080_v60, %v1080_v60  ;;  %v5896_v26 = vsub.s32 2, %v200_v23  ;;  %v5898_v28 = vsub.s32 1, %v200_v23 }
  0xa6   :  { %v1081_v53 = vsel %vm1077_vm8, %v1076_v48, %v5229_v47  ;;  %v1078_v58 = vsel %vm1077_vm8, %v1074_v39, %v1076_v48  ;;  %v1227_v18 = vsel %vm1224_vm9, %v5234_v62, %v5235_v61  ;;  %v5906_v35 = vrot.slane %v197_v25, %v5894_v2 }
  0xa7   :  { %v1087_v59 = vpack.c.bf16 %v1081_v53, %v1081_v53  ;;  %v1223_v63 = vpop.permute.xlu1 %1222  ;;  %v1086_v8 = vpack.c.bf16 %v1078_v58, %v1078_v58  ;;  %v1092_v13 = vsel %vm102_vm1, %v1084_v9, 0  ;;  %v1231_v20 = vpack.c.bf16 %v1227_v18, %v1227_v18  ;;  %7309 = vst [vmem:[#allocation2_spill] sm:$0xff] %v5896_v26 }
  0xa8   :  { %v1228_v10 = vsel %vm1224_vm9, %v1223_v63, %v5234_v62  ;;  %v5909_v36 = vrot.slane %v197_v25, %v5896_v26  ;;  %v5912_v37 = vrot.slane %v4690_v6, %v5894_v2  ;;  %v5918_v39 = vrot.slane %v197_v25, %v5898_v28 }
  0xa9   :  { %4705 = vmatmul.mubr.msk.bf16.vlgmr.msra.gmra.mrb[16].mxu0 %vm98_vm3, %v4703_v38  ;;  %4707 = vmatmul.mubr.msk.bf16.vlgmr.msra.gmra.mrb[16].mxu1 %vm98_vm3, %v4703_v38  ;;  %v1221_v4 = vpop.permute.xlu0 %1220  ;;  %v1098_v14 = vsel %vm102_vm1, %v1086_v8, 0  ;;  %v1234_v15 = vpack.c.bf16 %v1228_v10, %v1228_v10  ;;  %v1239_v5 = vsel %vm102_vm1, %v1231_v20, 0  ;;  %v5915_v38 = vrot.slane %v4690_v6, %v5896_v26 }
  0xaa   :  { %810 = vmatpush1.bf16.msra.mxu0 %v798_v40  ;;  %851 = vmatpush1.bf16.msra.mxu1 %v804_v41  ;;  %v1226_v11 = vsel %vm1224_vm9, %v5235_v61, %v1221_v4  ;;  %v1225_v16 = vsel %vm1224_vm9, %v1221_v4, %v1223_v63  ;;  %v5921_v40 = vrot.slane %v197_v25, %v5900_v30 }
  0xab   :  { %841 = vmatprep.mubr.bf16.mxu0 %v7290_v3  ;;  %882 = vmatprep.mubr.bf16.mxu1 %v7290_v3  ;;  %v1232_v17 = vpack.c.bf16 %v1226_v11, %v1226_v11  ;;  %v1233_v19 = vpack.c.bf16 %v1225_v16, %v1225_v16  ;;  %v5924_v41 = vrot.slane %v4690_v6, %v5898_v28 }
  0xac   :  { %4715 = vmatprep.subr.msk.bf16.mxu0 %vm102_vm1, %v938_v44  ;;  %4717 = vmatprep.subr.msk.bf16.mxu1 %vm102_vm1, %v940_v42  ;;  %v5927_v42 = vrot.slane %v4690_v6, %v5900_v30 }
  0xad   :  { %v1245_v21 = vsel %vm102_vm1, %v1233_v19, 0 }
  0xb1   :  { %4710 = vmatmul.mubr.msk.bf16.vlgmr.msra.gmra.mrb[20].mxu0 %vm98_vm3, %v4708_v54  ;;  %4712 = vmatmul.mubr.msk.bf16.vlgmr.msra.gmra.mrb[20].mxu1 %vm98_vm3, %v4708_v54 }
  0xb2   :  { %957 = vmatpush1.bf16.msra.mxu0 %v945_v55  ;;  %998 = vmatpush1.bf16.msra.mxu1 %v951_v56 }
  0xb3   :  { %988 = vmatprep.mubr.bf16.mxu0 %v7290_v3  ;;  %1029 = vmatprep.mubr.bf16.mxu1 %v7290_v3 }
  0xb4   :  { %4721 = vmatprep.subr.msk.bf16.mxu0 %vm102_vm1, %v1085_v57  ;;  %4723 = vmatprep.subr.msk.bf16.mxu1 %vm102_vm1, %v1087_v59  ;;  %v4696_v57 = vld [vmem:[%s7308_s1 + $0x2] ss:$8 sm:$0xf] }
  0xb5   :  { %v5941_v4 = vrot.slane %v4696_v57, %v5894_v2  ;;  %v5944_v8 = vrot.slane %v4696_v57, %v5896_v26  ;;  %v5947_v9 = vrot.slane %v4696_v57, %v5898_v28  ;;  %v5950_v10 = vrot.slane %v4696_v57, %v5900_v30 }
  0xb9   :  { %4716 = vmatmul.mubr.msk.bf16.vlgmr.msra.gmra.mrb[24].mxu0 %vm98_vm3, %v4714_v12  ;;  %4718 = vmatmul.mubr.msk.bf16.vlgmr.msra.gmra.mrb[24].mxu1 %vm98_vm3, %v4714_v12 }
  0xba   :  { %1104 = vmatpush1.bf16.msra.mxu0 %v1092_v13  ;;  %1145 = vmatpush1.bf16.msra.mxu1 %v1098_v14 }
  0xbb   :  { %1135 = vmatprep.mubr.bf16.mxu0 %v7290_v3  ;;  %1176 = vmatprep.mubr.bf16.mxu1 %v7290_v3 }
  0xbc   :  { %4727 = vmatprep.subr.msk.bf16.mxu0 %vm102_vm1, %v1232_v17  ;;  %4729 = vmatprep.subr.msk.bf16.mxu1 %vm102_vm1, %v1234_v15 }
  0xc1   :  { %4722 = vmatmul.mubr.msk.bf16.vlgmr.msra.gmra.mrb[28].mxu0 %vm98_vm3, %v4720_v1  ;;  %4724 = vmatmul.mubr.msk.bf16.vlgmr.msra.gmra.mrb[28].mxu1 %vm98_vm3, %v4720_v1  ;;  %v4702_v1 = vld [vmem:[%s7308_s1 + $0x3] ss:$8 sm:$0xf] }
  0xc2   :  { %1251 = vmatpush1.bf16.msra.mxu0 %v1239_v5  ;;  %1292 = vmatpush1.bf16.msra.mxu1 %v1245_v21 }
  0xc3   :  { %1282 = vmatprep.mubr.bf16.mxu0 %v7290_v3  ;;  %1323 = vmatprep.mubr.bf16.mxu1 %v7290_v3 }
  0xc9   :  { %4728 = vmatmul.mubr.msk.bf16.vlgmr.msra.gmra.mrb[32].mxu0 %vm98_vm3, %v4726_v22  ;;  %4730 = vmatmul.mubr.msk.bf16.vlgmr.msra.gmra.mrb[32].mxu1 %vm98_vm3, %v4726_v22 }
  0xca   :  { %1490 = vmatprep.mubr.bf16.mxu0 %v7290_v3  ;;  %1533 = vmatprep.mubr.bf16.mxu1 %v7290_v3 }
 0x15c   :  { %v149_v24 = vpop.f32.mrb[0].mxu0  ;;  %v190_v0 = vpop.f32.mrb[0].mxu1 }
 0x15d   :  { %v151_v27 = vpop.f32.mrb[1].mxu0  ;;  %v192_v29 = vpop.f32.mrb[1].mxu1  ;;  %v219_v45 = vmul.f32 %v5906_v35, %v149_v24  ;;  %v221_v46 = vmul.f32 %v5909_v36, %v190_v0  ;;  %v5960_v0 = vrot.slane %v4702_v1, %v5894_v2 }
 0x15e   :  { %v153_v31 = vpop.f32.mrb[2].mxu0  ;;  %v194_v32 = vpop.f32.mrb[2].mxu1  ;;  %v220_v51 = vmul.f32 %v5918_v39, %v151_v27  ;;  %v222_v52 = vmul.f32 %v5921_v40, %v192_v29  ;;  %v5963_v27 = vrot.slane %v4702_v1, %v5896_v26  ;;  %v5966_v29 = vrot.slane %v4702_v1, %v5898_v28 }
 0x15f   :  { %v154_v33 = vpop.f32.mrb[3].mxu0  ;;  %v195_v34 = vpop.f32.mrb[3].mxu1  ;;  %v5969_v31 = vrot.slane %v4702_v1, %v5900_v30 }
 0x164   :  { %v295_v43 = vpop.f32.mrb[4].mxu0  ;;  %v336_v44 = vpop.f32.mrb[4].mxu1 }
 0x165   :  { %v366_v47 = vmul.f32 %v5912_v37, %v295_v43  ;;  %v368_v48 = vmul.f32 %v5915_v38, %v336_v44  ;;  %v297_v49 = vpop.f32.mrb[5].mxu0  ;;  %v338_v50 = vpop.f32.mrb[5].mxu1 }
 0x166   :  { %v367_v53 = vmul.f32 %v5924_v41, %v297_v49  ;;  %v369_v54 = vmul.f32 %v5927_v42, %v338_v50  ;;  %v299_v55 = vpop.f32.mrb[6].mxu0  ;;  %v340_v56 = vpop.f32.mrb[6].mxu1 }
 0x167   :  { %v370_v58 = vadd.f32 %v366_v47, %v219_v45  ;;  %v372_v59 = vadd.f32 %v368_v48, %v221_v46  ;;  %v300_v60 = vpop.f32.mrb[7].mxu0  ;;  %v341_v61 = vpop.f32.mrb[7].mxu1 }
 0x168   :  { %v371_v62 = vadd.f32 %v367_v53, %v220_v51  ;;  %v373_v63 = vadd.f32 %v369_v54, %v222_v52 }
 0x16c   :  { %v442_v11 = vpop.f32.mrb[8].mxu0  ;;  %v483_v12 = vpop.f32.mrb[8].mxu1 }
 0x16d   :  { %v513_v13 = vmul.f32 %v5941_v4, %v442_v11  ;;  %v515_v14 = vmul.f32 %v5944_v8, %v483_v12  ;;  %v444_v15 = vpop.f32.mrb[9].mxu0  ;;  %v485_v16 = vpop.f32.mrb[9].mxu1  ;;  %v4713_v12 = vld [vmem:[%s7308_s1 + $0x5] ss:$8 sm:$0xf] }
 0x16e   :  { %v514_v17 = vmul.f32 %v5947_v9, %v444_v15  ;;  %v516_v18 = vmul.f32 %v5950_v10, %v485_v16  ;;  %v446_v19 = vpop.f32.mrb[10].mxu0  ;;  %v487_v20 = vpop.f32.mrb[10].mxu1  ;;  %v5979_v15 = vrot.slane %v4713_v12, %v5894_v2  ;;  %v5982_v16 = vrot.slane %v4713_v12, %v5896_v26 }
 0x16f   :  { %v517_v5 = vadd.f32 %v513_v13, %v370_v58  ;;  %v519_v21 = vadd.f32 %v515_v14, %v372_v59  ;;  %v447_v22 = vpop.f32.mrb[11].mxu0  ;;  %v488_v23 = vpop.f32.mrb[11].mxu1 }
 0x170   :  { %v518_v24 = vadd.f32 %v514_v17, %v371_v62  ;;  %v520_v25 = vadd.f32 %v516_v18, %v373_v63  ;;  %v5985_v17 = vrot.slane %v4713_v12, %v5898_v28  ;;  %v5988_v18 = vrot.slane %v4713_v12, %v5900_v30 }
 0x174   :  { %v589_v32 = vpop.f32.mrb[12].mxu0  ;;  %v630_v6 = vpop.f32.mrb[12].mxu1 }
 0x175   :  { %v660_v33 = vmul.f32 %v5960_v0, %v589_v32  ;;  %v662_v34 = vmul.f32 %v5963_v27, %v630_v6  ;;  %v591_v43 = vpop.f32.mrb[13].mxu0  ;;  %v632_v44 = vpop.f32.mrb[13].mxu1  ;;  %v4719_v6 = vld [vmem:[%s7308_s1 + $0x6] ss:$8 sm:$0xf] }
 0x176   :  { %v661_v45 = vmul.f32 %v5966_v29, %v591_v43  ;;  %v663_v46 = vmul.f32 %v5969_v31, %v632_v44  ;;  %v593_v47 = vpop.f32.mrb[14].mxu0  ;;  %v634_v48 = vpop.f32.mrb[14].mxu1 }
 0x177   :  { %v594_v49 = vpop.f32.mrb[15].mxu0  ;;  %v635_v50 = vpop.f32.mrb[15].mxu1  ;;  %v664_v51 = vadd.f32 %v660_v33, %v517_v5  ;;  %v666_v52 = vadd.f32 %v662_v34, %v519_v21  ;;  %v5998_v47 = vrot.slane %v4719_v6, %v5894_v2  ;;  %v6001_v48 = vrot.slane %v4719_v6, %v5896_v26 }
 0x178   :  { %v665_v53 = vadd.f32 %v661_v45, %v518_v24  ;;  %v667_v54 = vadd.f32 %v663_v46, %v520_v25  ;;  %v6004_v49 = vrot.slane %v4719_v6, %v5898_v28  ;;  %v6007_v50 = vrot.slane %v4719_v6, %v5900_v30 }
 0x17c   :  { %v723_v55 = vpop.f32.mrb[16].mxu0  ;;  %v764_v56 = vpop.f32.mrb[16].mxu1 }
 0x17d   :  { %v771_v57 = vadd.f32 %v723_v55, %v664_v51  ;;  %v773_v58 = vadd.f32 %v764_v56, %v666_v52  ;;  %v725_v59 = vpop.f32.mrb[17].mxu0  ;;  %v766_v60 = vpop.f32.mrb[17].mxu1 }
 0x17e   :  { %v772_v61 = vadd.f32 %v725_v59, %v665_v53  ;;  %v774_v62 = vadd.f32 %v766_v60, %v667_v54  ;;  %v727_v63 = vpop.f32.mrb[18].mxu0  ;;  %v768_v11 = vpop.f32.mrb[18].mxu1 }
 0x17f   :  { %v728_v13 = vpop.f32.mrb[19].mxu0  ;;  %v769_v14 = vpop.f32.mrb[19].mxu1 }
 0x184   :  { %v843_v19 = vpop.f32.mrb[20].mxu0  ;;  %v884_v20 = vpop.f32.mrb[20].mxu1 }
 0x185   :  { %v914_v1 = vmul.f32 %v5979_v15, %v843_v19  ;;  %v916_v5 = vmul.f32 %v5982_v16, %v884_v20  ;;  %v845_v21 = vpop.f32.mrb[21].mxu0  ;;  %v886_v22 = vpop.f32.mrb[21].mxu1 }
 0x186   :  { %v915_v23 = vmul.f32 %v5985_v17, %v845_v21  ;;  %v917_v24 = vmul.f32 %v5988_v18, %v886_v22  ;;  %v847_v25 = vpop.f32.mrb[22].mxu0  ;;  %v888_v32 = vpop.f32.mrb[22].mxu1 }
 0x187   :  { %v918_v33 = vadd.f32 %v914_v1, %v771_v57  ;;  %v920_v34 = vadd.f32 %v916_v5, %v773_v58  ;;  %v848_v43 = vpop.f32.mrb[23].mxu0  ;;  %v889_v44 = vpop.f32.mrb[23].mxu1 }
 0x188   :  { %v919_v45 = vadd.f32 %v915_v23, %v772_v61  ;;  %v921_v46 = vadd.f32 %v917_v24, %v774_v62  ;;  %v4725_v61 = vld [vmem:[%s7308_s1 + $0x7] ss:$8 sm:$0xf]  ;;  %v4731_v44 = vld [vmem:[%s7308_s1 + $0x20] ss:$8 sm:$0xf] }
 0x189   :  { %v6017_v19 = vrot.slane %v4725_v61, %v5894_v2  ;;  %v6020_v20 = vrot.slane %v4725_v61, %v5896_v26  ;;  %v6023_v1 = vrot.slane %v4725_v61, %v5898_v28  ;;  %v6026_v5 = vrot.slane %v4725_v61, %v5900_v30  ;;  %s5516_s1 = smov 7  }
 0x18c   :  { %v990_v51 = vpop.f32.mrb[24].mxu0  ;;  %v1031_v52 = vpop.f32.mrb[24].mxu1 }
 0x18d   :  { %v1061_v53 = vmul.f32 %v5998_v47, %v990_v51  ;;  %v1063_v54 = vmul.f32 %v6001_v48, %v1031_v52  ;;  %v992_v55 = vpop.f32.mrb[25].mxu0  ;;  %v1033_v56 = vpop.f32.mrb[25].mxu1 }
 0x18e   :  { %v1062_v57 = vmul.f32 %v6004_v49, %v992_v55  ;;  %v1064_v58 = vmul.f32 %v6007_v50, %v1033_v56  ;;  %v994_v59 = vpop.f32.mrb[26].mxu0  ;;  %v1035_v60 = vpop.f32.mrb[26].mxu1  ;;  %v6036_v55 = vrot.slane %v4731_v44, %v5894_v2  ;;  %v6039_v56 = vrot.slane %v4731_v44, %v5896_v26 }
 0x18f   :  { %v1065_v62 = vadd.f32 %v1061_v53, %v918_v33  ;;  %v1067_v63 = vadd.f32 %v1063_v54, %v920_v34  ;;  %v995_v11 = vpop.f32.mrb[27].mxu0  ;;  %v1036_v12 = vpop.f32.mrb[27].mxu1 }
 0x190   :  { %v1066_v13 = vadd.f32 %v1062_v57, %v919_v45  ;;  %v1068_v14 = vadd.f32 %v1064_v58, %v921_v46  ;;  %v6042_v57 = vrot.slane %v4731_v44, %v5898_v28  ;;  %v6045_v58 = vrot.slane %v4731_v44, %v5900_v30  ;;  %v1363_v44 = vld [vmem:[%s7311_s27] sm:$0xff]  ;;  %s5518_s27 = smov 119  }
 0x194   :  { %v1137_v21 = vpop.f32.mrb[28].mxu0  ;;  %v1178_v22 = vpop.f32.mrb[28].mxu1 }
 0x195   :  { %v1208_v23 = vmul.f32 %v6017_v19, %v1137_v21  ;;  %v1210_v24 = vmul.f32 %v6020_v20, %v1178_v22  ;;  %v1139_v25 = vpop.f32.mrb[29].mxu0  ;;  %v1180_v32 = vpop.f32.mrb[29].mxu1 }
 0x196   :  { %v1209_v6 = vmul.f32 %v6023_v1, %v1139_v25  ;;  %v1211_v33 = vmul.f32 %v6026_v5, %v1180_v32  ;;  %v1141_v34 = vpop.f32.mrb[30].mxu0  ;;  %v1182_v43 = vpop.f32.mrb[30].mxu1 }
 0x197   :  { %v1212_v45 = vadd.f32 %v1208_v23, %v1065_v62  ;;  %v1214_v46 = vadd.f32 %v1210_v24, %v1067_v63  ;;  %v1142_v51 = vpop.f32.mrb[31].mxu0  ;;  %v1183_v52 = vpop.f32.mrb[31].mxu1 }
 0x198   :  { %v1213_v53 = vadd.f32 %v1209_v6, %v1066_v13  ;;  %v1215_v54 = vadd.f32 %v1211_v33, %v1068_v14  ;;  %v7292_v51 = vmov 1  }
 0x199   :  { %5237 = vset.pattern.permute.xlu1 %v7292_v51 }
 0x19c   :  { %v1284_v59 = vpop.f32.mrb[32].mxu0  ;;  %v1325_v60 = vpop.f32.mrb[32].mxu1 }
 0x19d   :  { %v1355_v61 = vmul.f32 %v6036_v55, %v1284_v59  ;;  %v1357_v62 = vmul.f32 %v6039_v56, %v1325_v60  ;;  %v1286_v63 = vpop.f32.mrb[33].mxu0  ;;  %v1327_v11 = vpop.f32.mrb[33].mxu1 }
 0x19e   :  { %v1356_v12 = vmul.f32 %v6042_v57, %v1286_v63  ;;  %v1358_v13 = vmul.f32 %v6045_v58, %v1327_v11  ;;  %v1288_v14 = vpop.f32.mrb[34].mxu0  ;;  %v1329_v21 = vpop.f32.mrb[34].mxu1 }
 0x19f   :  { %v1359_v22 = vadd.f32 %v1355_v61, %v1212_v45  ;;  %v1361_v23 = vadd.f32 %v1357_v62, %v1214_v46  ;;  %v1289_v24 = vpop.f32.mrb[35].mxu0  ;;  %v1330_v25 = vpop.f32.mrb[35].mxu1 }
 0x1a0   :  { %v1360_v32 = vadd.f32 %v1356_v12, %v1213_v53  ;;  %v1362_v6 = vadd.f32 %v1358_v13, %v1215_v54 }
 0x1a2   :  { %v1364_v33 = vadd.f32 %v1360_v32, %v1359_v22 }
 0x1a4   :  { %v1365_v34 = vadd.f32 %v1364_v33, %v1361_v23 }
 0x1a6   :  { %v1366_v43 = vadd.f32 %v1365_v34, %v1362_v6 }
 0x1a8   :  { %1367 = vadd.xlane.f32.xlu0 %v1366_v43 }
 0x1be   :  { %1393 = vperm.xlu0 %5236, %v1363_v44  }
 0x235   :  { %v1368_v52 = vpop.xlane.xlu0 %1367 }
 0x236   :  { %v1370_v59 = vmul.f32 0.001953125, %v1368_v52 }
 0x238   :  { %v1371_v45 = vsub.f32 %v1359_v22, %v1370_v59  ;;  %v1372_v46 = vsub.f32 %v1360_v32, %v1370_v59  ;;  %v1373_v60 = vsub.f32 %v1361_v23, %v1370_v59  ;;  %v1374_v61 = vsub.f32 %v1362_v6, %v1370_v59 }
 0x23a   :  { %v1375_v53 = vmul.f32 %v1371_v45, %v1371_v45  ;;  %v1376_v54 = vmul.f32 %v1372_v46, %v1372_v46  ;;  %v1377_v62 = vmul.f32 %v1373_v60, %v1373_v60  ;;  %v1378_v11 = vmul.f32 %v1374_v61, %v1374_v61 }
 0x23c   :  { %v1379_v63 = vadd.f32 %v1376_v54, %v1375_v53 }
 0x23d   :  { %v1394_v22 = vpop.permute.xlu0 %1393 }
 0x23e   :  { %v1380_v12 = vadd.f32 %v1379_v63, %v1377_v62 }
 0x240   :  { %v1381_v13 = vadd.f32 %v1380_v12, %v1378_v11 }
 0x242   :  { %1382 = vadd.xlane.f32.xlu1 %v1381_v13 }
 0x253   :  { %1401 = vperm.xlu1 %5237, %v1363_v44  }
 0x257   :  { %5318 = vset.pattern.permute.xlu1 %v7290_v3 }
 0x2cf   :  { %v1383_v14 = vpop.xlane.xlu1 %1382 }
 0x2d0   :  { %v1384_v21 = vmul.f32 0.001953125, %v1383_v14 }
 0x2d2   :  { %v1385_v24 = vadd.f32 1e-05, %v1384_v21 }
 0x2d3   :  { %v1402_v34 = vpop.permute.xlu1 %1401 }
 0x2d4   :  { %5400 = vrsqrt.f32 %v1385_v24 }
 0x2de   :  { %v5401_v25 = vpop.eup %5400 }
 0x2df   :  { %v1387_v32 = vmul.f32 %v5401_v25, %v1371_v45  ;;  %v1388_v23 = vmul.f32 %v5401_v25, %v1372_v46  ;;  %v1389_v6 = vmul.f32 %v5401_v25, %v1373_v60  ;;  %v1390_v33 = vmul.f32 %v5401_v25, %v1374_v61 }
 0x2e1   :  { %v1396_v43 = vmul.f32 %v1394_v22, %v1387_v32  ;;  %v1397_v52 = vmul.f32 %v1394_v22, %v1388_v23  ;;  %v1398_v59 = vmul.f32 %v1394_v22, %v1389_v6  ;;  %v1399_v53 = vmul.f32 %v1394_v22, %v1390_v33 }
 0x2e3   :  { %v1404_v54 = vadd.f32 %v1402_v34, %v1396_v43  ;;  %v1405_v62 = vadd.f32 %v1402_v34, %v1397_v52  ;;  %v1406_v44 = vadd.f32 %v1402_v34, %v1398_v59  ;;  %v1407_v63 = vadd.f32 %v1402_v34, %v1399_v53 }
 0x2e5   :  { %vm1408_vm10 = vcmp.gt.f32.partialorder %v1404_v54, 0.0  ;;  %vm1409_vm11 = vcmp.gt.f32.partialorder %v1405_v62, 0.0  ;;  %v1412_v11 = vmul.f32 0.1, %v1404_v54  ;;  %v1413_v12 = vmul.f32 0.1, %v1405_v62 }
 0x2e6   :  { %v1414_v13 = vmul.f32 0.1, %v1406_v44  ;;  %vm1410_vm12 = vcmp.gt.f32.partialorder %v1406_v44, 0.0  ;;  %vm1411_vm13 = vcmp.gt.f32.partialorder %v1407_v63, 0.0  ;;  %v1415_v45 = vmul.f32 0.1, %v1407_v63 }
 0x2e7   :  { %v6056_v46 = vsel %vm1408_vm10, %v1404_v54, %v1412_v11  ;;  %v6058_v60 = vsel %vm1409_vm11, %v1405_v62, %v1413_v12 }
 0x2e8   :  { %v5268_v61 = vpack.i.bf16 %v6058_v60, %v6056_v46  ;;  %v6062_v14 = vsel %vm1410_vm12, %v1406_v44, %v1414_v13  ;;  %v6064_v21 = vsel %vm1411_vm13, %v1407_v63, %v1415_v45 }
 0x2e9   :  { %v5243_v24 = vpack.i.bf16 %v6064_v21, %v6062_v14 }
 0x2ea   :  { %5269 = vrot.lane.b32.xlu0 %v5268_v61, %s5506_s29  ;;  %5239 = vrot.lane.b32.xlu1 %v5268_v61, %s5503_s2 }
 0x2ee   :  { %5279 = vrot.lane.b32.xlu0 %v5268_v61, %s5507_s3  ;;  %5244 = vrot.lane.b32.xlu1 %v5243_v24, %s5503_s2  ;;  %s5519_s2 = smov 120  }
 0x2f2   :  { %5289 = vrot.lane.b32.xlu0 %v5268_v61, %s5508_s0  ;;  %5249 = vrot.lane.b32.xlu1 %v5268_v61, %s5504_s7 }
 0x2f6   :  { %5299 = vrot.lane.b32.xlu0 %v5268_v61, %s5509_s4  ;;  %5254 = vrot.lane.b32.xlu1 %v5243_v24, %s5504_s7 }
 0x2fa   :  { %5309 = vrot.lane.b32.xlu0 %v5268_v61, %s5510_s30  ;;  %5259 = vrot.lane.b32.xlu1 %v5268_v61, %s5505_s28 }
 0x2fe   :  { %5264 = vrot.lane.b32.xlu1 %v5243_v24, %s5505_s28  ;;  %s7312_s28 = sld [smem:[#allocation8_spill]] }
 0x302   :  { %5274 = vrot.lane.b32.xlu1 %v5243_v24, %s5506_s29 }
 0x304   :  { %v5376_v61 = vld [vmem:[%s7312_s28] sm:$0xff]  }
 0x306   :  { %5284 = vrot.lane.b32.xlu1 %v5243_v24, %s5507_s3 }
 0x30a   :  { %5294 = vrot.lane.b32.xlu1 %v5243_v24, %s5508_s0  ;;  %s7317_s0 = sld [smem:[#allocation11_spill]] }
 0x30e   :  { %5304 = vrot.lane.b32.xlu1 %v5243_v24, %s5509_s4  ;;  %s7314_s4 = sld [smem:[#allocation10_spill]] }
 0x312   :  { %5314 = vrot.lane.b32.xlu1 %v5243_v24, %s5510_s30 }
 0x35c   :  { %v5240_v25 = vpop.permute.xlu1 %5239 }
 0x35d   :  { %v5242_v22 = vunpack.i.h.bf16 %v5240_v25  ;;  %v5241_v32 = vunpack.i.l.bf16 %v5240_v25 }
 0x35f   :  { %v1430_v23 = vsel %vm88_vm0, %v5241_v32, %v5242_v22 }
 0x360   :  { %v1435_v6 = vpack.c.bf16 %v1430_v23, %v1430_v23  ;;  %v5245_v33 = vpop.permute.xlu1 %5244 }
 0x361   :  { %v5247_v34 = vunpack.i.h.bf16 %v5245_v33  ;;  %v5246_v43 = vunpack.i.l.bf16 %v5245_v33 }
 0x362   :  { %4733 = vmatprep.subr.msk.bf16.mxu0 %vm102_vm1, %v1435_v6  ;;  %v5270_v6 = vpop.permute.xlu0 %5269 }
 0x363   :  { %v1428_v52 = vsel %vm88_vm0, %v5246_v43, %v5247_v34  ;;  %v1431_v59 = vsel %vm88_vm0, %v5247_v34, %v5241_v32  ;;  %v1429_v53 = vsel %vm88_vm0, %v5242_v22, %v5246_v43 }
 0x364   :  { %v1437_v54 = vpack.c.bf16 %v1428_v52, %v1428_v52  ;;  %v5250_v62 = vpop.permute.xlu1 %5249  ;;  %v1434_v44 = vpack.c.bf16 %v1431_v59, %v1431_v59  ;;  %v1436_v63 = vpack.c.bf16 %v1429_v53, %v1429_v53 }
 0x365   :  { %v5252_v11 = vunpack.i.h.bf16 %v5250_v62  ;;  %v5251_v12 = vunpack.i.l.bf16 %v5250_v62 }
 0x366   :  { %4735 = vmatprep.subr.msk.bf16.mxu1 %vm102_vm1, %v1437_v54  ;;  %v1447_v13 = vsel %vm102_vm1, %v1434_v44, 0  ;;  %v1453_v45 = vsel %vm102_vm1, %v1436_v63, 0  ;;  %v5272_v63 = vunpack.i.h.bf16 %v5270_v6 }
 0x367   :  { %v1570_v24 = vsel %vm235_vm2, %v5251_v12, %v5252_v11  ;;  %1459 = vmatpush1.bf16.msra.mxu0 %v1447_v13  ;;  %1502 = vmatpush1.bf16.msra.mxu1 %v1453_v45  ;;  %v5271_v13 = vunpack.i.l.bf16 %v5270_v6 }
 0x368   :  { %v1576_v25 = vpack.c.bf16 %v1570_v24, %v1570_v24  ;;  %v5255_v22 = vpop.permute.xlu1 %5254 }
 0x369   :  { %v5257_v32 = vunpack.i.h.bf16 %v5255_v22  ;;  %v5256_v23 = vunpack.i.l.bf16 %v5255_v22 }
 0x36a   :  { %4734 = vmatmul.mubr.msk.bf16.vlgmr.msra.gmra.mrb[36].mxu0 %vm98_vm3, %v5376_v61  ;;  %4736 = vmatmul.mubr.msk.bf16.vlgmr.msra.gmra.mrb[36].mxu1 %vm98_vm3, %v5376_v61 }
 0x36b   :  { %v1568_v33 = vsel %vm235_vm2, %v5256_v23, %v5257_v32  ;;  %4740 = vmatprep.subr.msk.bf16.mxu0 %vm102_vm1, %v1576_v25  ;;  %v1571_v34 = vsel %vm235_vm2, %v5257_v32, %v5251_v12  ;;  %v1569_v43 = vsel %vm235_vm2, %v5252_v11, %v5256_v23  ;;  %1631 = vmatprep.mubr.bf16.mxu0 %v7290_v3  ;;  %v5377_v11 = vld [vmem:[%s7312_s28 + $0x8] sm:$0xff]   ;;  %vm2947_vm2 = vcmask 130048  }
 0x36c   :  { %v1578_v52 = vpack.c.bf16 %v1568_v33, %v1568_v33  ;;  %v5260_v59 = vpop.permute.xlu1 %5259  ;;  %v1575_v53 = vpack.c.bf16 %v1571_v34, %v1571_v34  ;;  %v1577_v54 = vpack.c.bf16 %v1569_v43, %v1569_v43  ;;  %1674 = vmatprep.mubr.bf16.mxu1 %v7290_v3  ;;  %v1852_v23 = vsel %vm529_vm5, %v5271_v13, %v5272_v63 }
 0x36d   :  { %v5262_v62 = vunpack.i.h.bf16 %v5260_v59  ;;  %v5261_v44 = vunpack.i.l.bf16 %v5260_v59 }
 0x36e   :  { %4742 = vmatprep.subr.msk.bf16.mxu1 %vm102_vm1, %v1578_v52  ;;  %v1588_v45 = vsel %vm102_vm1, %v1575_v53, 0  ;;  %v1594_v12 = vsel %vm102_vm1, %v1577_v54, 0 }
 0x36f   :  { %v1711_v61 = vsel %vm382_vm4, %v5261_v44, %v5262_v62  ;;  %1600 = vmatpush1.bf16.msra.mxu0 %v1588_v45  ;;  %1643 = vmatpush1.bf16.msra.mxu1 %v1594_v12  ;;  %v1858_v12 = vpack.c.bf16 %v1852_v23, %v1852_v23 }
 0x370   :  { %v1717_v24 = vpack.c.bf16 %v1711_v61, %v1711_v61  ;;  %v5265_v25 = vpop.permute.xlu1 %5264 }
 0x371   :  { %v5267_v22 = vunpack.i.h.bf16 %v5265_v25  ;;  %v5266_v32 = vunpack.i.l.bf16 %v5265_v25 }
 0x372   :  { %4741 = vmatmul.mubr.msk.bf16.vlgmr.msra.gmra.mrb[40].mxu0 %vm98_vm3, %v5377_v11  ;;  %4743 = vmatmul.mubr.msk.bf16.vlgmr.msra.gmra.mrb[40].mxu1 %vm98_vm3, %v5377_v11 }
 0x373   :  { %v1709_v6 = vsel %vm382_vm4, %v5266_v32, %v5267_v22  ;;  %4747 = vmatprep.subr.msk.bf16.mxu0 %vm102_vm1, %v1717_v24  ;;  %v1712_v33 = vsel %vm382_vm4, %v5267_v22, %v5261_v44  ;;  %v1710_v34 = vsel %vm382_vm4, %v5262_v62, %v5266_v32  ;;  %1772 = vmatprep.mubr.bf16.mxu0 %v7290_v3  ;;  %v5378_v62 = vld [vmem:[%s7312_s28 + $0x10] sm:$0xff]  }
 0x374   :  { %v1719_v43 = vpack.c.bf16 %v1709_v6, %v1709_v6  ;;  %v5275_v52 = vpop.permute.xlu1 %5274  ;;  %v1716_v59 = vpack.c.bf16 %v1712_v33, %v1712_v33  ;;  %v1718_v53 = vpack.c.bf16 %v1710_v34, %v1710_v34  ;;  %1815 = vmatprep.mubr.bf16.mxu1 %v7290_v3  ;;  %v5280_v33 = vpop.permute.xlu0 %5279 }
 0x375   :  { %v5277_v54 = vunpack.i.h.bf16 %v5275_v52  ;;  %v5276_v45 = vunpack.i.l.bf16 %v5275_v52 }
 0x376   :  { %4749 = vmatprep.subr.msk.bf16.mxu1 %vm102_vm1, %v1719_v43  ;;  %v1729_v11 = vsel %vm102_vm1, %v1716_v59, 0  ;;  %v1735_v44 = vsel %vm102_vm1, %v1718_v53, 0  ;;  %v6157_v59 = vpack.c.bf16 %v6064_v21, %v6064_v21  ;;  %v5282_v53 = vunpack.i.h.bf16 %v5280_v33 }
 0x377   :  { %v1850_v61 = vsel %vm529_vm5, %v5276_v45, %v5277_v54  ;;  %1741 = vmatpush1.bf16.msra.mxu0 %v1729_v11  ;;  %1784 = vmatpush1.bf16.msra.mxu1 %v1735_v44  ;;  %v1853_v24 = vsel %vm529_vm5, %v5277_v54, %v5271_v13  ;;  %v1851_v25 = vsel %vm529_vm5, %v5272_v63, %v5276_v45  ;;  %v5281_v54 = vunpack.i.l.bf16 %v5280_v33 }
 0x378   :  { %v1860_v22 = vpack.c.bf16 %v1850_v61, %v1850_v61  ;;  %v5285_v32 = vpop.permute.xlu1 %5284  ;;  %4754 = vmatprep.subr.msk.bf16.mxu0 %vm102_vm1, %v1858_v12  ;;  %v1857_v23 = vpack.c.bf16 %v1853_v24, %v1853_v24  ;;  %v1859_v6 = vpack.c.bf16 %v1851_v25, %v1851_v25  ;;  %v6152_v13 = vpack.c.bf16 %v6058_v60, %v6058_v60  ;;  %v5379_v60 = vld [vmem:[%s7312_s28 + $0x18] sm:$0xff]  }
 0x379   :  { %v5287_v63 = vunpack.i.h.bf16 %v5285_v32  ;;  %v5286_v52 = vunpack.i.l.bf16 %v5285_v32  ;;  %v1986_v21 = vpack.c.bf16 %v6056_v46, %v6056_v46  ;;  %v1988_v45 = vpack.c.bf16 %v6062_v14, %v6062_v14 }
 0x37a   :  { %4748 = vmatmul.mubr.msk.bf16.vlgmr.msra.gmra.mrb[44].mxu0 %vm98_vm3, %v5378_v62  ;;  %4750 = vmatmul.mubr.msk.bf16.vlgmr.msra.gmra.mrb[44].mxu1 %vm98_vm3, %v5378_v62  ;;  %v1870_v34 = vsel %vm102_vm1, %v1857_v23, 0  ;;  %v1876_v43 = vsel %vm102_vm1, %v1859_v6, 0  ;;  %v5290_v62 = vpop.permute.xlu0 %5289  ;;  %v2114_v32 = vsel %vm783_vm6, %v5281_v54, %v5282_v53 }
 0x37b   :  { %4756 = vmatprep.subr.msk.bf16.mxu1 %vm102_vm1, %v1860_v22  ;;  %1882 = vmatpush1.bf16.msra.mxu0 %v1870_v34  ;;  %v2115_v12 = vsel %vm783_vm6, %v5287_v63, %v5281_v54  ;;  %v2113_v11 = vsel %vm783_vm6, %v5282_v53, %v5286_v52  ;;  %v6179_v25 = vsel %vm102_vm1, %v1986_v21, 0  ;;  %v6182_v46 = vsel %vm102_vm1, %v1988_v45, 0  ;;  %v5380_v34 = vld [vmem:[%s7312_s28 + $0x20] sm:$0xff]  }
 0x37c   :  { %1925 = vmatpush1.bf16.msra.mxu1 %v1876_v43  ;;  %4761 = vmatprep.subr.msk.bf16.mxu0 %vm102_vm1, %v6152_v13  ;;  %v5295_v44 = vpop.permute.xlu1 %5294  ;;  %v2122_v61 = vpack.c.bf16 %v2115_v12, %v2115_v12  ;;  %v2120_v24 = vpack.c.bf16 %v2113_v11, %v2113_v11  ;;  %v2112_v23 = vsel %vm783_vm6, %v5286_v52, %v5287_v63  ;;  %v5292_v6 = vunpack.i.h.bf16 %v5290_v62 }
 0x37d   :  { %4763 = vmatprep.subr.msk.bf16.mxu1 %vm102_vm1, %v6157_v59  ;;  %1913 = vmatprep.mubr.bf16.mxu0 %v7290_v3  ;;  %v5297_v14 = vunpack.i.h.bf16 %v5295_v44  ;;  %v5296_v22 = vunpack.i.l.bf16 %v5295_v44  ;;  %v5291_v33 = vunpack.i.l.bf16 %v5290_v62  ;;  %v2119_v43 = vpack.c.bf16 %v2114_v32, %v2114_v32 }
 0x37e   :  { %1956 = vmatprep.mubr.bf16.mxu1 %v7290_v3  ;;  %v5300_v54 = vpop.permute.xlu0 %5299 }
 0x37f   :  { %v2256_v53 = vsel %vm930_vm7, %v5297_v14, %v5291_v33  ;;  %v2254_v63 = vsel %vm930_vm7, %v5292_v6, %v5296_v22  ;;  %v2132_v12 = vsel %vm102_vm1, %v2119_v43, 0  ;;  %v5302_v32 = vunpack.i.h.bf16 %v5300_v54 }
 0x380   :  { %v5305_v52 = vpop.permute.xlu1 %5304  ;;  %v2263_v21 = vpack.c.bf16 %v2256_v53, %v2256_v53  ;;  %v2261_v45 = vpack.c.bf16 %v2254_v63, %v2254_v63 }
 0x381   :  { %v5307_v44 = vunpack.i.h.bf16 %v5305_v52  ;;  %v5306_v62 = vunpack.i.l.bf16 %v5305_v52 }
 0x382   :  { %4755 = vmatmul.mubr.msk.bf16.vlgmr.msra.gmra.mrb[48].mxu0 %vm98_vm3, %v5379_v60  ;;  %4757 = vmatmul.mubr.msk.bf16.vlgmr.msra.gmra.mrb[48].mxu1 %vm98_vm3, %v5379_v60  ;;  %v2121_v60 = vpack.c.bf16 %v2112_v23, %v2112_v23  ;;  %v5301_v23 = vunpack.i.l.bf16 %v5300_v54 }
 0x383   :  { %2011 = vmatpush1.bf16.msra.mxu0 %v6179_v25  ;;  %2054 = vmatpush1.bf16.msra.mxu1 %v6182_v46 }
 0x384   :  { %4768 = vmatprep.subr.msk.bf16.mxu0 %vm102_vm1, %v2120_v24  ;;  %4770 = vmatprep.subr.msk.bf16.mxu1 %vm102_vm1, %v2122_v61  ;;  %v2138_v11 = vsel %vm102_vm1, %v2121_v60, 0  ;;  %v2255_v61 = vsel %vm930_vm7, %v5291_v33, %v5292_v6  ;;  %v2253_v24 = vsel %vm930_vm7, %v5296_v22, %v5297_v14  ;;  %v2397_v6 = vsel %vm1077_vm8, %v5307_v44, %v5301_v23  ;;  %v5315_v22 = vpop.permute.xlu1 %5314  ;;  %v5310_v33 = vpop.permute.xlu0 %5309 }
 0x385   :  { %2042 = vmatprep.mubr.bf16.mxu0 %v7290_v3  ;;  %2085 = vmatprep.mubr.bf16.mxu1 %v7290_v3  ;;  %v2260_v43 = vpack.c.bf16 %v2255_v61, %v2255_v61  ;;  %v2262_v60 = vpack.c.bf16 %v2253_v24, %v2253_v24  ;;  %v2395_v14 = vsel %vm1077_vm8, %v5302_v32, %v5306_v62  ;;  %v5312_v61 = vunpack.i.h.bf16 %v5310_v33 }
 0x386   :  { %v2404_v53 = vpack.c.bf16 %v2397_v6, %v2397_v6  ;;  %v2402_v63 = vpack.c.bf16 %v2395_v14, %v2395_v14  ;;  %v5311_v24 = vunpack.i.l.bf16 %v5310_v33 }
 0x387   :  { %v2273_v52 = vsel %vm102_vm1, %v2260_v43, 0  ;;  %v2279_v54 = vsel %vm102_vm1, %v2262_v60, 0 }
 0x38a   :  { %4762 = vmatmul.mubr.msk.bf16.vlgmr.msra.gmra.mrb[52].mxu0 %vm98_vm3, %v5380_v34  ;;  %4764 = vmatmul.mubr.msk.bf16.vlgmr.msra.gmra.mrb[52].mxu1 %vm98_vm3, %v5380_v34  ;;  %v5381_v34 = vld [vmem:[%s7312_s28 + $0x28] sm:$0xff]  }
 0x38b   :  { %2144 = vmatpush1.bf16.msra.mxu0 %v2132_v12  ;;  %2187 = vmatpush1.bf16.msra.mxu1 %v2138_v11  ;;  %v2396_v12 = vsel %vm1077_vm8, %v5301_v23, %v5302_v32  ;;  %v2394_v11 = vsel %vm1077_vm8, %v5306_v62, %v5307_v44 }
 0x38c   :  { %4775 = vmatprep.subr.msk.bf16.mxu0 %vm102_vm1, %v2261_v45  ;;  %4777 = vmatprep.subr.msk.bf16.mxu1 %vm102_vm1, %v2263_v21  ;;  %v5317_v21 = vunpack.i.h.bf16 %v5315_v22  ;;  %v5316_v45 = vunpack.i.l.bf16 %v5315_v22  ;;  %v2401_v43 = vpack.c.bf16 %v2396_v12, %v2396_v12  ;;  %v2403_v60 = vpack.c.bf16 %v2394_v11, %v2394_v11  ;;  %v2685_v12 = vld [vmem:[%s7313_s26 + $0x88] sm:$0xff]  ;;  %v2716_v11 = vld [vmem:[%s7313_s26 + $0x180] sm:$0xff] }
 0x38d   :  { %2175 = vmatprep.mubr.bf16.mxu0 %v7290_v3  ;;  %2218 = vmatprep.mubr.bf16.mxu1 %v7290_v3  ;;  %v2537_v22 = vsel %vm1224_vm9, %v5311_v24, %v5312_v61 }
 0x38e   :  { %v2538_v32 = vsel %vm1224_vm9, %v5317_v21, %v5311_v24  ;;  %v2536_v44 = vsel %vm1224_vm9, %v5312_v61, %v5316_v45  ;;  %v2414_v6 = vsel %vm102_vm1, %v2401_v43, 0  ;;  %v2420_v14 = vsel %vm102_vm1, %v2403_v60, 0  ;;  %v2717_v24 = vld [vmem:[%s7313_s26 + $0x188] sm:$0xff]  ;;  %v2668_v43 = vld [vmem:[%s7313_s26] sm:$0xff] }
 0x38f   :  { %v2545_v62 = vpack.c.bf16 %v2538_v32, %v2538_v32  ;;  %v2543_v23 = vpack.c.bf16 %v2536_v44, %v2536_v44  ;;  %v2535_v33 = vsel %vm1224_vm9, %v5316_v45, %v5317_v21  ;;  %v5384_v21 = vld [vmem:[%s7312_s28 + $0x40] sm:$0xff]   ;;  %v2669_v60 = vld [vmem:[%s7313_s26 + $0x8] sm:$0xff] }
 0x390   :  { %v2684_v45 = vld [vmem:[%s7313_s26 + $0x80] sm:$0xff]  ;;  %v5041_v44 = vpack.c.bf16 %v2669_v60, %v2668_v43 }
 0x391   :  { %v5039_v61 = vpack.c.bf16 %v2685_v12, %v2684_v45  ;;  %v2700_v32 = vld [vmem:[%s7313_s26 + $0x100] sm:$0xff]  ;;  %v2703_v45 = vld [vmem:[%s7313_s26 + $0x118] sm:$0xff] }
 0x392   :  { %4769 = vmatmul.mubr.msk.bf16.vlgmr.msra.gmra.mrb[56].mxu0 %vm98_vm3, %v5381_v34  ;;  %4771 = vmatmul.mubr.msk.bf16.vlgmr.msra.gmra.mrb[56].mxu1 %vm98_vm3, %v5381_v34  ;;  %v5382_v34 = vld [vmem:[%s7312_s28 + $0x30] sm:$0xff]   ;;  %v2688_v12 = vld [vmem:[%s7313_s26 + $0xa0] sm:$0xff] }
 0x393   :  { %2285 = vmatpush1.bf16.msra.mxu0 %v2273_v52  ;;  %2328 = vmatpush1.bf16.msra.mxu1 %v2279_v54  ;;  %v2544_v52 = vpack.c.bf16 %v2535_v33, %v2535_v33 }
 0x394   :  { %4782 = vmatprep.subr.msk.bf16.mxu0 %vm102_vm1, %v2402_v63  ;;  %4784 = vmatprep.subr.msk.bf16.mxu1 %vm102_vm1, %v2404_v53  ;;  %v5383_v53 = vld [vmem:[%s7312_s28 + $0x38] sm:$0xff]   ;;  %v2542_v63 = vpack.c.bf16 %v2537_v22, %v2537_v22  ;;  %v2718_v22 = vld [vmem:[%s7313_s26 + $0x190] sm:$0xff] }
 0x395   :  { %2316 = vmatprep.mubr.bf16.mxu0 %v7290_v3  ;;  %2359 = vmatprep.mubr.bf16.mxu1 %v7290_v3  ;;  %v2561_v54 = vsel %vm102_vm1, %v2544_v52, 0  ;;  %v2671_v52 = vld [vmem:[%s7313_s26 + $0x18] sm:$0xff] }
 0x396   :  { %v2555_v7 = vsel %vm102_vm1, %v2542_v63, 0  ;;  %v2670_v63 = vld [vmem:[%s7313_s26 + $0x10] sm:$0xff] }
 0x39a   :  { %4776 = vmatmul.mubr.msk.bf16.vlgmr.msra.gmra.mrb[60].mxu0 %vm98_vm3, %v5382_v34  ;;  %4778 = vmatmul.mubr.msk.bf16.vlgmr.msra.gmra.mrb[60].mxu1 %vm98_vm3, %v5382_v34  ;;  %v5071_v34 = vpack.c.bf16 %v2717_v24, %v2716_v11  ;;  %v2720_v24 = vld [vmem:[%s7313_s26 + $0x1a0] sm:$0xff] }
 0x39b   :  { %2426 = vmatpush1.bf16.msra.mxu0 %v2414_v6  ;;  %2469 = vmatpush1.bf16.msra.mxu1 %v2420_v14  ;;  %v2686_v6 = vld [vmem:[%s7313_s26 + $0x90] sm:$0xff]  ;;  %v2687_v14 = vld [vmem:[%s7313_s26 + $0x98] sm:$0xff] }
 0x39c   :  { %4789 = vmatprep.subr.msk.bf16.mxu0 %vm102_vm1, %v2543_v23  ;;  %4791 = vmatprep.subr.msk.bf16.mxu1 %vm102_vm1, %v2545_v62  ;;  %v2701_v62 = vld [vmem:[%s7313_s26 + $0x108] sm:$0xff]  ;;  %v5043_v33 = vpack.c.bf16 %v2687_v14, %v2686_v6 }
 0x39d   :  { %2457 = vmatprep.mubr.bf16.mxu0 %v7290_v3  ;;  %2500 = vmatprep.mubr.bf16.mxu1 %v7290_v3  ;;  %v5073_v23 = vpack.c.bf16 %v2701_v62, %v2700_v32  ;;  %v2672_v32 = vld [vmem:[%s7313_s26 + $0x20] sm:$0xff]  ;;  %v2705_v6 = vld [vmem:[%s7313_s26 + $0x128] sm:$0xff] }
 0x39e   :  { %v2704_v62 = vld [vmem:[%s7313_s26 + $0x120] sm:$0xff] }
 0x39f   :  { %v5081_v14 = vpack.c.bf16 %v2705_v6, %v2704_v62  ;;  %v2676_v62 = vld [vmem:[%s7313_s26 + $0x40] sm:$0xff] }
 0x3a0   :  { %v2708_v6 = vld [vmem:[%s7313_s26 + $0x140] sm:$0xff] }
 0x3a2   :  { %4783 = vmatmul.mubr.msk.bf16.vlgmr.msra.gmra.mrb[64].mxu0 %vm98_vm3, %v5383_v53  ;;  %4785 = vmatmul.mubr.msk.bf16.vlgmr.msra.gmra.mrb[64].mxu1 %vm98_vm3, %v5383_v53  ;;  %v2719_v53 = vld [vmem:[%s7313_s26 + $0x198] sm:$0xff] }
 0x3a3   :  { %2567 = vmatpush1.bf16.msra.mxu0 %v2555_v7  ;;  %2610 = vmatpush1.bf16.msra.mxu1 %v2561_v54  ;;  %v5075_v7 = vpack.c.bf16 %v2719_v53, %v2718_v22  ;;  %v5045_v54 = vpack.c.bf16 %v2671_v52, %v2670_v63  ;;  %v2690_v22 = vld [vmem:[%s7313_s26 + $0xb0] sm:$0xff]  ;;  %v2723_v52 = vld [vmem:[%s7313_s26 + $0x1b8] sm:$0xff] }
 0x3a4   :  { %2598 = vmatprep.mubr.bf16.mxu0 %v7290_v3  ;;  %2641 = vmatprep.mubr.bf16.mxu1 %v7290_v3  ;;  %v2722_v53 = vld [vmem:[%s7313_s26 + $0x1b0] sm:$0xff] }
 0x3a5   :  { %5040 = vmatprep.subr.bf16.mxu0 %v5039_v61  ;;  %5072 = vmatprep.subr.bf16.mxu1 %v5071_v34  ;;  %v2689_v61 = vld [vmem:[%s7313_s26 + $0xa8] sm:$0xff] }
 0x3a6   :  { %v2721_v34 = vld [vmem:[%s7313_s26 + $0x1a8] sm:$0xff]  ;;  %v5047_v43 = vpack.c.bf16 %v2689_v61, %v2688_v12  ;;  %v2706_v12 = vld [vmem:[%s7313_s26 + $0x130] sm:$0xff]  ;;  %v2692_v61 = vld [vmem:[%s7313_s26 + $0xc0] sm:$0xff] }
 0x3a7   :  { %v5079_v60 = vpack.c.bf16 %v2721_v34, %v2720_v24  ;;  %v2693_v34 = vld [vmem:[%s7313_s26 + $0xc8] sm:$0xff] }
 0x3aa   :  { %4790 = vmatmul.mubr.msk.bf16.vlgmr.msra.gmra.mrb[68].mxu0 %vm98_vm3, %v5384_v21  ;;  %4792 = vmatmul.mubr.msk.bf16.vlgmr.msra.gmra.mrb[68].mxu1 %vm98_vm3, %v5384_v21  ;;  %v2702_v21 = vld [vmem:[%s7313_s26 + $0x110] sm:$0xff] }
 0x3ab   :  { %5042 = vmatpush3.bf16.msra.mxu0 %v5041_v44  ;;  %5074 = vmatpush3.bf16.msra.mxu1 %v5073_v23  ;;  %v5077_v11 = vpack.c.bf16 %v2703_v45, %v2702_v21  ;;  %v2673_v44 = vld [vmem:[%s7313_s26 + $0x28] sm:$0xff]  ;;  %v5083_v21 = vpack.c.bf16 %v2723_v52, %v2722_v53  ;;  %v2694_v53 = vld [vmem:[%s7313_s26 + $0xd0] sm:$0xff] }
 0x3ac   :  { %5044 = vmatprep.subr.bf16.mxu0 %v5043_v33  ;;  %5076 = vmatprep.subr.bf16.mxu1 %v5075_v7  ;;  %v5049_v23 = vpack.c.bf16 %v2673_v44, %v2672_v32  ;;  %v2691_v33 = vld [vmem:[%s7313_s26 + $0xb8] sm:$0xff]  ;;  %v2674_v7 = vld [vmem:[%s7313_s26 + $0x30] sm:$0xff]  ;;  %v5055_v32 = vpack.c.bf16 %v2693_v34, %v2692_v61  ;;  %v2696_v34 = vld [vmem:[%s7313_s26 + $0xe0] sm:$0xff] }
 0x3ad   :  { %v5051_v63 = vpack.c.bf16 %v2691_v33, %v2690_v22  ;;  %v2709_v22 = vld [vmem:[%s7313_s26 + $0x148] sm:$0xff]  ;;  %v2726_v52 = vld [vmem:[%s7313_s26 + $0x1d0] sm:$0xff] }
 0x3ae   :  { %v5089_v33 = vpack.c.bf16 %v2709_v22, %v2708_v6  ;;  %v2710_v61 = vld [vmem:[%s7313_s26 + $0x150] sm:$0xff]  ;;  %v2680_v6 = vld [vmem:[%s7313_s26 + $0x60] sm:$0xff] }
 0x3af   :  { %5046 = vmatpush3.bf16.msra.mxu0 %v5045_v54  ;;  %5078 = vmatpush3.bf16.msra.mxu1 %v5077_v11  ;;  %v2675_v54 = vld [vmem:[%s7313_s26 + $0x38] sm:$0xff]  ;;  %v2712_v22 = vld [vmem:[%s7313_s26 + $0x160] sm:$0xff] }
 0x3b0   :  { %5048 = vmatprep.subr.bf16.mxu0 %v5047_v43  ;;  %5080 = vmatprep.subr.bf16.mxu1 %v5079_v60  ;;  %v5053_v45 = vpack.c.bf16 %v2675_v54, %v2674_v7  ;;  %v2707_v11 = vld [vmem:[%s7313_s26 + $0x138] sm:$0xff]  ;;  %v2724_v43 = vld [vmem:[%s7313_s26 + $0x1c0] sm:$0xff]  ;;  %v2725_v60 = vld [vmem:[%s7313_s26 + $0x1c8] sm:$0xff] }
 0x3b1   :  { %v5085_v24 = vpack.c.bf16 %v2707_v11, %v2706_v12  ;;  %v5087_v44 = vpack.c.bf16 %v2725_v60, %v2724_v43  ;;  %v2727_v54 = vld [vmem:[%s7313_s26 + $0x1d8] sm:$0xff]  ;;  %v2697_v60 = vld [vmem:[%s7313_s26 + $0xe8] sm:$0xff] }
 0x3b2   :  { %v5091_v12 = vpack.c.bf16 %v2727_v54, %v2726_v52  ;;  %v2698_v52 = vld [vmem:[%s7313_s26 + $0xf0] sm:$0xff] }
 0x3b3   :  { %5050 = vmatpush3.bf16.msra.mxu0 %v5049_v23  ;;  %5082 = vmatpush3.bf16.msra.mxu1 %v5081_v14  ;;  %v2677_v23 = vld [vmem:[%s7313_s26 + $0x48] sm:$0xff]  ;;  %v2730_v54 = vld [vmem:[%s7313_s26 + $0x1f0] sm:$0xff] }
 0x3b4   :  { %5052 = vmatprep.subr.bf16.mxu0 %v5051_v63  ;;  %5084 = vmatprep.subr.bf16.mxu1 %v5083_v21  ;;  %v5057_v14 = vpack.c.bf16 %v2677_v23, %v2676_v62  ;;  %v2695_v63 = vld [vmem:[%s7313_s26 + $0xd8] sm:$0xff]  ;;  %v2678_v21 = vld [vmem:[%s7313_s26 + $0x50] sm:$0xff]  ;;  %v5063_v62 = vpack.c.bf16 %v2697_v60, %v2696_v34 }
 0x3b5   :  { %v5059_v7 = vpack.c.bf16 %v2695_v63, %v2694_v53  ;;  %v2713_v53 = vld [vmem:[%s7313_s26 + $0x168] sm:$0xff]  ;;  %v2714_v34 = vld [vmem:[%s7313_s26 + $0x170] sm:$0xff] }
 0x3b6   :  { %v5097_v63 = vpack.c.bf16 %v2713_v53, %v2712_v22 }
 0x3b7   :  { %5054 = vmatpush3.bf16.msra.mxu0 %v5053_v45  ;;  %5086 = vmatpush3.bf16.msra.mxu1 %v5085_v24  ;;  %v2679_v45 = vld [vmem:[%s7313_s26 + $0x58] sm:$0xff] }
 0x3b8   :  { %5056 = vmatprep.subr.bf16.mxu0 %v5055_v32  ;;  %5088 = vmatprep.subr.bf16.mxu1 %v5087_v44  ;;  %v5061_v11 = vpack.c.bf16 %v2679_v45, %v2678_v21  ;;  %v2711_v24 = vld [vmem:[%s7313_s26 + $0x158] sm:$0xff]  ;;  %v2728_v32 = vld [vmem:[%s7313_s26 + $0x1e0] sm:$0xff]  ;;  %v2729_v44 = vld [vmem:[%s7313_s26 + $0x1e8] sm:$0xff] }
 0x3b9   :  { %v5093_v43 = vpack.c.bf16 %v2711_v24, %v2710_v61  ;;  %v5095_v23 = vpack.c.bf16 %v2729_v44, %v2728_v32  ;;  %v2731_v45 = vld [vmem:[%s7313_s26 + $0x1f8] sm:$0xff] }
 0x3ba   :  { %v5099_v61 = vpack.c.bf16 %v2731_v45, %v2730_v54 }
 0x3bb   :  { %5058 = vmatpush3.bf16.msra.mxu0 %v5057_v14  ;;  %5090 = vmatpush3.bf16.msra.mxu1 %v5089_v33  ;;  %v2681_v14 = vld [vmem:[%s7313_s26 + $0x68] sm:$0xff] }
 0x3bc   :  { %5060 = vmatprep.subr.bf16.mxu0 %v5059_v7  ;;  %5092 = vmatprep.subr.bf16.mxu1 %v5091_v12  ;;  %v5065_v33 = vpack.c.bf16 %v2681_v14, %v2680_v6  ;;  %v2699_v7 = vld [vmem:[%s7313_s26 + $0xf8] sm:$0xff]  ;;  %v2682_v12 = vld [vmem:[%s7313_s26 + $0x70] sm:$0xff] }
 0x3bd   :  { %v5067_v21 = vpack.c.bf16 %v2699_v7, %v2698_v52 }
 0x3bf   :  { %5062 = vmatpush3.bf16.msra.mxu0 %v5061_v11  ;;  %5094 = vmatpush3.bf16.msra.mxu1 %v5093_v43  ;;  %v2683_v11 = vld [vmem:[%s7313_s26 + $0x78] sm:$0xff] }
 0x3c0   :  { %5064 = vmatprep.subr.bf16.mxu0 %v5063_v62  ;;  %5096 = vmatprep.subr.bf16.mxu1 %v5095_v23  ;;  %v5069_v24 = vpack.c.bf16 %v2683_v11, %v2682_v12  ;;  %v2715_v43 = vld [vmem:[%s7313_s26 + $0x178] sm:$0xff] }
 0x3c1   :  { %v5101_v60 = vpack.c.bf16 %v2715_v43, %v2714_v34 }
 0x3c3   :  { %5066 = vmatpush3.bf16.msra.mxu0 %v5065_v33  ;;  %5098 = vmatpush3.bf16.msra.mxu1 %v5097_v63 }
 0x3c4   :  { %5068 = vmatprep.subr.bf16.mxu0 %v5067_v21  ;;  %5100 = vmatprep.subr.bf16.mxu1 %v5099_v61 }
 0x3c7   :  { %5070 = vmatpush3.bf16.msra.mxu0 %v5069_v24  ;;  %5102 = vmatpush3.bf16.msra.mxu1 %v5101_v60 }
 0x43d   :  { %v1492_v32 = vpop.f32.mrb[36].mxu0  ;;  %v1535_v44 = vpop.f32.mrb[36].mxu1 }
 0x43e   :  { %v1494_v62 = vpop.f32.mrb[37].mxu0  ;;  %v1537_v23 = vpop.f32.mrb[37].mxu1  ;;  %v1544_v53 = vmul.f32 %v1492_v32, %v5906_v35  ;;  %v1546_v63 = vmul.f32 %v1535_v44, %v5909_v36 }
 0x43f   :  { %v1496_v6 = vpop.f32.mrb[38].mxu0  ;;  %v1539_v14 = vpop.f32.mrb[38].mxu1  ;;  %v1545_v52 = vmul.f32 %v1494_v62, %v5918_v39  ;;  %v1547_v7 = vmul.f32 %v1537_v23, %v5921_v40 }
 0x440   :  { %v1498_v22 = vpop.f32.mrb[39].mxu0  ;;  %v1541_v33 = vpop.f32.mrb[39].mxu1  ;;  %v1548_v45 = vmul.f32 %v1496_v6, %v5906_v35  ;;  %v1550_v12 = vmul.f32 %v1539_v14, %v5909_v36 }
 0x441   :  { %v1549_v43 = vmul.f32 %v1498_v22, %v5918_v39  ;;  %v1551_v60 = vmul.f32 %v1541_v33, %v5921_v40 }
 0x445   :  { %v1633_v54 = vpop.f32.mrb[40].mxu0  ;;  %v1676_v21 = vpop.f32.mrb[40].mxu1 }
 0x446   :  { %v1685_v11 = vmul.f32 %v1633_v54, %v5912_v37  ;;  %v1687_v61 = vmul.f32 %v1676_v21, %v5915_v38  ;;  %v1635_v24 = vpop.f32.mrb[41].mxu0  ;;  %v1678_v34 = vpop.f32.mrb[41].mxu1 }
 0x447   :  { %v1686_v32 = vmul.f32 %v1635_v24, %v5924_v41  ;;  %v1688_v44 = vmul.f32 %v1678_v34, %v5927_v42  ;;  %v1637_v62 = vpop.f32.mrb[42].mxu0  ;;  %v1680_v23 = vpop.f32.mrb[42].mxu1 }
 0x448   :  { %v1693_v3 = vadd.f32 %v1685_v11, %v1544_v53  ;;  %v1695_v35 = vadd.f32 %v1687_v61, %v1546_v63  ;;  %v1689_v36 = vmul.f32 %v1637_v62, %v5912_v37  ;;  %v1691_v6 = vmul.f32 %v1680_v23, %v5915_v38  ;;  %v1639_v14 = vpop.f32.mrb[43].mxu0  ;;  %v1682_v54 = vpop.f32.mrb[43].mxu1 }
 0x449   :  { %v1694_v21 = vadd.f32 %v1686_v32, %v1545_v52  ;;  %v1696_v51 = vadd.f32 %v1688_v44, %v1547_v7  ;;  %v1690_v39 = vmul.f32 %v1639_v14, %v5924_v41  ;;  %v1692_v40 = vmul.f32 %v1682_v54, %v5927_v42 }
 0x44a   :  { %v1697_v22 = vadd.f32 %v1689_v36, %v1548_v45  ;;  %v1699_v33 = vadd.f32 %v1691_v6, %v1550_v12 }
 0x44b   :  { %v1698_v24 = vadd.f32 %v1690_v39, %v1549_v43  ;;  %v1700_v34 = vadd.f32 %v1692_v40, %v1551_v60 }
 0x44d   :  { %v1774_v30 = vpop.f32.mrb[44].mxu0  ;;  %v1817_v26 = vpop.f32.mrb[44].mxu1 }
 0x44e   :  { %v1826_v53 = vmul.f32 %v1774_v30, %v5941_v4  ;;  %v1828_v37 = vmul.f32 %v1817_v26, %v5944_v8  ;;  %v1776_v63 = vpop.f32.mrb[45].mxu0  ;;  %v1819_v38 = vpop.f32.mrb[45].mxu1 }
 0x44f   :  { %v1827_v11 = vmul.f32 %v1776_v63, %v5947_v9  ;;  %v1829_v52 = vmul.f32 %v1819_v38, %v5950_v10  ;;  %v1778_v7 = vpop.f32.mrb[46].mxu0  ;;  %v1821_v41 = vpop.f32.mrb[46].mxu1 }
 0x450   :  { %v1834_v61 = vadd.f32 %v1826_v53, %v1693_v3  ;;  %v1836_v42 = vadd.f32 %v1828_v37, %v1695_v35  ;;  %v1830_v45 = vmul.f32 %v1778_v7, %v5941_v4  ;;  %v1832_v12 = vmul.f32 %v1821_v41, %v5944_v8  ;;  %v1780_v43 = vpop.f32.mrb[47].mxu0  ;;  %v1823_v60 = vpop.f32.mrb[47].mxu1 }
 0x451   :  { %v1835_v32 = vadd.f32 %v1827_v11, %v1694_v21  ;;  %v1837_v30 = vadd.f32 %v1829_v52, %v1696_v51  ;;  %v1831_v26 = vmul.f32 %v1780_v43, %v5947_v9  ;;  %v1833_v44 = vmul.f32 %v1823_v60, %v5950_v10 }
 0x452   :  { %v1838_v62 = vadd.f32 %v1830_v45, %v1697_v22  ;;  %v1840_v23 = vadd.f32 %v1832_v12, %v1699_v33 }
 0x453   :  { %v1839_v36 = vadd.f32 %v1831_v26, %v1698_v24  ;;  %v1841_v6 = vadd.f32 %v1833_v44, %v1700_v34 }
 0x455   :  { %v1915_v14 = vpop.f32.mrb[48].mxu0  ;;  %v1958_v54 = vpop.f32.mrb[48].mxu1 }
 0x456   :  { %v1967_v3 = vmul.f32 %v1915_v14, %v5960_v0  ;;  %v1969_v4 = vmul.f32 %v1958_v54, %v5963_v27  ;;  %v1917_v35 = vpop.f32.mrb[49].mxu0  ;;  %v1960_v8 = vpop.f32.mrb[49].mxu1 }
 0x457   :  { %v1968_v39 = vmul.f32 %v1917_v35, %v5966_v29  ;;  %v1970_v51 = vmul.f32 %v1960_v8, %v5969_v31  ;;  %v1919_v21 = vpop.f32.mrb[50].mxu0  ;;  %v1962_v9 = vpop.f32.mrb[50].mxu1 }
 0x458   :  { %v1971_v10 = vmul.f32 %v1919_v21, %v5960_v0  ;;  %v1973_v40 = vmul.f32 %v1962_v9, %v5963_v27  ;;  %v1921_v22 = vpop.f32.mrb[51].mxu0  ;;  %v1964_v33 = vpop.f32.mrb[51].mxu1  ;;  %v1975_v24 = vadd.f32 %v1967_v3, %v1834_v61  ;;  %v1977_v34 = vadd.f32 %v1969_v4, %v1836_v42 }
 0x459   :  { %v1972_v53 = vmul.f32 %v1921_v22, %v5966_v29  ;;  %v1974_v37 = vmul.f32 %v1964_v33, %v5969_v31  ;;  %v1976_v63 = vadd.f32 %v1968_v39, %v1835_v32  ;;  %v1978_v38 = vadd.f32 %v1970_v51, %v1837_v30 }
 0x45a   :  { %v1979_v11 = vadd.f32 %v1971_v10, %v1838_v62  ;;  %v1981_v52 = vadd.f32 %v1973_v40, %v1840_v23 }
 0x45b   :  { %v1980_v7 = vadd.f32 %v1972_v53, %v1839_v36  ;;  %v1982_v41 = vadd.f32 %v1974_v37, %v1841_v6 }
 0x45d   :  { %v2044_v45 = vpop.f32.mrb[52].mxu0  ;;  %v2087_v12 = vpop.f32.mrb[52].mxu1 }
 0x45e   :  { %v2096_v43 = vadd.f32 %v2044_v45, %v1975_v24  ;;  %v2098_v0 = vadd.f32 %v2087_v12, %v1977_v34  ;;  %v2046_v60 = vpop.f32.mrb[53].mxu0  ;;  %v2089_v27 = vpop.f32.mrb[53].mxu1 }
 0x45f   :  { %v2097_v26 = vadd.f32 %v2046_v60, %v1976_v63  ;;  %v2099_v44 = vadd.f32 %v2089_v27, %v1978_v38  ;;  %v2048_v61 = vpop.f32.mrb[54].mxu0  ;;  %v2091_v42 = vpop.f32.mrb[54].mxu1 }
 0x460   :  { %v2100_v14 = vadd.f32 %v2048_v61, %v1979_v11  ;;  %v2102_v29 = vadd.f32 %v2091_v42, %v1981_v52  ;;  %v2050_v54 = vpop.f32.mrb[55].mxu0  ;;  %v2093_v31 = vpop.f32.mrb[55].mxu1 }
 0x461   :  { %v2101_v32 = vadd.f32 %v2050_v54, %v1980_v7  ;;  %v2103_v30 = vadd.f32 %v2093_v31, %v1982_v41 }
 0x465   :  { %v2177_v62 = vpop.f32.mrb[56].mxu0  ;;  %v2220_v23 = vpop.f32.mrb[56].mxu1 }
 0x466   :  { %v2229_v36 = vmul.f32 %v2177_v62, %v5979_v15  ;;  %v2231_v6 = vmul.f32 %v2220_v23, %v5982_v16  ;;  %v2179_v3 = vpop.f32.mrb[57].mxu0  ;;  %v2222_v4 = vpop.f32.mrb[57].mxu1 }
 0x467   :  { %v2230_v35 = vmul.f32 %v2179_v3, %v5985_v17  ;;  %v2232_v8 = vmul.f32 %v2222_v4, %v5988_v18  ;;  %v2181_v39 = vpop.f32.mrb[58].mxu0  ;;  %v2224_v51 = vpop.f32.mrb[58].mxu1 }
 0x468   :  { %v2237_v21 = vadd.f32 %v2229_v36, %v2096_v43  ;;  %v2239_v9 = vadd.f32 %v2231_v6, %v2098_v0  ;;  %v2233_v10 = vmul.f32 %v2181_v39, %v5979_v15  ;;  %v2235_v40 = vmul.f32 %v2224_v51, %v5982_v16  ;;  %v2183_v22 = vpop.f32.mrb[59].mxu0  ;;  %v2226_v33 = vpop.f32.mrb[59].mxu1 }
 0x469   :  { %v2238_v24 = vadd.f32 %v2230_v35, %v2097_v26  ;;  %v2240_v34 = vadd.f32 %v2232_v8, %v2099_v44  ;;  %v2234_v53 = vmul.f32 %v2183_v22, %v5985_v17  ;;  %v2236_v37 = vmul.f32 %v2226_v33, %v5988_v18 }
 0x46a   :  { %v2241_v63 = vadd.f32 %v2233_v10, %v2100_v14  ;;  %v2243_v38 = vadd.f32 %v2235_v40, %v2102_v29 }
 0x46b   :  { %v2242_v11 = vadd.f32 %v2234_v53, %v2101_v32  ;;  %v2244_v52 = vadd.f32 %v2236_v37, %v2103_v30 }
 0x46d   :  { %v2318_v7 = vpop.f32.mrb[60].mxu0  ;;  %v2361_v41 = vpop.f32.mrb[60].mxu1 }
 0x46e   :  { %v2370_v45 = vmul.f32 %v2318_v7, %v5998_v47  ;;  %v2372_v15 = vmul.f32 %v2361_v41, %v6001_v48  ;;  %v2320_v12 = vpop.f32.mrb[61].mxu0  ;;  %v2363_v16 = vpop.f32.mrb[61].mxu1 }
 0x46f   :  { %v2371_v43 = vmul.f32 %v2320_v12, %v6004_v49  ;;  %v2373_v0 = vmul.f32 %v2363_v16, %v6007_v50  ;;  %v2322_v60 = vpop.f32.mrb[62].mxu0  ;;  %v2365_v17 = vpop.f32.mrb[62].mxu1 }
 0x470   :  { %v2378_v27 = vadd.f32 %v2370_v45, %v2237_v21  ;;  %v2380_v18 = vadd.f32 %v2372_v15, %v2239_v9  ;;  %v2374_v26 = vmul.f32 %v2322_v60, %v5998_v47  ;;  %v2376_v44 = vmul.f32 %v2365_v17, %v6001_v48  ;;  %v2324_v61 = vpop.f32.mrb[63].mxu0  ;;  %v2367_v42 = vpop.f32.mrb[63].mxu1 }
 0x471   :  { %v2379_v14 = vadd.f32 %v2371_v43, %v2238_v24  ;;  %v2381_v29 = vadd.f32 %v2373_v0, %v2240_v34  ;;  %v2375_v54 = vmul.f32 %v2324_v61, %v6004_v49  ;;  %v2377_v31 = vmul.f32 %v2367_v42, %v6007_v50 }
 0x472   :  { %v2382_v32 = vadd.f32 %v2374_v26, %v2241_v63  ;;  %v2384_v30 = vadd.f32 %v2376_v44, %v2243_v38 }
 0x473   :  { %v2383_v62 = vadd.f32 %v2375_v54, %v2242_v11  ;;  %v2385_v23 = vadd.f32 %v2377_v31, %v2244_v52 }
 0x475   :  { %v2459_v36 = vpop.f32.mrb[64].mxu0  ;;  %v2502_v6 = vpop.f32.mrb[64].mxu1 }
 0x476   :  { %v2511_v3 = vmul.f32 %v2459_v36, %v6017_v19  ;;  %v2513_v47 = vmul.f32 %v2502_v6, %v6020_v20  ;;  %v2461_v4 = vpop.f32.mrb[65].mxu0  ;;  %v2504_v48 = vpop.f32.mrb[65].mxu1 }
 0x477   :  { %v2512_v35 = vmul.f32 %v2461_v4, %v6023_v1  ;;  %v2514_v8 = vmul.f32 %v2504_v48, %v6026_v5  ;;  %v2463_v39 = vpop.f32.mrb[66].mxu0  ;;  %v2506_v49 = vpop.f32.mrb[66].mxu1  ;;  %v2882_v4 = vld [vmem:[%s7314_s4] sm:$0xff]  ;;  %v7315_v48 = vmov 1  }
 0x478   :  { %v2519_v51 = vadd.f32 %v2511_v3, %v2378_v27  ;;  %v2521_v50 = vadd.f32 %v2513_v47, %v2380_v18  ;;  %v2515_v21 = vmul.f32 %v2463_v39, %v6017_v19  ;;  %v2517_v9 = vmul.f32 %v2506_v49, %v6020_v20  ;;  %v2465_v10 = vpop.f32.mrb[67].mxu0  ;;  %v2508_v40 = vpop.f32.mrb[67].mxu1 }
 0x479   :  { %v2520_v22 = vadd.f32 %v2512_v35, %v2379_v14  ;;  %v2522_v33 = vadd.f32 %v2514_v8, %v2381_v29  ;;  %v2516_v24 = vmul.f32 %v2465_v10, %v6023_v1  ;;  %v2518_v34 = vmul.f32 %v2508_v40, %v6026_v5  ;;  %v2883_v35 = vld [vmem:[%s7314_s4 + $0x8] sm:$0xff] }
 0x47a   :  { %v2523_v53 = vadd.f32 %v2515_v21, %v2382_v32  ;;  %v2525_v37 = vadd.f32 %v2517_v9, %v2384_v30  ;;  %v7316_v8 = vmov 0  }
 0x47b   :  { %v2524_v63 = vadd.f32 %v2516_v24, %v2383_v62  ;;  %v2526_v38 = vadd.f32 %v2518_v34, %v2385_v23 }
 0x47d   :  { %v2600_v11 = vpop.f32.mrb[68].mxu0  ;;  %v2643_v52 = vpop.f32.mrb[68].mxu1 }
 0x47e   :  { %v2652_v7 = vmul.f32 %v2600_v11, %v6036_v55  ;;  %v2654_v19 = vmul.f32 %v2643_v52, %v6039_v56  ;;  %v2602_v41 = vpop.f32.mrb[69].mxu0  ;;  %v2645_v20 = vpop.f32.mrb[69].mxu1 }
 0x47f   :  { %v2653_v45 = vmul.f32 %v2602_v41, %v6042_v57  ;;  %v2655_v15 = vmul.f32 %v2645_v20, %v6045_v58  ;;  %v2604_v12 = vpop.f32.mrb[70].mxu0  ;;  %v2647_v1 = vpop.f32.mrb[70].mxu1 }
 0x480   :  { %v2660_v16 = vadd.f32 %v2652_v7, %v2519_v51  ;;  %v2662_v5 = vadd.f32 %v2654_v19, %v2521_v50  ;;  %v2656_v43 = vmul.f32 %v2604_v12, %v6036_v55  ;;  %v2658_v0 = vmul.f32 %v2647_v1, %v6039_v56  ;;  %v2606_v60 = vpop.f32.mrb[71].mxu0  ;;  %v2649_v17 = vpop.f32.mrb[71].mxu1 }
 0x481   :  { %v2661_v27 = vadd.f32 %v2653_v45, %v2520_v22  ;;  %v2663_v18 = vadd.f32 %v2655_v15, %v2522_v33  ;;  %v2657_v26 = vmul.f32 %v2606_v60, %v6042_v57  ;;  %v2659_v44 = vmul.f32 %v2649_v17, %v6045_v58 }
 0x482   :  { %v2664_v61 = vadd.f32 %v2656_v43, %v2523_v53  ;;  %v2666_v42 = vadd.f32 %v2658_v0, %v2525_v37  ;;  %v5512_v15 = vmov 0.0  }
 0x483   :  { %v2665_v14 = vadd.f32 %v2657_v26, %v2524_v63  ;;  %v2667_v29 = vadd.f32 %v2659_v44, %v2526_v38  ;;  %2796 = vmatprep.mubr.f32.mxu0 %v2661_v27  ;;  %2871 = vmatprep.mubr.f32.mxu1 %v2663_v18 }
 0x484   :  { %2797 = vmatmul.mubr.f32.vlgmr.msra.gmra.mrb[72].mxu0 %v2660_v16  ;;  %2872 = vmatmul.mubr.f32.vlgmr.msra.gmra.mrb[72].mxu1 %v2662_v5 }
 0x485   :  { %2801 = vmatprep.mubr.f32.mxu0 %v2665_v14  ;;  %2876 = vmatprep.mubr.f32.mxu1 %v2667_v29 }
 0x486   :  { %4973 = vmatprep.subr.bf16.mxu0 %v5512_v15  ;;  %4979 = vmatprep.subr.bf16.mxu1 %v5512_v15 }
 0x488   :  { %2802 = vmatmul.mubr.f32.gmra.mrb[74].mxu0 %v2664_v61  ;;  %2877 = vmatmul.mubr.f32.gmra.mrb[74].mxu1 %v2666_v42 }
 0x489   :  { %4975 = vmatprep.mubr.msk.bf16.mxu0 %vm5513_vm15, %v5512_v15  ;;  %4981 = vmatprep.mubr.msk.bf16.mxu1 %vm5513_vm15, %v5512_v15 }
 0x557   :  { %v4906_v55 = vpop.f32.mrb[72].mxu0  ;;  %v4944_v56 = vpop.f32.mrb[72].mxu1 }
 0x558   :  { %v4907_v54 = vpop.f32.mrb[73].mxu0  ;;  %v4945_v31 = vpop.f32.mrb[73].mxu1 }
 0x559   :  { %v4908_v32 = vadd.f32 %v4907_v54, %v4906_v55  ;;  %v4946_v57 = vadd.f32 %v4945_v31, %v4944_v56  ;;  %v5385_v54 = vld [vmem:[%s7317_s0 + $0x8] sm:$0xff]   ;;  %v5386_v31 = vld [vmem:[%s7317_s0] sm:$0xff]  }
 0x55b   :  { %v4909_v30 = vpop.f32.mrb[74].mxu0  ;;  %v4947_v58 = vpop.f32.mrb[74].mxu1  ;;  %v2874_v62 = vadd.f32 %v4946_v57, %v4908_v32 }
 0x55c   :  { %v4910_v23 = vpop.f32.mrb[75].mxu0  ;;  %v4948_v36 = vpop.f32.mrb[75].mxu1 }
 0x55d   :  { %v4911_v6 = vadd.f32 %v4910_v23, %v4909_v30  ;;  %v4949_v3 = vadd.f32 %v4948_v36, %v4947_v58  ;;  %2884 = vadd.xlane.f32.xlu0 %v2874_v62 }
 0x55f   :  { %v2879_v47 = vadd.f32 %v4949_v3, %v4911_v6 }
 0x561   :  { %2886 = vadd.xlane.f32.xlu1 %v2879_v47 }
 0x572   :  { %2909 = vperm.xlu1 %5318, %v2882_v4  }
 0x576   :  { %5319 = vset.pattern.permute.xlu1 %v7315_v48 }
 0x577   :  { %2920 = vperm.xlu1 %5319, %v2882_v4   ;;  %v5388_v4 = vld [vmem:[%s7317_s0 + $0x18] sm:$0xff]  }
 0x57b   :  { %2924 = vperm.xlu1 %5319, %v2883_v35  }
 0x57f   :  { %5360 = vset.pattern.permute.xlu1 %v7316_v8 }
 0x5ea   :  { %v2885_v39 = vpop.xlane.xlu0 %2884 }
 0x5eb   :  { %v2889_v49 = vmul.f32 0.0078125, %v2885_v39 }
 0x5ed   :  { %v2891_v51 = vsub.f32 %v2874_v62, %v2889_v49 }
 0x5ee   :  { %v2887_v50 = vpop.xlane.xlu1 %2886 }
 0x5ef   :  { %v2890_v21 = vmul.f32 0.0078125, %v2887_v50  ;;  %v2893_v9 = vmul.f32 %v2891_v51, %v2891_v51 }
 0x5f1   :  { %v2892_v10 = vsub.f32 %v2879_v47, %v2890_v21  ;;  %2895 = vadd.xlane.f32.xlu0 %v2893_v9  ;;  %v5387_v47 = vld [vmem:[%s7317_s0 + $0x10] sm:$0xff]  }
 0x5f2   :  { %v2910_v63 = vpop.permute.xlu1 %2909 }
 0x5f3   :  { %v2894_v40 = vmul.f32 %v2892_v10, %v2892_v10 }
 0x5f5   :  { %2897 = vadd.xlane.f32.xlu0 %v2894_v40  ;;  %v5389_v40 = vld [vmem:[%s7317_s0 + $0x20] sm:$0xff]  }
 0x5f6   :  { %v2921_v52 = vpop.permute.xlu1 %2920 }
 0x5fa   :  { %v2925_v1 = vpop.permute.xlu1 %2924 }
 0x60b   :  { %2914 = vperm.xlu0 %5236, %v2883_v35  }
 0x67e   :  { %v2896_v22 = vpop.xlane.xlu0 %2895 }
 0x67f   :  { %v2899_v33 = vmul.f32 0.0078125, %v2896_v22  ;;  %v5390_v22 = vld [vmem:[%s7317_s0 + $0x28] sm:$0xff]  }
 0x681   :  { %v2901_v24 = vadd.f32 1e-05, %v2899_v33 }
 0x682   :  { %v2898_v34 = vpop.xlane.xlu0 %2897 }
 0x683   :  { %5402 = vrsqrt.f32 %v2901_v24  ;;  %v2900_v53 = vmul.f32 0.0078125, %v2898_v34 }
 0x685   :  { %v2902_v37 = vadd.f32 1e-05, %v2900_v53 }
 0x687   :  { %5404 = vrsqrt.f32 %v2902_v37 }
 0x68a   :  { %v2915_v45 = vpop.permute.xlu0 %2914 }
 0x68d   :  { %v5403_v38 = vpop.eup %5402 }
 0x68e   :  { %v2905_v11 = vmul.f32 %v5403_v38, %v2891_v51  ;;  %v5392_v38 = vld [vmem:[%s7317_s0 + $0x38] sm:$0xff]  }
 0x690   :  { %v2917_v7 = vmul.f32 %v2910_v63, %v2905_v11  ;;  %v5391_v63 = vld [vmem:[%s7317_s0 + $0x30] sm:$0xff]  }
 0x691   :  { %v5405_v19 = vpop.eup %5404 }
 0x692   :  { %v2906_v41 = vmul.f32 %v5405_v19, %v2892_v10  ;;  %v2927_v20 = vadd.f32 %v2921_v52, %v2917_v7  ;;  %v5393_v52 = vld [vmem:[%s7317_s0 + $0x40] sm:$0xff]  }
 0x693   :  { %v4795_v7 = vld [vmem:[%s7267_s8] ss:$0 sm:$0xff]  ;;  %v4800_v19 = vld [vmem:[%s7267_s8 + $0x1] ss:$0 sm:$0xff] }
 0x694   :  { %v2918_v12 = vmul.f32 %v2915_v45, %v2906_v41  ;;  %v2931_v16 = vmul.f32 0.1, %v2927_v20  ;;  %vm2929_vm14 = vcmp.gt.f32.partialorder %v2927_v20, 0.0 }
 0x696   :  { %v2928_v5 = vadd.f32 %v2925_v1, %v2918_v12  ;;  %v6535_v0 = vsel %vm2929_vm14, %v2927_v20, %v2931_v16 }
 0x698   :  { %vm2930_vm0 = vcmp.gt.f32.partialorder %v2928_v5, 0.0  ;;  %v2932_v43 = vmul.f32 0.1, %v2928_v5 }
 0x69a   :  { %v6537_v60 = vsel %vm2930_vm0, %v2928_v5, %v2932_v43 }
 0x69b   :  { %v5325_v17 = vpack.i.bf16 %v6537_v60, %v6535_v0  ;;  %v3202_v39 = vpack.c.bf16 %v6537_v60, %v6535_v0 }
 0x69d   :  { %5326 = vrot.lane.b32.xlu1 %v5325_v17, %s5514_s25  ;;  %5321 = vrot.lane.b32.xlu0 %v5325_v17, %s5515_s5 }
 0x6a1   :  { %5336 = vrot.lane.b32.xlu1 %v5325_v17, %s5506_s29  ;;  %5331 = vrot.lane.b32.xlu0 %v5325_v17, %s5516_s1 }
 0x6a5   :  { %5346 = vrot.lane.b32.xlu1 %v5325_v17, %s5517_s6  ;;  %5341 = vrot.lane.b32.xlu0 %v5325_v17, %s5507_s3 }
 0x6a9   :  { %5356 = vrot.lane.b32.xlu1 %v5325_v17, %s5518_s27  ;;  %5351 = vrot.lane.b32.xlu0 %v5325_v17, %s5519_s2 }
 0x70f   :  { %v5327_v27 = vpop.permute.xlu1 %5326  ;;  %v5322_v18 = vpop.permute.xlu0 %5321 }
 0x710   :  { %v5329_v26 = vunpack.i.h.bf16 %v5327_v27  ;;  %v5328_v44 = vunpack.i.l.bf16 %v5327_v27  ;;  %v5324_v61 = vunpack.i.h.bf16 %v5322_v18  ;;  %v5323_v42 = vunpack.i.l.bf16 %v5322_v18 }
 0x712   :  { %v3008_v14 = vpack.c.bf16 %v5329_v26, %v5328_v44  ;;  %v2941_v29 = vpack.c.bf16 %v5324_v61, %v5323_v42  ;;  %v4805_v42 = vld [vmem:[%s7267_s8 + $0x2] ss:$0 sm:$0xff] }
 0x713   :  { %v5337_v55 = vpop.permute.xlu1 %5336  ;;  %v5332_v56 = vpop.permute.xlu0 %5331 }
 0x714   :  { %v5339_v32 = vunpack.i.h.bf16 %v5337_v55  ;;  %v5338_v57 = vunpack.i.l.bf16 %v5337_v55  ;;  %v5334_v30 = vunpack.i.h.bf16 %v5332_v56  ;;  %v5333_v58 = vunpack.i.l.bf16 %v5332_v56  ;;  %4974 = vmatpush3.bf16.msra.mxu0 %v2941_v29  ;;  %4980 = vmatpush3.bf16.msra.mxu1 %v3008_v14  ;;  %v4810_v14 = vld [vmem:[%s7267_s8 + $0x3] ss:$0 sm:$0xff] }
 0x715   :  { %4991 = vmatprep.subr.bf16.mxu1 %v5512_v15  ;;  %4985 = vmatprep.subr.bf16.mxu0 %v5512_v15 }
 0x716   :  { %v3140_v62 = vpack.c.bf16 %v5339_v32, %v5338_v57  ;;  %v3074_v23 = vpack.c.bf16 %v5334_v30, %v5333_v58 }
 0x717   :  { %4982 = vmatmul.mubr.msk.bf16.vlgmr.msra.gmra.mrb[76].mxu1 %vm2947_vm2, %v5385_v54  ;;  %v5342_v36 = vpop.permute.xlu0 %5341  ;;  %4976 = vmatmul.mubr.msk.bf16.vlgmr.msra.gmra.mrb[76].mxu0 %vm2947_vm2, %v5386_v31  ;;  %v5347_v49 = vpop.permute.xlu1 %5346 }
 0x718   :  { %4986 = vmatpush3.bf16.msra.mxu0 %v3074_v23  ;;  %4992 = vmatpush3.bf16.msra.mxu1 %v3140_v62  ;;  %v5344_v6 = vunpack.i.h.bf16 %v5342_v36  ;;  %v5343_v3 = vunpack.i.l.bf16 %v5342_v36  ;;  %v5349_v50 = vunpack.i.h.bf16 %v5347_v49  ;;  %v5348_v21 = vunpack.i.l.bf16 %v5347_v49 }
 0x719   :  { %4987 = vmatprep.mubr.msk.bf16.mxu0 %vm5513_vm15, %v5512_v15  ;;  %4993 = vmatprep.mubr.msk.bf16.mxu1 %vm5513_vm15, %v5512_v15 }
 0x71a   :  { %4997 = vmatprep.subr.bf16.mxu0 %v5512_v15  ;;  %5003 = vmatprep.subr.bf16.mxu1 %v5512_v15  ;;  %v3261_v35 = vpack.c.bf16 %v5344_v6, %v5343_v3  ;;  %v3327_v33 = vpack.c.bf16 %v5349_v50, %v5348_v21 }
 0x71b   :  { %v5352_v51 = vpop.permute.xlu0 %5351  ;;  %v5357_v34 = vpop.permute.xlu1 %5356 }
 0x71c   :  { %v5354_v9 = vunpack.i.h.bf16 %v5352_v51  ;;  %v5353_v10 = vunpack.i.l.bf16 %v5352_v51  ;;  %v5359_v53 = vunpack.i.h.bf16 %v5357_v34  ;;  %v5358_v37 = vunpack.i.l.bf16 %v5357_v34 }
 0x71e   :  { %v3393_v24 = vpack.c.bf16 %v5354_v9, %v5353_v10  ;;  %v3459_v11 = vpack.c.bf16 %v5359_v53, %v5358_v37 }
 0x71f   :  { %4988 = vmatmul.mubr.msk.bf16.vlgmr.msra.gmra.mrb[80].mxu0 %vm2947_vm2, %v5387_v47  ;;  %4994 = vmatmul.mubr.msk.bf16.vlgmr.msra.gmra.mrb[80].mxu1 %vm2947_vm2, %v5388_v4  ;;  %v4819_v4 = vld [vmem:[%s7267_s8 + $0x5] ss:$0 sm:$0xff] }
 0x720   :  { %4998 = vmatpush3.bf16.msra.mxu0 %v3202_v39  ;;  %5004 = vmatpush3.bf16.msra.mxu1 %v3261_v35 }
 0x721   :  { %4999 = vmatprep.mubr.msk.bf16.mxu0 %vm5513_vm15, %v5512_v15  ;;  %5005 = vmatprep.mubr.msk.bf16.mxu1 %vm5513_vm15, %v5512_v15 }
 0x722   :  { %5009 = vmatprep.subr.bf16.mxu0 %v5512_v15  ;;  %5015 = vmatprep.subr.bf16.mxu1 %v5512_v15 }
 0x727   :  { %5000 = vmatmul.mubr.msk.bf16.vlgmr.msra.gmra.mrb[84].mxu0 %vm2947_vm2, %v5389_v40  ;;  %5006 = vmatmul.mubr.msk.bf16.vlgmr.msra.gmra.mrb[84].mxu1 %vm2947_vm2, %v5390_v22 }
 0x728   :  { %5010 = vmatpush3.bf16.msra.mxu0 %v3327_v33  ;;  %5016 = vmatpush3.bf16.msra.mxu1 %v3393_v24 }
 0x729   :  { %5011 = vmatprep.mubr.msk.bf16.mxu0 %vm5513_vm15, %v5512_v15  ;;  %5021 = vmatprep.subr.bf16.mxu0 %v5512_v15 }
 0x72a   :  { %5017 = vmatprep.mubr.msk.bf16.mxu1 %vm5513_vm15, %v5512_v15 }
 0x72f   :  { %5012 = vmatmul.mubr.msk.bf16.vlgmr.msra.gmra.mrb[88].mxu0 %vm2947_vm2, %v5391_v63  ;;  %5018 = vmatmul.mubr.msk.bf16.vlgmr.msra.gmra.mrb[88].mxu1 %vm2947_vm2, %v5392_v38  ;;  %v4824_v63 = vld [vmem:[%s7267_s8 + $0x6] ss:$0 sm:$0xff]  ;;  %v4829_v38 = vld [vmem:[%s7267_s8 + $0x7] ss:$0 sm:$0xff] }
 0x730   :  { %5022 = vmatpush3.bf16.msra.mxu0 %v3459_v11  ;;  %5023 = vmatprep.mubr.msk.bf16.mxu0 %vm5513_vm15, %v5512_v15 }
 0x731   :  { %5033 = vmatprep.subr.bf16.mxu0 %v5512_v15 }
 0x737   :  { %5024 = vmatmul.mubr.msk.bf16.vlgmr.msra.gmra.mrb[92].mxu0 %vm2947_vm2, %v5393_v52 }
 0x738   :  { %5035 = vmatprep.mubr.msk.bf16.mxu0 %vm5513_vm15, %v5512_v15 }
 0x7ea   :  { %v2985_v41 = vpop.f32.mrb[76].mxu0  ;;  %v3051_v20 = vpop.f32.mrb[76].mxu1 }
 0x7eb   :  { %v2997_v45 = vmul.f32 %v4795_v7, %v2985_v41  ;;  %v3063_v12 = vmul.f32 %v4800_v19, %v3051_v20  ;;  %v4977_v1 = vpop.f32.mrb[77].mxu0  ;;  %v4983_v16 = vpop.f32.mrb[77].mxu1 }
 0x7ec   :  { %v2988_v5 = vpop.f32.mrb[78].mxu0  ;;  %v3054_v43 = vpop.f32.mrb[78].mxu1 }
 0x7ed   :  { %v3065_v17 = vadd.f32 %v3063_v12, %v2997_v45  ;;  %v2998_v27 = vmul.f32 %v4795_v7, %v2988_v5  ;;  %v3064_v18 = vmul.f32 %v4800_v19, %v3054_v43  ;;  %v4978_v26 = vpop.f32.mrb[79].mxu0  ;;  %v4984_v44 = vpop.f32.mrb[79].mxu1 }
 0x7ee   :  { %v4834_v26 = vld [vmem:[%s7267_s8 + $0x8] ss:$0 sm:$0xff] }
 0x7ef   :  { %v3066_v61 = vadd.f32 %v3064_v18, %v2998_v27 }
 0x7f2   :  { %v3117_v29 = vpop.f32.mrb[80].mxu0  ;;  %v3183_v55 = vpop.f32.mrb[80].mxu1 }
 0x7f3   :  { %v3129_v56 = vmul.f32 %v4805_v42, %v3117_v29  ;;  %v4989_v54 = vpop.f32.mrb[81].mxu0  ;;  %v3195_v31 = vmul.f32 %v4810_v14, %v3183_v55  ;;  %v4995_v32 = vpop.f32.mrb[81].mxu1 }
 0x7f4   :  { %v3120_v57 = vpop.f32.mrb[82].mxu0  ;;  %v3186_v30 = vpop.f32.mrb[82].mxu1  ;;  %v3518_v32 = vld [vmem:[%s7268_s9] sm:$0xff] }
 0x7f5   :  { %v3131_v58 = vadd.f32 %v3129_v56, %v3065_v17  ;;  %v3130_v62 = vmul.f32 %v4805_v42, %v3120_v57  ;;  %v4990_v23 = vpop.f32.mrb[83].mxu0  ;;  %v3196_v36 = vmul.f32 %v4810_v14, %v3186_v30  ;;  %v4996_v6 = vpop.f32.mrb[83].mxu1  ;;  %v3519_v57 = vld [vmem:[%s7268_s9 + $0x8] sm:$0xff] }
 0x7f7   :  { %v3132_v3 = vadd.f32 %v3130_v62, %v3066_v61  ;;  %v3197_v47 = vadd.f32 %v3195_v31, %v3131_v58 }
 0x7f9   :  { %v3198_v35 = vadd.f32 %v3196_v36, %v3132_v3 }
 0x7fa   :  { %v3245_v39 = vpop.f32.mrb[84].mxu0  ;;  %v3304_v49 = vpop.f32.mrb[84].mxu1 }
 0x7fb   :  { %v3252_v51 = vadd.f32 %v3245_v39, %v3197_v47  ;;  %v3316_v50 = vmul.f32 %v4819_v4, %v3304_v49  ;;  %v5001_v21 = vpop.f32.mrb[85].mxu0  ;;  %v5007_v9 = vpop.f32.mrb[85].mxu1 }
 0x7fc   :  { %v3248_v10 = vpop.f32.mrb[86].mxu0  ;;  %v3307_v40 = vpop.f32.mrb[86].mxu1 }
 0x7fd   :  { %v3318_v22 = vadd.f32 %v3316_v50, %v3252_v51  ;;  %v3253_v33 = vadd.f32 %v3248_v10, %v3198_v35  ;;  %v3317_v24 = vmul.f32 %v4819_v4, %v3307_v40  ;;  %v5002_v34 = vpop.f32.mrb[87].mxu0  ;;  %v5008_v53 = vpop.f32.mrb[87].mxu1  ;;  %v5394_v4 = vld [vmem:[%s7269_s10] sm:$0xff]  }
 0x7fe   :  { %5029 = vmatprep.mubr.msk.bf16.mxu1 %vm2947_vm2, %v5394_v4 }
 0x7ff   :  { %v3319_v37 = vadd.f32 %v3317_v24, %v3253_v33 }
 0x802   :  { %v3370_v11 = vpop.f32.mrb[88].mxu0  ;;  %v3436_v52 = vpop.f32.mrb[88].mxu1 }
 0x803   :  { %v3382_v7 = vmul.f32 %v4824_v63, %v3370_v11  ;;  %v5013_v19 = vpop.f32.mrb[89].mxu0  ;;  %v3448_v41 = vmul.f32 %v4829_v38, %v3436_v52  ;;  %v5019_v20 = vpop.f32.mrb[89].mxu1 }
 0x804   :  { %v3373_v45 = vpop.f32.mrb[90].mxu0  ;;  %v3439_v12 = vpop.f32.mrb[90].mxu1  ;;  %v3869_v20 = vld [vmem:[%s7270_s16 + $0x38] sm:$0xff] }
 0x805   :  { %v3384_v1 = vadd.f32 %v3382_v7, %v3318_v22  ;;  %v3383_v16 = vmul.f32 %v4824_v63, %v3373_v45  ;;  %v5014_v5 = vpop.f32.mrb[91].mxu0  ;;  %v3449_v43 = vmul.f32 %v4829_v38, %v3439_v12  ;;  %v5020_v17 = vpop.f32.mrb[91].mxu1  ;;  %v3863_v12 = vld [vmem:[%s7270_s16 + $0x8] sm:$0xff] }
 0x806   :  { %v3864_v17 = vld [vmem:[%s7270_s16 + $0x10] sm:$0xff] }
 0x807   :  { %v3385_v27 = vadd.f32 %v3383_v16, %v3319_v37  ;;  %v3450_v18 = vadd.f32 %v3448_v41, %v3384_v1  ;;  %v3865_v41 = vld [vmem:[%s7270_s16 + $0x18] sm:$0xff]  ;;  %v3867_v1 = vld [vmem:[%s7270_s16 + $0x28] sm:$0xff] }
 0x809   :  { %v3451_v44 = vadd.f32 %v3449_v43, %v3385_v27  ;;  %v5135_v43 = vpack.c.bf16 %v3869_v20, %v3865_v41  ;;  %v3868_v27 = vld [vmem:[%s7270_s16 + $0x30] sm:$0xff] }
 0x80a   :  { %v3502_v61 = vpop.f32.mrb[92].mxu0 }
 0x80b   :  { %v3514_v42 = vmul.f32 %v4834_v26, %v3502_v61  ;;  %v5025_v14 = vpop.f32.mrb[93].mxu0  ;;  %v3877_v61 = vld [vmem:[%s7270_s16 + $0x78] sm:$0xff] }
 0x80c   :  { %v3505_v29 = vpop.f32.mrb[94].mxu0  ;;  %v3875_v14 = vld [vmem:[%s7270_s16 + $0x68] sm:$0xff] }
 0x80d   :  { %v3515_v55 = vmul.f32 %v4834_v26, %v3505_v29  ;;  %v5026_v56 = vpop.f32.mrb[95].mxu0  ;;  %v3516_v54 = vadd.f32 %v3514_v42, %v3450_v18  ;;  %v3862_v18 = vld [vmem:[%s7270_s16] sm:$0xff]  ;;  %v3871_v42 = vld [vmem:[%s7270_s16 + $0x48] sm:$0xff] }
 0x80e   :  { %v3792_v29 = vld [vmem:[%s7271_s14] sm:$0xf]  ;;  %v5395_v56 = vld [vmem:[%s7269_s10 + $0x8] ss:$0 sps:$4 sm:$0x77]  }
 0x80f   :  { %3520 = vadd.xlane.f32.xlu0 %v3516_v54  ;;  %v3517_v31 = vadd.f32 %v3515_v55, %v3451_v44  ;;  %v5103_v44 = vpack.c.bf16 %v3867_v1, %v3863_v12  ;;  %v5137_v55 = vpack.c.bf16 %v3868_v27, %v3864_v17  ;;  %v3896_v12 = vld [vmem:[%s7270_s16 + $0x110] sm:$0xff]  ;;  %v3905_v17 = vld [vmem:[%s7270_s16 + $0x158] sm:$0xff] }
 0x810   :  { %v3900_v1 = vld [vmem:[%s7270_s16 + $0x130] sm:$0xff]  ;;  %v3909_v27 = vld [vmem:[%s7270_s16 + $0x178] sm:$0xff] }
 0x811   :  { %3522 = vadd.xlane.f32.xlu1 %v3517_v31 }
 0x822   :  { %3544 = vperm.xlu1 %5360, %v3518_v32  }
 0x826   :  { %5361 = vset.pattern.permute.xlu1 %v7315_v48 }
 0x827   :  { %3555 = vperm.xlu1 %5361, %v3518_v32   ;;  %v3872_v32 = vld [vmem:[%s7270_s16 + $0x50] sm:$0xff] }
 0x82b   :  { %3559 = vperm.xlu1 %5361, %v3519_v57  }
 0x89c   :  { %v3521_v30 = vpop.xlane.xlu0 %3520 }
 0x89d   :  { %v3524_v58 = vmul.f32 0.0078125, %v3521_v30  ;;  %v3870_v30 = vld [vmem:[%s7270_s16 + $0x40] sm:$0xff] }
 0x89e   :  { %v3523_v62 = vpop.xlane.xlu1 %3522 }
 0x89f   :  { %v3526_v23 = vsub.f32 %v3516_v54, %v3524_v58  ;;  %v3525_v36 = vmul.f32 0.0078125, %v3523_v62  ;;  %v5107_v58 = vpack.c.bf16 %v3875_v14, %v3871_v42  ;;  %v3874_v62 = vld [vmem:[%s7270_s16 + $0x60] sm:$0xff]  ;;  %v3908_v42 = vld [vmem:[%s7270_s16 + $0x170] sm:$0xff] }
 0x8a0   :  { %v5109_v4 = vpack.c.bf16 %v3874_v62, %v3870_v30  ;;  %v3902_v14 = vld [vmem:[%s7270_s16 + $0x140] sm:$0xff]  ;;  %v3912_v62 = vld [vmem:[%s7270_s16 + $0x190] sm:$0xff] }
 0x8a1   :  { %v3527_v6 = vsub.f32 %v3517_v31, %v3525_v36  ;;  %v3528_v3 = vmul.f32 %v3526_v23, %v3526_v23  ;;  %v3885_v36 = vld [vmem:[%s7270_s16 + $0xb8] sm:$0xff] }
 0x8a2   :  { %v3545_v9 = vpop.permute.xlu1 %3544 }
 0x8a3   :  { %3530 = vadd.xlane.f32.xlu0 %v3528_v3  ;;  %v3529_v47 = vmul.f32 %v3527_v6, %v3527_v6  ;;  %v3883_v3 = vld [vmem:[%s7270_s16 + $0xa8] sm:$0xff] }
 0x8a6   :  { %v3556_v22 = vpop.permute.xlu1 %3555 }
 0x8a7   :  { %3532 = vadd.xlane.f32.xlu0 %v3529_v47 }
 0x8aa   :  { %v3560_v11 = vpop.permute.xlu1 %3559 }
 0x8bd   :  { %3549 = vperm.xlu0 %5236, %v3519_v57   ;;  %v3876_v57 = vld [vmem:[%s7270_s16 + $0x70] sm:$0xff] }
 0x8be   :  { %v5141_v47 = vpack.c.bf16 %v3876_v57, %v3872_v32  ;;  %v3915_v32 = vld [vmem:[%s7270_s16 + $0x1a8] sm:$0xff] }
 0x930   :  { %v3531_v35 = vpop.xlane.xlu0 %3530 }
 0x931   :  { %v3534_v39 = vmul.f32 0.0078125, %v3531_v35 }
 0x933   :  { %v3536_v49 = vadd.f32 1e-05, %v3534_v39  ;;  %v3880_v39 = vld [vmem:[%s7270_s16 + $0x90] sm:$0xff] }
 0x934   :  { %v3533_v51 = vpop.xlane.xlu0 %3532 }
 0x935   :  { %5406 = vrsqrt.f32 %v3536_v49  ;;  %v3535_v50 = vmul.f32 0.0078125, %v3533_v51  ;;  %v3884_v49 = vld [vmem:[%s7270_s16 + $0xb0] sm:$0xff]  ;;  %v3878_v51 = vld [vmem:[%s7270_s16 + $0x80] sm:$0xff] }
 0x937   :  { %v3537_v21 = vadd.f32 1e-05, %v3535_v50 }
 0x939   :  { %5408 = vrsqrt.f32 %v3537_v21  ;;  %v3882_v21 = vld [vmem:[%s7270_s16 + $0xa0] sm:$0xff] }
 0x93c   :  { %v3550_v37 = vpop.permute.xlu0 %3549 }
 0x93f   :  { %v5407_v10 = vpop.eup %5406 }
 0x940   :  { %v3540_v40 = vmul.f32 %v5407_v10, %v3526_v23  ;;  %v3881_v23 = vld [vmem:[%s7270_s16 + $0x98] sm:$0xff] }
 0x941   :  { %v5143_v35 = vpack.c.bf16 %v3885_v36, %v3881_v23  ;;  %v3893_v10 = vld [vmem:[%s7270_s16 + $0xf8] sm:$0xff]  ;;  %v3916_v23 = vld [vmem:[%s7270_s16 + $0x1b0] sm:$0xff]  ;;  %v3910_v36 = vld [vmem:[%s7270_s16 + $0x180] sm:$0xff] }
 0x942   :  { %v3552_v33 = vmul.f32 %v3545_v9, %v3540_v40  ;;  %v3889_v9 = vld [vmem:[%s7270_s16 + $0xd8] sm:$0xff]  ;;  %v3887_v40 = vld [vmem:[%s7270_s16 + $0xc8] sm:$0xff] }
 0x943   :  { %v5409_v24 = vpop.eup %5408 }
 0x944   :  { %v3541_v34 = vmul.f32 %v5409_v24, %v3527_v6  ;;  %v3562_v53 = vadd.f32 %v3556_v22, %v3552_v33  ;;  %v3879_v6 = vld [vmem:[%s7270_s16 + $0x88] sm:$0xff]  ;;  %v5145_v33 = vpack.c.bf16 %v3884_v49, %v3880_v39  ;;  %v5113_v24 = vpack.c.bf16 %v3882_v21, %v3878_v51  ;;  %v3920_v21 = vld [vmem:[%s7270_s16 + $0x1d0] sm:$0xff] }
 0x945   :  { %v5111_v50 = vpack.c.bf16 %v3883_v3, %v3879_v6  ;;  %v3891_v22 = vld [vmem:[%s7270_s16 + $0xe8] sm:$0xff]  ;;  %v3914_v3 = vld [vmem:[%s7270_s16 + $0x1a0] sm:$0xff]  ;;  %v5161_v49 = vpack.c.bf16 %v3916_v23, %v3912_v62 }
 0x946   :  { %v3553_v63 = vmul.f32 %v3550_v37, %v3541_v34  ;;  %v3566_v38 = vmul.f32 0.1, %v3562_v53  ;;  %vm3564_vm4 = vcmp.gt.f32.partialorder %v3562_v53, 0.0  ;;  %v5147_v34 = vpack.c.bf16 %v3893_v10, %v3889_v9  ;;  %v3892_v37 = vld [vmem:[%s7270_s16 + $0xf0] sm:$0xff]  ;;  %v3923_v39 = vld [vmem:[%s7270_s16 + $0x1e8] sm:$0xff] }
 0x947   :  { %v5129_v51 = vpack.c.bf16 %v3914_v3, %v3910_v36  ;;  %v3924_v9 = vld [vmem:[%s7270_s16 + $0x1f0] sm:$0xff] }
 0x948   :  { %v3563_v52 = vadd.f32 %v3560_v11, %v3553_v63  ;;  %v3568_v7 = vsel %vm3564_vm4, %v3562_v53, %v3566_v38  ;;  %v3888_v53 = vld [vmem:[%s7270_s16 + $0xd0] sm:$0xff]  ;;  %v3886_v63 = vld [vmem:[%s7270_s16 + $0xc0] sm:$0xff]  ;;  %v3897_v11 = vld [vmem:[%s7270_s16 + $0x118] sm:$0xff] }
 0x949   :  { %v3570_v16 = vadd.f32 %v3568_v7, %v6535_v0  ;;  %v3866_v0 = vld [vmem:[%s7270_s16 + $0x20] sm:$0xff]  ;;  %v3895_v7 = vld [vmem:[%s7270_s16 + $0x108] sm:$0xff]  ;;  %v5149_v41 = vpack.c.bf16 %v3892_v37, %v3888_v53 }
 0x94a   :  { %vm3565_vm5 = vcmp.gt.f32.partialorder %v3563_v52, 0.0  ;;  %v3567_v19 = vmul.f32 0.1, %v3563_v52  ;;  %v5105_v54 = vpack.c.bf16 %v3866_v0, %v3862_v18  ;;  %v3890_v38 = vld [vmem:[%s7270_s16 + $0xe0] sm:$0xff]  ;;  %v3903_v18 = vld [vmem:[%s7270_s16 + $0x148] sm:$0xff] }
 0x94b   :  { %v5117_v20 = vpack.c.bf16 %v3890_v38, %v3886_v63 }
 0x94c   :  { %v3569_v45 = vsel %vm3565_vm5, %v3563_v52, %v3567_v19  ;;  %v3901_v52 = vld [vmem:[%s7270_s16 + $0x138] sm:$0xff]  ;;  %v3899_v19 = vld [vmem:[%s7270_s16 + $0x128] sm:$0xff] }
 0x94d   :  { %v3571_v5 = vadd.f32 %v3569_v45, %v6537_v60  ;;  %v3873_v60 = vld [vmem:[%s7270_s16 + $0x58] sm:$0xff]  ;;  %v5151_v45 = vpack.c.bf16 %v3901_v52, %v3897_v11 }
 0x94e   :  { %v5139_v31 = vpack.c.bf16 %v3877_v61, %v3873_v60  ;;  %v5155_v60 = vpack.c.bf16 %v3909_v27, %v3905_v17  ;;  %v3904_v61 = vld [vmem:[%s7270_s16 + $0x150] sm:$0xff]  ;;  %v4323_v27 = vld [vmem:[%s7276_s19 + $0x8] sm:$0xff] }
 0x94f   :  { %v3575_v26 = vpack.c.bf16 %v3571_v5, %v3570_v16  ;;  %v3894_v16 = vld [vmem:[%s7270_s16 + $0x100] sm:$0xff]  ;;  %v5119_v5 = vpack.c.bf16 %v3899_v19, %v3895_v7  ;;  %v5157_v57 = vpack.c.bf16 %v3908_v42, %v3904_v61  ;;  %v6865_v19 = vld [vmem:[%s7274_s12 + $0x10] sm:$0x1f] }
 0x950   :  { %v3656_v7 = vld [vmem:[%s7274_s12] sm:$0xff]  ;;  %vm3731_vm9 = vcmp.gt.f32.partialorder %v6865_v19, 0.0 }
 0x951   :  { %5027 = vmatprep.subr.bf16.mxu1 %v3575_v26  ;;  %5034 = vmatpush3.bf16.msra.mxu0 %v3575_v26  ;;  %vm3729_vm6 = vcmp.gt.f32.partialorder %v3656_v7, 0.0  ;;  %v3734_v17 = vsel %vm3731_vm9, 1, %v7316_v8 }
 0x952   :  { %5028 = vmatpush3.bf16.msra.mxu1 %v3575_v26  ;;  %5136 = vmatprep.subr.bf16.mxu0 %v5135_v43  ;;  %v3898_v43 = vld [vmem:[%s7270_s16 + $0x120] sm:$0xff]  ;;  %v3907_v26 = vld [vmem:[%s7270_s16 + $0x168] sm:$0xff] }
 0x953   :  { %5104 = vmatprep.subr.bf16.mxu1 %v5103_v44  ;;  %v5153_v44 = vpack.c.bf16 %v3900_v1, %v3896_v12  ;;  %v5121_v0 = vpack.c.bf16 %v3898_v43, %v3894_v16  ;;  %v4352_v12 = vld [vmem:[%s7275_s20] sm:$0xff]  ;;  %v3578_v43 = vld [vmem:[%s7273_s11 + $0x10] sm:$0x1f] }
 0x954   :  { %5036 = vmatmul.mubr.msk.bf16.vlgmr.msra.gmra.mrb[96].mxu0 %vm2947_vm2, %v3792_v29  ;;  %v5123_v29 = vpack.c.bf16 %v3907_v26, %v3903_v18  ;;  %vm4547_vm7 = vcmp.gt.f32.partialorder %v4352_v12, 0.0  ;;  %v3576_v16 = vld [vmem:[%s7273_s11] sm:$0xff]  ;;  %v4353_v26 = vld [vmem:[%s7275_s20 + $0x8] sm:$0xff] }
 0x955   :  { %5138 = vmatpush1.bf16.msra.mxu0 %v5137_v55  ;;  %5030 = vmatmul.mubr.msk.bf16.vlgmr.msra.gmra.mrb[92].mxu1 %vm2947_vm2, %v5395_v56  ;;  %v3906_v55 = vld [vmem:[%s7270_s16 + $0x160] sm:$0xff]  ;;  %v3913_v56 = vld [vmem:[%s7270_s16 + $0x198] sm:$0xff]  ;;  %v6883_v1 = vsel %vm4547_vm7, 1, %v7316_v8  ;;  %vm4548_vm10 = vcmp.gt.f32.partialorder %v4353_v26, 0.0 }
 0x956   :  { %5106 = vmatpush1.bf16.msra.mxu1 %v5105_v54  ;;  %5140 = vmatprep.subr.bf16.mxu0 %v5139_v31  ;;  %v3917_v54 = vld [vmem:[%s7270_s16 + $0x1b8] sm:$0xff]  ;;  %v3911_v31 = vld [vmem:[%s7270_s16 + $0x188] sm:$0xff]  ;;  %v5125_v30 = vpack.c.bf16 %v3906_v55, %v3902_v14  ;;  %v4322_v18 = vld [vmem:[%s7276_s19] sm:$0xff]  ;;  %v5521_v55 = vmov 4  }
 0x957   :  { %5108 = vmatprep.subr.bf16.mxu1 %v5107_v58  ;;  %3990 = vmatprep.mubr.f32.mxu1 %v5512_v15  ;;  %v5159_v58 = vpack.c.bf16 %v3917_v54, %v3913_v56  ;;  %v5127_v6 = vpack.c.bf16 %v3915_v32, %v3911_v31  ;;  %v5522_v54 = vmov 2  }
 0x958   :  { %4061 = vmatprep.mubr.f32.mxu0 %v5512_v15  ;;  %v5115_v15 = vpack.c.bf16 %v3891_v22, %v3887_v40  ;;  %v3918_v40 = vld [vmem:[%s7270_s16 + $0x1c0] sm:$0xff] }
 0x959   :  { %5142 = vmatpush1.bf16.msra.mxu0 %v5141_v47  ;;  %v3921_v47 = vld [vmem:[%s7270_s16 + $0x1d8] sm:$0xff]  ;;  %v3922_v22 = vld [vmem:[%s7270_s16 + $0x1e0] sm:$0xff] }
 0x95a   :  { %5110 = vmatpush1.bf16.msra.mxu1 %v5109_v4  ;;  %5144 = vmatprep.subr.bf16.mxu0 %v5143_v35  ;;  %v3925_v4 = vld [vmem:[%s7270_s16 + $0x1f8] sm:$0xff]  ;;  %v3919_v35 = vld [vmem:[%s7270_s16 + $0x1c8] sm:$0xff] }
 0x95b   :  { %5112 = vmatprep.subr.bf16.mxu1 %v5111_v50  ;;  %v5163_v50 = vpack.c.bf16 %v3925_v4, %v3921_v47  ;;  %v5131_v10 = vpack.c.bf16 %v3923_v39, %v3919_v35  ;;  %v5396_v39 = vld [vmem:[%s7277_s18] sm:$0xff]  }
 0x95d   :  { %5146 = vmatpush1.bf16.msra.mxu0 %v5145_v33  ;;  %v5165_v33 = vpack.c.bf16 %v3924_v9, %v3920_v21 }
 0x95e   :  { %5114 = vmatpush1.bf16.msra.mxu1 %v5113_v24  ;;  %5148 = vmatprep.subr.bf16.mxu0 %v5147_v34  ;;  %v5133_v24 = vpack.c.bf16 %v3922_v22, %v3918_v40 }
 0x95f   :  { %5116 = vmatprep.subr.bf16.mxu1 %v5115_v15  ;;  %v3836_v15 = vld [vmem:[%s7272_s15] sm:$0xff] }
 0x961   :  { %5150 = vmatpush1.bf16.msra.mxu0 %v5149_v41  ;;  %v6871_v41 = vld [vmem:[%s7274_s12 + $0x8] sm:$0xff] }
 0x962   :  { %5118 = vmatpush1.bf16.msra.mxu1 %v5117_v20  ;;  %5152 = vmatprep.subr.bf16.mxu0 %v5151_v45  ;;  %v5520_v20 = vmov 3   ;;  %v6874_v45 = vsel %vm3729_vm6, 1, %v7316_v8  ;;  %vm3730_vm8 = vcmp.gt.f32.partialorder %v6871_v41, 0.0 }
 0x963   :  { %5120 = vmatprep.subr.bf16.mxu1 %v5119_v5  ;;  %v3733_v5 = vsel %vm3730_vm8, 1, %v7316_v8 }
 0x965   :  { %5154 = vmatpush1.bf16.msra.mxu0 %v5153_v44  ;;  %v4324_v44 = vld [vmem:[%s7276_s19 + $0x10] sm:$0x1f] }
 0x966   :  { %5122 = vmatpush1.bf16.msra.mxu1 %v5121_v0  ;;  %5156 = vmatprep.subr.bf16.mxu0 %v5155_v60  ;;  %v4354_v0 = vld [vmem:[%s7275_s20 + $0x10] sm:$0x1f]  ;;  %v4551_v60 = vsel %vm4548_vm10, 1, %v7316_v8 }
 0x967   :  { %5124 = vmatprep.subr.bf16.mxu1 %v5123_v29  ;;  %vm4549_vm11 = vcmp.gt.f32.partialorder %v4354_v0, 0.0 }
 0x968   :  { %v4552_v61 = vsel %vm4549_vm11, 1, %v7316_v8 }
 0x969   :  { %5158 = vmatpush1.bf16.msra.mxu0 %v5157_v57 }
 0x96a   :  { %5126 = vmatpush1.bf16.msra.mxu1 %v5125_v30  ;;  %5160 = vmatprep.subr.bf16.mxu0 %v5159_v58 }
 0x96b   :  { %5128 = vmatprep.subr.bf16.mxu1 %v5127_v6 }
 0x96d   :  { %5162 = vmatpush1.bf16.msra.mxu0 %v5161_v49 }
 0x96e   :  { %5130 = vmatpush1.bf16.msra.mxu1 %v5129_v51  ;;  %5164 = vmatprep.subr.bf16.mxu0 %v5163_v50 }
 0x96f   :  { %5132 = vmatprep.subr.bf16.mxu1 %v5131_v10 }
 0x971   :  { %5166 = vmatpush1.bf16.msra.mxu0 %v5165_v33 }
 0x972   :  { %5134 = vmatpush1.bf16.msra.mxu1 %v5133_v24  ;;  %4850 = vmatprep.subr.msk.bf16.mxu0 %vm102_vm1, %v6157_v59 }
 0x973   :  { %4847 = vmatprep.subr.msk.bf16.mxu1 %vm102_vm1, %v6152_v13  ;;  %v3577_v13 = vld [vmem:[%s7273_s11 + $0x8] sm:$0xff] }
 0xa27   :  { %v3830_v34 = vpop.f32.mrb[96].mxu0 }
 0xa28   :  { %3837 = vadd.xlane.f32.xlu0 %v3830_v34  ;;  %v5037_v53 = vpop.f32.mrb[97].mxu0  ;;  %v6918_v42 = vpop.f32.mrb[92].mxu1 }
 0xa29   :  { %v3833_v37 = vpop.f32.mrb[98].mxu0  ;;  %v6920_v14 = vpop.f32.mrb[93].mxu1 }
 0xa2a   :  { %v5038_v63 = vpop.f32.mrb[99].mxu0  ;;  %v5032_v29 = vpop.f32.mrb[94].mxu1 }
 0xa2b   :  { %v3645_v56 = vpop.f32.mrb[95].mxu1 }
 0xa3e   :  { %3850 = vperm.xlu0 %5236, %v3836_v15  }
 0xa42   :  { %5364 = vset.pattern.permute.xlu0 %v5520_v20 }
 0xa43   :  { %3736 = vperm.xlu0 %5364, %v6874_v45  }
 0xa47   :  { %4554 = vperm.xlu0 %5364, %v6883_v1  }
 0xa4b   :  { %5367 = vset.pattern.permute.xlu0 %v7316_v8 }
 0xa4c   :  { %3581 = vperm.xlu0 %5367, %v3576_v16  }
 0xa50   :  { %3591 = vperm.xlu0 %5367, %v3578_v43  }
 0xa54   :  { %3667 = vperm.xlu0 %5367, %v6871_v41  }
 0xa58   :  { %4327 = vperm.xlu0 %5367, %v4322_v18  }
 0xa5c   :  { %4358 = vperm.xlu0 %5367, %v4352_v12  }
 0xa60   :  { %5369 = vset.pattern.permute.xlu0 %v7315_v48 }
 0xa61   :  { %3684 = vperm.xlu0 %5369, %v3656_v7  }
 0xa65   :  { %4407 = vperm.xlu0 %5369, %v4352_v12  }
 0xa69   :  { %5372 = vset.pattern.permute.xlu0 %v5521_v55 }
 0xa6a   :  { %3757 = vperm.xlu0 %5372, %v3656_v7  }
 0xa6e   :  { %4602 = vperm.xlu0 %5372, %v4352_v12  }
 0xa72   :  { %4610 = vperm.xlu0 %5372, %v4354_v0  }
 0xa76   :  { %5375 = vset.pattern.permute.xlu0 %v5522_v54 }
 0xa77   :  { %3778 = vperm.xlu0 %5375, %v3733_v5  }
 0xa7b   :  { %4641 = vperm.xlu0 %5375, %v4551_v60  }
 0xab5   :  { %v3838_v38 = vpop.xlane.xlu0 %3837 }
 0xab6   :  { %v3839_v11 = vmul.f32 0.0078125, %v3838_v38 }
 0xab8   :  { %v6851_v52 = vsub.f32 %v3830_v34, %v3839_v11  ;;  %v4355_v11 = vld [vmem:[%s7278_s21] ss:$2 sm:$0xf] }
 0xaba   :  { %v3841_v59 = vmul.f32 %v6851_v52, %v6851_v52 }
 0xabc   :  { %3842 = vadd.xlane.f32.xlu1 %v3841_v59 }
 0xabd   :  { %v3851_v23 = vpop.permute.xlu0 %3850 }
 0xac2   :  { %v6938_v49 = vpop.permute.xlu0 %3736 }
 0xac3   :  { %vm3744_vm14 = vcmp.eq.s32.totalorder %v6938_v49, 1  ;;  %v5397_v49 = vld [vmem:[%s7277_s18 + $0x8] ss:$0 sps:$4 sm:$0x77]  }
 0xac6   :  { %v6948_v50 = vpop.permute.xlu0 %4554 }
 0xacd   :  { %3855 = vperm.xlu1 %5361, %v3836_v15  }
 0xad1   :  { %5362 = vset.pattern.permute.xlu1 %v7316_v8 }
 0xad2   :  { %3586 = vperm.xlu1 %5362, %v3577_v13   ;;  %v6973_v13 = vrot.slane %v4355_v11, %v5894_v2 }
 0xad6   :  { %3662 = vperm.xlu1 %5362, %v3656_v7   ;;  %v6976_v7 = vrot.slane %v4355_v11, %v5898_v28 }
 0xada   :  { %3672 = vperm.xlu1 %5362, %v6865_v19  }
 0xade   :  { %5363 = vset.pattern.permute.xlu1 %v7315_v48 }
 0xadf   :  { %3688 = vperm.xlu1 %5363, %v6871_v41  }
 0xae3   :  { %3692 = vperm.xlu1 %5363, %v6865_v19  }
 0xae7   :  { %5365 = vset.pattern.permute.xlu1 %v5520_v20 }
 0xae8   :  { %3739 = vperm.xlu1 %5365, %v3733_v5  }
 0xaec   :  { %3742 = vperm.xlu1 %5365, %v3734_v17  }
 0xaf0   :  { %5366 = vset.pattern.permute.xlu1 %v7316_v8 }
 0xaf1   :  { %4332 = vperm.xlu1 %5366, %v4323_v27  }
 0xaf5   :  { %4337 = vperm.xlu1 %5366, %v4324_v44  }
 0xaf9   :  { %5368 = vset.pattern.permute.xlu1 %v5520_v20  ;;  %v7319_v20 = vld [vmem:[#allocation3_spill] sm:$0xff] }
 0xafa   :  { %4557 = vperm.xlu1 %5368, %v4551_v60  }
 0xafe   :  { %4560 = vperm.xlu1 %5368, %v4552_v61  }
 0xb02   :  { %5370 = vset.pattern.permute.xlu1 %v7316_v8 }
 0xb03   :  { %4363 = vperm.xlu1 %5370, %v4353_v26  }
 0xb07   :  { %4368 = vperm.xlu1 %5370, %v4354_v0  }
 0xb0b   :  { %5371 = vset.pattern.permute.xlu1 %v7315_v48 }
 0xb0c   :  { %4411 = vperm.xlu1 %5371, %v4353_v26  }
 0xb10   :  { %4415 = vperm.xlu1 %5371, %v4354_v0  }
 0xb14   :  { %5373 = vset.pattern.permute.xlu1 %v5521_v55 }
 0xb15   :  { %3761 = vperm.xlu1 %5373, %v6871_v41  }
 0xb19   :  { %3765 = vperm.xlu1 %5373, %v6865_v19   ;;  %v7318_v19 = vld [vmem:[#allocation2_spill] sm:$0xff] }
 0xb1a   :  { %v6979_v41 = vrot.slane %v4355_v11, %v7318_v19 }
 0xb1d   :  { %4606 = vperm.xlu1 %5373, %v4353_v26  }
 0xb21   :  { %5374 = vset.pattern.permute.xlu1 %v5522_v54 }
 0xb22   :  { %3775 = vperm.xlu1 %5374, %v6874_v45   ;;  %v6982_v45 = vrot.slane %v4355_v11, %v7319_v20 }
 0xb26   :  { %3781 = vperm.xlu1 %5374, %v3734_v17  }
 0xb2a   :  { %4638 = vperm.xlu1 %5374, %v6883_v1  }
 0xb2e   :  { %4644 = vperm.xlu1 %5374, %v4552_v61  }
 0xb49   :  { %v3843_v48 = vpop.xlane.xlu1 %3842 }
 0xb4a   :  { %v3844_v31 = vmul.f32 0.0078125, %v3843_v48 }
 0xb4c   :  { %v3845_v32 = vadd.f32 1e-05, %v3844_v31 }
 0xb4d   :  { %v3856_v57 = vpop.permute.xlu1 %3855 }
 0xb4e   :  { %5410 = vrsqrt.f32 %v3845_v32 }
 0xb51   :  { %v3587_v62 = vpop.permute.xlu1 %3586 }
 0xb52   :  { %v3646_v10 = vadd.f32 %v3645_v56, %v3587_v62  ;;  %v4840_v62 = vld [vmem:[%s7279_s13 + $0x1] ss:$0 sm:$0xff] }
 0xb54   :  { %v4842_v33 = vmul.f32 -1.442695, %v3646_v10 }
 0xb55   :  { %v6929_v3 = vpop.permute.xlu1 %3662 }
 0xb56   :  { %5412 = vpow2.f32 %v4842_v33 }
 0xb58   :  { %v5411_v30 = vpop.eup %5410 }
 0xb59   :  { %v3847_v58 = vmul.f32 %v5411_v30, %v6851_v52  ;;  %v6931_v35 = vpop.permute.xlu1 %3672  ;;  %v4861_v52 = vld [vmem:[%s7278_s21 + $0x1] ss:$2 sm:$0xf] }
 0xb5a   :  { %v6987_v5 = vrot.slane %v4861_v52, %v5894_v2  ;;  %v6990_v43 = vrot.slane %v4861_v52, %v5898_v28  ;;  %v6993_v17 = vrot.slane %v4861_v52, %v7318_v19  ;;  %v6996_v27 = vrot.slane %v4861_v52, %v7319_v20 }
 0xb5b   :  { %v3853_v36 = vmul.f32 %v3851_v23, %v3847_v58  ;;  %v4839_v58 = vld [vmem:[%s7279_s13] ss:$0 sm:$0xff] }
 0xb5d   :  { %v3858_v6 = vadd.f32 %v3856_v57, %v3853_v36 }
 0xb5e   :  { %v6942_v51 = vpop.permute.xlu1 %3688 }
 0xb5f   :  { %vm3859_vm12 = vcmp.gt.f32.partialorder %v3858_v6, 0.0  ;;  %v3860_v47 = vmul.f32 0.1, %v3858_v6 }
 0xb60   :  { %v5413_v16 = vpop.eup %5412 }
 0xb61   :  { %v3861_v4 = vsel %vm3859_vm12, %v3858_v6, %v3860_v47  ;;  %v3715_v28 = vadd.f32 1.0, %v5413_v16  ;;  %v3700_v47 = vmul.f32 %v4840_v62, %v6942_v51 }
 0xb62   :  { %3991 = vmatmul.mubr.f32.vlgmr.msra.gmra.mrb[96].mxu1 %v3861_v4  ;;  %4062 = vmatmul.mubr.f32.vlgmr.msra.gmra.mrb[100].mxu0 %v3861_v4 }
 0xb63   :  { %4093 = vmatpush1.bf16.msra.mxu1 %v6179_v25  ;;  %4144 = vmatpush1.bf16.msra.mxu0 %v6182_v46  ;;  %v6950_v25 = vpop.permute.xlu1 %3692  ;;  %v3582_v46 = vpop.permute.xlu0 %3581 }
 0xb64   :  { %4124 = vmatprep.mubr.bf16.mxu1 %v7316_v8  ;;  %4175 = vmatprep.mubr.bf16.mxu0 %v7316_v8  ;;  %v3643_v53 = vadd.f32 %v6920_v14, %v3582_v46 }
 0xb66   :  { %4848 = vmatmul.mubr.msk.bf16.vlgmr.msra.gmra.mrb[100].mxu1 %vm98_vm3, %v5396_v39  ;;  %4851 = vmatmul.mubr.msk.bf16.vlgmr.msra.gmra.mrb[104].mxu0 %vm98_vm3, %v5396_v39  ;;  %v4841_v38 = vmul.f32 -1.442695, %v3643_v53  ;;  %v3747_v36 = vsel %vm3744_vm14, %v3643_v53, 0.0 }
 0xb67   :  { %4134 = vmatprep.mubr.bf16.mxu1 %v7316_v8  ;;  %4185 = vmatprep.mubr.bf16.mxu0 %v7316_v8  ;;  %v6952_v21 = vpop.permute.xlu1 %3739  ;;  %v3592_v9 = vpop.permute.xlu0 %3591 }
 0xb68   :  { %v3651_v15 = vadd.f32 %v6918_v42, %v3592_v9  ;;  %5414 = vpow2.f32 %v4841_v38  ;;  %vm3745_vm13 = vcmp.eq.s32.totalorder %v6952_v21, 1 }
 0xb69   :  { %v3748_v55 = vsel %vm3745_vm13, %v3646_v10, 0.0  ;;  %v3750_v10 = vmul.f32 1.442695, %v3747_v36 }
 0xb6a   :  { %v4843_v12 = vmul.f32 -1.442695, %v3651_v15  ;;  %v3752_v23 = vmul.f32 1.442695, %v3748_v55 }
 0xb6b   :  { %v6954_v40 = vpop.permute.xlu1 %3742  ;;  %v3668_v22 = vpop.permute.xlu0 %3667 }
 0xb6c   :  { %5416 = vpow2.f32 %v4843_v12  ;;  %v3680_v39 = vmul.f32 %v4839_v58, %v3668_v22  ;;  %vm3746_vm15 = vcmp.eq.s32.totalorder %v6954_v40, 1 }
 0xb6d   :  { %5418 = vrcp.f32 %v3715_v28  ;;  %v3749_v51 = vsel %vm3746_vm15, %v3651_v15, 0.0 }
 0xb6e   :  { %5420 = vpow2.f32 %v3752_v23  ;;  %v3703_v22 = vadd.f32 %v3700_v47, %v3680_v39  ;;  %v3679_v39 = vmul.f32 %v4839_v58, %v6929_v3  ;;  %4849 = vmatmul.mubr.msk.bf16.gmra.mrb[104].mxu1 %vm98_vm3, %v5397_v49  ;;  %4852 = vmatmul.mubr.msk.bf16.gmra.mrb[108].mxu0 %vm98_vm3, %v5397_v49 }
 0xb6f   :  { %v6958_v34 = vpop.permute.xlu0 %4327  ;;  %4252 = vmatprep.mubr.bf16.mxu1 %v7316_v8  ;;  %4303 = vmatprep.mubr.bf16.mxu0 %v7316_v8 }
 0xb70   :  { %v6956_v24 = vpop.permute.xlu1 %4332 }
 0xb72   :  { %v5415_v30 = vpop.eup %5414 }
 0xb73   :  { %v4359_v63 = vpop.permute.xlu0 %4358  ;;  %v3714_v4 = vadd.f32 1.0, %v5415_v30 }
 0xb74   :  { %v6961_v37 = vpop.permute.xlu1 %4337  ;;  %v4392_v26 = vmul.f32 %v6973_v13, %v4359_v63  ;;  %v4393_v44 = vmul.f32 %v6976_v7, %v4359_v63  ;;  %v4394_v2 = vmul.f32 %v6979_v41, %v4359_v63  ;;  %v4395_v0 = vmul.f32 %v6982_v45, %v4359_v63 }
 0xb75   :  { %5422 = vrcp.f32 %v3714_v4 }
 0xb76   :  { %v5417_v9 = vpop.eup %5416  ;;  %5424 = vpow2.f32 %v3750_v10  ;;  %v3681_v10 = vmul.f32 %v4839_v58, %v6931_v35 }
 0xb77   :  { %v6984_v1 = vpop.permute.xlu0 %3684  ;;  %v3716_v11 = vadd.f32 1.0, %v5417_v9  ;;  %v5419_v19 = vpop.eup %5418 }
 0xb78   :  { %v5421_v30 = vpop.eup %5420 }
 0xb79   :  { %v6970_v59 = vpop.permute.xlu1 %4557  ;;  %5426 = vrcp.f32 %v3716_v11 }
 0xb7b   :  { %v4408_v60 = vpop.permute.xlu0 %4407 }
 0xb7c   :  { %v4439_v61 = vmul.f32 %v6987_v5, %v4408_v60  ;;  %v4440_v42 = vmul.f32 %v6990_v43, %v4408_v60  ;;  %v4441_v14 = vmul.f32 %v6993_v17, %v4408_v60  ;;  %v4442_v29 = vmul.f32 %v6996_v27, %v4408_v60 }
 0xb7d   :  { %v6999_v18 = vpop.permute.xlu1 %4560 }
 0xb7e   :  { %v7011_v56 = vadd.f32 %v4439_v61, %v4392_v26  ;;  %v7013_v54 = vadd.f32 %v4440_v42, %v4393_v44  ;;  %v7015_v48 = vadd.f32 %v4441_v14, %v4394_v2  ;;  %v7017_v31 = vadd.f32 %v4442_v29, %v4395_v0 }
 0xb7f   :  { %v7020_v57 = vpop.permute.xlu0 %3757  ;;  %v3754_v29 = vmul.f32 1.442695, %v3749_v51  ;;  %v5423_v9 = vpop.eup %5422  ;;  %vm4564_vm5 = vcmp.eq.s32.totalorder %v6999_v18, 1 }
 0xb80   :  { %v5425_v51 = vpop.eup %5424 }
 0xb81   :  { %5428 = vpow2.f32 %v3754_v29 }
 0xb82   :  { %v4364_v32 = vpop.permute.xlu1 %4363 }
 0xb83   :  { %v7031_v46 = vpop.permute.xlu0 %4602  ;;  %v4396_v33 = vmul.f32 %v6973_v13, %v4364_v32  ;;  %v4397_v63 = vmul.f32 %v6976_v7, %v4364_v32  ;;  %v4398_v38 = vmul.f32 %v6979_v41, %v4364_v32  ;;  %v4399_v53 = vmul.f32 %v6982_v45, %v4364_v32  ;;  %v5427_v3 = vpop.eup %5426 }
 0xb84   :  { %v3724_v32 = vadd.f32 %v5419_v19, %v3703_v22 }
 0xb86   :  { %v4369_v6 = vpop.permute.xlu1 %4368 }
 0xb87   :  { %v7044_v44 = vpop.permute.xlu0 %4610  ;;  %v4400_v2 = vmul.f32 %v6973_v13, %v4369_v6  ;;  %v4401_v0 = vmul.f32 %v6976_v7, %v4369_v6  ;;  %v4402_v15 = vmul.f32 %v6979_v41, %v4369_v6  ;;  %v4403_v28 = vmul.f32 %v6982_v45, %v4369_v6 }
 0xb8b   :  { %v4412_v52 = vpop.permute.xlu1 %4411  ;;  %v3779_v4 = vpop.permute.xlu0 %3778 }
 0xb8c   :  { %v4443_v20 = vmul.f32 %v6987_v5, %v4412_v52  ;;  %v4444_v12 = vmul.f32 %v6990_v43, %v4412_v52  ;;  %v4445_v16 = vmul.f32 %v6993_v17, %v4412_v52  ;;  %v4446_v26 = vmul.f32 %v6996_v27, %v4412_v52  ;;  %v5429_v35 = vpop.eup %5428 }
 0xb8d   :  { %vm3784_vm0 = vcmp.eq.s32.totalorder %v3779_v4, 1  ;;  %v3768_v52 = vmul.f32 %v5425_v51, %v7020_v57 }
 0xb8e   :  { %v7050_v60 = vadd.f32 %v4443_v20, %v4396_v33  ;;  %v7052_v61 = vadd.f32 %v4444_v12, %v4397_v63  ;;  %v7054_v42 = vadd.f32 %v4445_v16, %v4398_v38  ;;  %v7056_v14 = vadd.f32 %v4446_v26, %v4399_v53 }
 0xb8f   :  { %v4416_v55 = vpop.permute.xlu1 %4415  ;;  %v3701_v33 = vmul.f32 %v4840_v62, %v6950_v25  ;;  %v3771_v21 = vsel %vm3744_vm14, %v3768_v52, %v5423_v9 }
 0xb90   :  { %v4447_v13 = vmul.f32 %v6987_v5, %v4416_v55  ;;  %v4448_v7 = vmul.f32 %v6990_v43, %v4416_v55  ;;  %v4449_v41 = vmul.f32 %v6993_v17, %v4416_v55  ;;  %v4450_v45 = vmul.f32 %v6996_v27, %v4416_v55 }
 0xb91   :  { %v3699_v5 = vmul.f32 %v4840_v62, %v6984_v1  ;;  %v3727_v17 = vmul.f32 2.0, %v3724_v32  ;;  %v3704_v1 = vadd.f32 %v3701_v33, %v3681_v10 }
 0xb92   :  { %v7062_v23 = vadd.f32 %v4447_v13, %v4400_v2  ;;  %v7064_v36 = vadd.f32 %v4448_v7, %v4401_v0  ;;  %v7066_v6 = vadd.f32 %v4449_v41, %v4402_v15  ;;  %v7068_v47 = vadd.f32 %v4450_v45, %v4403_v28  ;;  %v5398_v45 = vld [vmem:[%s7281_s17] sm:$0xff]  }
 0xb93   :  { %v3702_v63 = vadd.f32 %v3699_v5, %v3679_v39  ;;  %v3725_v58 = vadd.f32 %v5427_v3, %v3704_v1 }
 0xb94   :  { %v3762_v43 = vpop.permute.xlu1 %3761 }
 0xb95   :  { %v3769_v27 = vmul.f32 %v5421_v30, %v3762_v43  ;;  %v3723_v22 = vadd.f32 %v5423_v9, %v3702_v63  ;;  %v3728_v16 = vmul.f32 2.0, %v3725_v58  ;;  %v5399_v30 = vld [vmem:[%s7281_s17 + $0x8] ss:$0 sps:$4 sm:$0x77]  }
 0xb97   :  { %v3772_v38 = vsel %vm3745_vm13, %v3769_v27, %v5419_v19  ;;  %v3726_v25 = vmul.f32 2.0, %v3723_v22 }
 0xb98   :  { %v3766_v53 = vpop.permute.xlu1 %3765  ;;  %v3787_v11 = vsel %vm3784_vm0, %v3727_v17, %v3772_v38 }
 0xb99   :  { %3790 = vst [vmem:[%s7280_s22 + $0x8] sm:$0xff] %v3787_v11  ;;  %v3770_v62 = vmul.f32 %v5429_v35, %v3766_v53 }
 0xb9b   :  { %v3773_v57 = vsel %vm3746_vm15, %v3770_v62, %v5427_v3 }
 0xb9c   :  { %v7080_v20 = vpop.permute.xlu1 %4606 }
 0xba1   :  { %v3776_v19 = vpop.permute.xlu1 %3775 }
 0xba2   :  { %vm3783_vm2 = vcmp.eq.s32.totalorder %v3776_v19, 1 }
 0xba3   :  { %v3786_v12 = vsel %vm3783_vm2, %v3726_v25, %v3771_v21 }
 0xba4   :  { %3789 = vst [vmem:[%s7280_s22] sm:$0xff] %v3786_v12 }
 0xba5   :  { %v3782_v26 = vpop.permute.xlu1 %3781 }
 0xba6   :  { %vm3785_vm4 = vcmp.eq.s32.totalorder %v3782_v26, 1 }
 0xba7   :  { %v3788_v2 = vsel %vm3785_vm4, %v3728_v16, %v3773_v57 }
 0xba8   :  { %3791 = vst [vmem:[%s7280_s22 + $0x10] sm:$0x1f] %v3788_v2 }
 0xc35   :  { %v3992_v40 = vpop.f32.mrb[96].mxu1  ;;  %v4063_v0 = vpop.f32.mrb[100].mxu0 }
 0xc36   :  { %v4071_v15 = vpack.c.bf16 %v3992_v40, %v3992_v40  ;;  %v4073_v28 = vpack.c.bf16 %v4063_v0, %v4063_v0  ;;  %v3994_v29 = vpop.f32.mrb[97].mxu1  ;;  %v4065_v55 = vpop.f32.mrb[101].mxu0 }
 0xc37   :  { %v4072_v32 = vpack.c.bf16 %v3994_v29, %v3994_v29  ;;  %v4074_v13 = vpack.c.bf16 %v4065_v55, %v4065_v55 }
 0xc38   :  { %v4209_v7 = vsel %vm102_vm1, %v4071_v15, 0  ;;  %v4215_v41 = vsel %vm102_vm1, %v4073_v28, 0 }
 0xc39   :  { %4855 = vmatprep.subr.msk.bf16.mxu1 %vm102_vm1, %v4072_v32  ;;  %4858 = vmatprep.subr.msk.bf16.mxu0 %vm102_vm1, %v4074_v13  ;;  %vm4562_vm1 = vcmp.eq.s32.totalorder %v6948_v50, 1 }
 0xc3a   :  { %4221 = vmatpush1.bf16.msra.mxu1 %v4209_v7  ;;  %4272 = vmatpush1.bf16.msra.mxu0 %v4215_v41 }
 0xc3d   :  { %4856 = vmatmul.mubr.msk.bf16.vlgmr.msra.gmra.mrb[100].mxu1 %vm98_vm3, %v5398_v45  ;;  %4859 = vmatmul.mubr.msk.bf16.vlgmr.msra.gmra.mrb[104].mxu0 %vm98_vm3, %v5398_v45 }
 0xc3e   :  { %4262 = vmatprep.mubr.bf16.mxu1 %v7316_v8  ;;  %4313 = vmatprep.mubr.bf16.mxu0 %v7316_v8 }
 0xc41   :  { %v4136_v4 = vpop.f32.mrb[104].mxu1  ;;  %v4187_v39 = vpop.f32.mrb[108].mxu0 }
 0xc42   :  { %v4138_v5 = vpop.f32.mrb[105].mxu1  ;;  %v7115_v43 = vpop.f32.mrb[109].mxu0 }
 0xc43   :  { %v4140_v17 = vpop.f32.mrb[106].mxu1  ;;  %v4191_v9 = vpop.f32.mrb[110].mxu0 }
 0xc44   :  { %v4141_v27 = vpop.f32.mrb[107].mxu1  ;;  %v4192_v10 = vpop.f32.mrb[111].mxu0 }
 0xc45   :  { %4857 = vmatmul.mubr.msk.bf16.gmra.mrb[108].mxu1 %vm98_vm3, %v5399_v30  ;;  %4860 = vmatmul.mubr.msk.bf16.gmra.mrb[112].mxu0 %vm98_vm3, %v5399_v30  ;;  %vm4563_vm3 = vcmp.eq.s32.totalorder %v6970_v59, 1 }
 0xd10   :  { %v4254_v33 = vpop.f32.mrb[100].mxu1  ;;  %v4305_v63 = vpop.f32.mrb[104].mxu0 }
 0xd11   :  { %v4340_v8 = vadd.f32 %v6958_v34, %v4254_v33  ;;  %v4342_v38 = vadd.f32 %v6958_v34, %v4305_v63  ;;  %v4256_v53 = vpop.f32.mrb[101].mxu1  ;;  %v4307_v11 = vpop.f32.mrb[105].mxu0 }
 0xd12   :  { %v4341_v51 = vadd.f32 %v6958_v34, %v4256_v53  ;;  %v4343_v3 = vadd.f32 %v6958_v34, %v4307_v11  ;;  %v4258_v1 = vpop.f32.mrb[102].mxu1  ;;  %v4309_v22 = vpop.f32.mrb[106].mxu0 }
 0xd13   :  { %v4862_v52 = vmul.f32 -1.442695, %v4340_v8  ;;  %v4565_v35 = vsel %vm4562_vm1, %v4340_v8, 0.0  ;;  %v4864_v25 = vmul.f32 -1.442695, %v4342_v38  ;;  %v4567_v58 = vsel %vm4562_vm1, %v4342_v38, 0.0 }
 0xd14   :  { %v4577_v62 = vmul.f32 1.442695, %v4565_v35  ;;  %v4344_v21 = vadd.f32 %v6956_v24, %v4258_v1  ;;  %v4863_v19 = vmul.f32 -1.442695, %v4341_v51  ;;  %v4566_v12 = vsel %vm4562_vm1, %v4341_v51, 0.0  ;;  %v4260_v16 = vpop.f32.mrb[103].mxu1 }
 0xd15   :  { %5430 = vpow2.f32 %v4862_v52  ;;  %v4568_v34 = vsel %vm4562_vm1, %v4343_v3, 0.0  ;;  %v4311_v57 = vpop.f32.mrb[107].mxu0  ;;  %v4581_v26 = vmul.f32 1.442695, %v4567_v58  ;;  %v4865_v2 = vmul.f32 -1.442695, %v4343_v3 }
 0xd16   :  { %5432 = vpow2.f32 %v4864_v25  ;;  %v4569_v49 = vsel %vm4563_vm3, %v4344_v21, 0.0  ;;  %v4346_v40 = vadd.f32 %v6956_v24, %v4309_v22  ;;  %v4345_v0 = vadd.f32 %v6956_v24, %v4260_v16 }
 0xd17   :  { %5434 = vpow2.f32 %v4577_v62  ;;  %v4579_v15 = vmul.f32 1.442695, %v4566_v12  ;;  %v4347_v28 = vadd.f32 %v6956_v24, %v4311_v57  ;;  %v4866_v32 = vmul.f32 -1.442695, %v4344_v21 }
 0xd18   :  { %v4264_v29 = vpop.f32.mrb[108].mxu1  ;;  %v4315_v55 = vpop.f32.mrb[112].mxu0  ;;  %5436 = vpow2.f32 %v4863_v19  ;;  %v4571_v13 = vsel %vm4563_vm3, %v4346_v40, 0.0  ;;  %v4583_v41 = vmul.f32 1.442695, %v4568_v34  ;;  %v4570_v45 = vsel %vm4563_vm3, %v4345_v0, 0.0 }
 0xd19   :  { %v4266_v7 = vpop.f32.mrb[109].mxu1  ;;  %5438 = vpow2.f32 %v4581_v26  ;;  %v4317_v30 = vpop.f32.mrb[113].mxu0  ;;  %v4868_v17 = vmul.f32 -1.442695, %v4346_v40  ;;  %v4572_v9 = vsel %vm4563_vm3, %v4347_v28, 0.0  ;;  %v4265_v24 = vadd.f32 %v4264_v29, %v4136_v4 }
 0xd1a   :  { %5440 = vpow2.f32 %v4865_v2  ;;  %v4268_v27 = vpop.f32.mrb[110].mxu1  ;;  %v4319_v10 = vpop.f32.mrb[114].mxu0  ;;  %v4585_v33 = vmul.f32 1.442695, %v4569_v49  ;;  %v4316_v63 = vadd.f32 %v4315_v55, %v4187_v39  ;;  %v4267_v8 = vadd.f32 %v4266_v7, %v4138_v5 }
 0xd1b   :  { %5442 = vpow2.f32 %v4579_v15  ;;  %v4269_v38 = vpop.f32.mrb[111].mxu1  ;;  %v4320_v53 = vpop.f32.mrb[115].mxu0  ;;  %v4867_v11 = vmul.f32 -1.442695, %v4345_v0  ;;  %v4348_v51 = vadd.f32 %v6961_v37, %v4265_v24  ;;  %v4318_v3 = vadd.f32 %v4317_v30, %v7115_v43 }
 0xd1c   :  { %5444 = vpow2.f32 %v4866_v32  ;;  %v4350_v1 = vadd.f32 %v6961_v37, %v4316_v63  ;;  %v4349_v4 = vadd.f32 %v6961_v37, %v4267_v8  ;;  %v4589_v52 = vmul.f32 1.442695, %v4571_v13 }
 0xd1d   :  { %5446 = vpow2.f32 %v4583_v41  ;;  %v4573_v39 = vsel %vm4564_vm5, %v4348_v51, 0.0  ;;  %v4351_v5 = vadd.f32 %v6961_v37, %v4318_v3  ;;  %v4869_v43 = vmul.f32 -1.442695, %v4347_v28  ;;  %v4639_v41 = vpop.permute.xlu1 %4638 }
 0xd1e   :  { %5448 = vpow2.f32 %v4868_v17  ;;  %v4575_v58 = vsel %vm4564_vm5, %v4350_v1, 0.0  ;;  %v7155_v62 = vsel %vm4564_vm5, %v4349_v4, 0.0  ;;  %v4587_v34 = vmul.f32 1.442695, %v4570_v45 }
 0xd1f   :  { %v5431_v22 = vpop.eup %5430  ;;  %5450 = vpow2.f32 %v4585_v33  ;;  %v7159_v37 = vsel %vm4564_vm5, %v4351_v5, 0.0  ;;  %v4870_v2 = vmul.f32 -1.442695, %v4348_v51  ;;  %v4591_v15 = vmul.f32 1.442695, %v4572_v9 }
 0xd20   :  { %v4499_v35 = vadd.f32 1.0, %v5431_v22  ;;  %v5433_v25 = vpop.eup %5432  ;;  %5452 = vpow2.f32 %v4867_v11  ;;  %v4872_v32 = vmul.f32 -1.442695, %v4350_v1  ;;  %vm4646_vm6 = vcmp.eq.s32.totalorder %v4639_v41, 1 }
 0xd21   :  { %v5435_v21 = vpop.eup %5434  ;;  %v4501_v19 = vadd.f32 1.0, %v5433_v25  ;;  %v4593_v27 = vmul.f32 1.442695, %v4573_v39  ;;  %v4871_v9 = vmul.f32 -1.442695, %v4349_v4 }
 0xd22   :  { %5454 = vrcp.f32 %v4499_v35  ;;  %v5437_v12 = vpop.eup %5436  ;;  %v4613_v30 = vmul.f32 %v5435_v21, %v7031_v46  ;;  %v4873_v53 = vmul.f32 -1.442695, %v4351_v5 }
 0xd23   :  { %5456 = vpow2.f32 %v4589_v52  ;;  %v5439_v16 = vpop.eup %5438  ;;  %v4500_v57 = vadd.f32 1.0, %v5437_v12  ;;  %v4597_v52 = vmul.f32 1.442695, %v4575_v58 }
 0xd24   :  { %5458 = vrcp.f32 %v4501_v19  ;;  %v5441_v26 = vpop.eup %5440  ;;  %v4615_v63 = vmul.f32 %v5439_v16, %v7031_v46 }
 0xd25   :  { %5460 = vpow2.f32 %v4869_v43  ;;  %v5443_v49 = vpop.eup %5442  ;;  %v4502_v40 = vadd.f32 1.0, %v5441_v26  ;;  %v4642_v43 = vpop.permute.xlu0 %4641 }
 0xd26   :  { %5462 = vrcp.f32 %v4500_v57  ;;  %v5445_v0 = vpop.eup %5444  ;;  %v4614_v3 = vmul.f32 %v5443_v49, %v7031_v46  ;;  %v4595_v57 = vmul.f32 1.442695, %v7155_v62  ;;  %vm4647_vm7 = vcmp.eq.s32.totalorder %v4642_v43, 1 }
 0xd27   :  { %5464 = vpow2.f32 %v4587_v34  ;;  %v5447_v28 = vpop.eup %5446  ;;  %v4503_v29 = vadd.f32 1.0, %v5445_v0 }
 0xd28   :  { %5466 = vrcp.f32 %v4502_v40  ;;  %v5449_v55 = vpop.eup %5448  ;;  %v4616_v39 = vmul.f32 %v5447_v28, %v7031_v46 }
 0xd29   :  { %5468 = vpow2.f32 %v4870_v2  ;;  %v5451_v13 = vpop.eup %5450  ;;  %v4505_v7 = vadd.f32 1.0, %v5449_v55 }
 0xd2a   :  { %5470 = vrcp.f32 %v4503_v29  ;;  %v5453_v45 = vpop.eup %5452  ;;  %v4617_v46 = vmul.f32 %v5451_v13, %v7080_v20 }
 0xd2b   :  { %5472 = vpow2.f32 %v4591_v15  ;;  %v4504_v24 = vadd.f32 1.0, %v5453_v45 }
 0xd2c   :  { %v5455_v17 = vpop.eup %5454  ;;  %5474 = vrcp.f32 %v4505_v7 }
 0xd2d   :  { %v5457_v10 = vpop.eup %5456  ;;  %5476 = vpow2.f32 %v4872_v32  ;;  %v4535_v33 = vadd.f32 %v5455_v17, %v7011_v56  ;;  %v4625_v8 = vsel %vm4562_vm1, %v4613_v30, %v5455_v17  ;;  %v4599_v32 = vmul.f32 1.442695, %v7159_v37 }
 0xd2e   :  { %v5459_v38 = vpop.eup %5458  ;;  %5478 = vrcp.f32 %v4504_v24  ;;  %v4619_v26 = vmul.f32 %v5457_v10, %v7080_v20 }
 0xd2f   :  { %v5461_v11 = vpop.eup %5460  ;;  %v4537_v51 = vadd.f32 %v5459_v38, %v7015_v48  ;;  %v4627_v1 = vsel %vm4562_vm1, %v4615_v63, %v5459_v38  ;;  %v4649_v4 = vsel %vm4646_vm6, %v4535_v33, %v4625_v8  ;;  %5480 = vpow2.f32 %v4871_v9 }
 0xd30   :  { %v5463_v22 = vpop.eup %5462  ;;  %v4506_v56 = vadd.f32 1.0, %v5461_v11  ;;  %4661 = vst [vmem:[%s7282_s23] sm:$0xff] %v4649_v4  ;;  %5482 = vpow2.f32 %v4593_v27 }
 0xd31   :  { %v5465_v5 = vpop.eup %5464  ;;  %v4536_v48 = vadd.f32 %v5463_v22, %v7013_v54  ;;  %v4626_v35 = vsel %vm4562_vm1, %v4614_v3, %v5463_v22  ;;  %v4651_v25 = vsel %vm4646_vm6, %v4537_v51, %v4627_v1 }
 0xd32   :  { %v5467_v21 = vpop.eup %5466  ;;  %5484 = vrcp.f32 %v4506_v56  ;;  %4663 = vst [vmem:[%s7282_s23 + $0x10] sm:$0xff] %v4651_v25  ;;  %v4618_v0 = vmul.f32 %v5465_v5, %v7080_v20 }
 0xd33   :  { %v5469_v58 = vpop.eup %5468  ;;  %5486 = vpow2.f32 %v4873_v53  ;;  %v4538_v19 = vadd.f32 %v5467_v21, %v7017_v31  ;;  %v4628_v54 = vsel %vm4562_vm1, %v4616_v39, %v5467_v21  ;;  %v4650_v12 = vsel %vm4646_vm6, %v4536_v48, %v4626_v35 }
 0xd34   :  { %v5471_v34 = vpop.eup %5470  ;;  %v4507_v16 = vadd.f32 1.0, %v5469_v58  ;;  %4662 = vst [vmem:[%s7282_s23 + $0x8] sm:$0xff] %v4650_v12  ;;  %5488 = vpow2.f32 %v4597_v52 }
 0xd35   :  { %v5473_v2 = vpop.eup %5472  ;;  %v4652_v31 = vsel %vm4646_vm6, %v4538_v19, %v4628_v54  ;;  %v4539_v50 = vadd.f32 %v5471_v34, %v7050_v60  ;;  %v4629_v49 = vsel %vm4563_vm3, %v4617_v46, %v5471_v34 }
 0xd36   :  { %v5475_v40 = vpop.eup %5474  ;;  %5490 = vrcp.f32 %v4507_v16  ;;  %4664 = vst [vmem:[%s7282_s23 + $0x18] sm:$0xff] %v4652_v31  ;;  %v4620_v30 = vmul.f32 %v5473_v2, %v7080_v20  ;;  %v4645_v20 = vpop.permute.xlu1 %4644 }
 0xd37   :  { %v5477_v62 = vpop.eup %5476  ;;  %v4541_v15 = vadd.f32 %v5475_v40, %v7054_v42  ;;  %v4631_v28 = vsel %vm4563_vm3, %v4619_v26, %v5475_v40  ;;  %v4653_v29 = vsel %vm4647_vm7, %v4539_v50, %v4629_v49  ;;  %5492 = vpow2.f32 %v4595_v57 }
 0xd38   :  { %v5479_v60 = vpop.eup %5478  ;;  %v4509_v55 = vadd.f32 1.0, %v5477_v62  ;;  %4665 = vst [vmem:[%s7282_s23 + $0x20] sm:$0xff] %v4653_v29  ;;  %vm4648_vm8 = vcmp.eq.s32.totalorder %v4645_v20, 1 }
 0xd39   :  { %v4540_v13 = vadd.f32 %v5479_v60, %v7052_v61  ;;  %v4630_v7 = vsel %vm4563_vm3, %v4618_v0, %v5479_v60  ;;  %v4655_v42 = vsel %vm4647_vm7, %v4541_v15, %v4631_v28  ;;  %v5481_v41 = vpop.eup %5480 }
 0xd3a   :  { %5494 = vrcp.f32 %v4509_v55  ;;  %4667 = vst [vmem:[%s7282_s23 + $0x30] sm:$0xff] %v4655_v42  ;;  %v5483_v45 = vpop.eup %5482  ;;  %v4508_v37 = vadd.f32 1.0, %v5481_v41 }
 0xd3b   :  { %v4654_v17 = vsel %vm4647_vm7, %v4540_v13, %v4630_v7  ;;  %5496 = vpow2.f32 %v4599_v32  ;;  %v4621_v8 = vmul.f32 %v5483_v45, %v7044_v44 }
 0xd3c   :  { %v5485_v24 = vpop.eup %5484  ;;  %4666 = vst [vmem:[%s7282_s23 + $0x28] sm:$0xff] %v4654_v17  ;;  %5498 = vrcp.f32 %v4508_v37 }
 0xd3d   :  { %v5487_v61 = vpop.eup %5486  ;;  %v4542_v27 = vadd.f32 %v5485_v24, %v7056_v14  ;;  %v4632_v9 = vsel %vm4563_vm3, %v4620_v30, %v5485_v24 }
 0xd3e   :  { %v4510_v10 = vadd.f32 1.0, %v5487_v61  ;;  %v5489_v33 = vpop.eup %5488 }
 0xd3f   :  { %v4656_v63 = vsel %vm4647_vm7, %v4542_v27, %v4632_v9  ;;  %v4623_v11 = vmul.f32 %v5489_v33, %v7044_v44 }
 0xd40   :  { %v5491_v38 = vpop.eup %5490  ;;  %5500 = vrcp.f32 %v4510_v10  ;;  %4668 = vst [vmem:[%s7282_s23 + $0x38] sm:$0xff] %v4656_v63 }
 0xd41   :  { %v4543_v53 = vadd.f32 %v5491_v38, %v7062_v23  ;;  %v4633_v14 = vsel %vm4564_vm5, %v4621_v8, %v5491_v38  ;;  %v5493_v59 = vpop.eup %5492 }
 0xd42   :  { %v4622_v22 = vmul.f32 %v5493_v59, %v7044_v44 }
 0xd43   :  { %v4657_v51 = vsel %vm4648_vm8, %v4543_v53, %v4633_v14 }
 0xd44   :  { %v5495_v3 = vpop.eup %5494  ;;  %4669 = vst [vmem:[%s7282_s23 + $0x40] sm:$0x1f] %v4657_v51 }
 0xd45   :  { %v4545_v1 = vadd.f32 %v5495_v3, %v7066_v6  ;;  %v4635_v4 = vsel %vm4564_vm5, %v4623_v11, %v5495_v3  ;;  %v5497_v23 = vpop.eup %5496 }
 0xd46   :  { %v5499_v56 = vpop.eup %5498  ;;  %v4624_v6 = vmul.f32 %v5497_v23, %v7044_v44 }
 0xd47   :  { %v4659_v52 = vsel %vm4648_vm8, %v4545_v1, %v4635_v4  ;;  %v4544_v39 = vadd.f32 %v5499_v56, %v7064_v36  ;;  %v4634_v5 = vsel %vm4564_vm5, %v4622_v22, %v5499_v56 }
 0xd48   :  { %4671 = vst [vmem:[%s7282_s23 + $0x50] sm:$0x1f] %v4659_v52 }
 0xd49   :  { %v4658_v35 = vsel %vm4648_vm8, %v4544_v39, %v4634_v5 }
 0xd4a   :  { %v5501_v48 = vpop.eup %5500  ;;  %4670 = vst [vmem:[%s7282_s23 + $0x48] sm:$0x1f] %v4658_v35 }
 0xd4b   :  { %v4546_v25 = vadd.f32 %v5501_v48, %v7068_v47  ;;  %v4636_v43 = vsel %vm4564_vm5, %v4624_v6, %v5501_v48 }
 0xd4d   :  { %v4660_v36 = vsel %vm4648_vm8, %v4546_v25, %v4636_v43 }
 0xd4e   :  { %4672 = vst [vmem:[%s7282_s23 + $0x58] sm:$0x1f] %v4660_v36 }

</bundles_post_ra>
